<compile_context>
chip_gen: v5e
topology: v5e:2x2
jax: 0.10.0
libtpu: 0.0.40
codegen_flags: <defaults>
</compile_context>

<pallas_src>
import jax
import jax.numpy as jnp
from jax import lax
from jax.experimental import pallas as pl
from jax.experimental.pallas import tpu as pltpu

LANE = 128

_COMPILER_PARAMS = pltpu.CompilerParams(
    dimension_semantics=("parallel",),
    vmem_limit_bytes=32 * 1024 * 1024,  # safe on v5e/v6e/v7x; kernels use <8 MiB
)


def _round_up(x, m):
    return (x + m - 1) // m * m


def _row_tile(m, max_tile=1024):
    """Rows per grid step: the largest multiple-of-8 divisor of m that is
    <= max_tile and leaves >= 2 grid steps (so dimension_semantics=('parallel',)
    can shard rows across v7x's two TensorCores).  m is 8-aligned because the
    batch is padded to a multiple of 8 at entry."""
    assert m % 8 == 0 and m > 0
    if m == 8:
        return 8
    best = 8
    for t in range(8, min(m // 2, max_tile) + 1, 8):
        if m % t == 0:
            best = t
    return best


# ----------------------------------------------------------------------------
# Pallas kernels
# ----------------------------------------------------------------------------
def _conv_relu_pool_kernel(p_ref, w_ref, b_ref, o_ref):
    """Fused conv(as matmul) + bias + ReLU + 2x2/2 max-pool.

    p_ref: (4, TM, K)   im2col patches, one group per 2x2 pooling corner
    w_ref: (K, 128)     conv weight, rows (kh, kw, cin)-ordered, zero-padded
    b_ref: (1, 128)     bias, zero-padded
    o_ref: (TM, Cout)   pooled, ReLU'd rows, (n, hp, wp)-major, Cout in {8, 16}
    """
    tm, k = p_ref.shape[1], p_ref.shape[2]
    # One MXU call for all 4 corners (amortizes weight push / fill-drain).
    acc = jnp.dot(p_ref[...].reshape(4 * tm, k), w_ref[...],
                  preferred_element_type=jnp.float32)
    # maxpool(relu(conv + b)) == relu(max_corners(conv) + b): the bias is
    # constant across corners and ReLU is monotone.
    h = jnp.max(acc.reshape(4, tm, LANE), axis=0)
    h = jnp.maximum(h + b_ref[...], 0.0)
    o_ref[...] = h[:, :o_ref.shape[-1]].astype(o_ref.dtype)


def _mlp3_kernel(x_ref, w1_ref, b1_ref, w2_ref, b2_ref, w3_ref, b3_ref, o_ref):
    """Fused classifier fc1 -> fc2 -> fc3 (no activations: the reference
    classifier is nn.Sequential(Linear, Linear, Linear))."""
    h = jnp.dot(x_ref[...], w1_ref[...],
                preferred_element_type=jnp.float32) + b1_ref[...]
    h = jnp.dot(h, w2_ref[...], preferred_element_type=jnp.float32) + b2_ref[...]
    h = jnp.dot(h, w3_ref[...], preferred_element_type=jnp.float32) + b3_ref[...]
    o_ref[...] = h[:, :o_ref.shape[-1]].astype(o_ref.dtype)


# ----------------------------------------------------------------------------
# Conv stage: corner-grouped im2col (XLA glue, single materialization) + kernel
# ----------------------------------------------------------------------------
def _pool_corner_patches(x, kh, kw, pad):
    """x: (N, H, W, C) NHWC -> (4, N*Hp*Wp, K) patches grouped by the 2x2
    pooling-window corner.  Columns are (kh, kw, cin)-ordered and zero-padded
    so K is a multiple of 8 (sublane-aligned) -- no separate pad pass."""
    n, h, w, c = x.shape
    xp = jnp.pad(x, ((0, 0), (pad, pad), (pad, pad), (0, 0)))
    ho, wo = h + 2 * pad - kh + 1, w + 2 * pad - kw + 1
    # Corner-grouped pooling needs even conv-output spatial dims (28, 10 here).
    assert ho % 2 == 0 and wo % 2 == 0, (ho, wo)
    hp, wp = ho // 2, wo // 2
    k = kh * kw * c
    k_pad = _round_up(k, 8)
    corners = []
    for dh in (0, 1):
        for dw in (0, 1):
            slabs = [xp[:, dh + i:dh + i + 2 * hp:2, dw + j:dw + j + 2 * wp:2, :]
                     for i in range(kh) for j in range(kw)]
            if k_pad > k:
                slabs.append(jnp.zeros((n, hp, wp, k_pad - k), x.dtype))
            corners.append(
                jnp.concatenate(slabs, axis=-1).reshape(n * hp * wp, k_pad))
    return jnp.stack(corners, axis=0), hp, wp


def conv_relu_pool(x, w_pad, b_pad, *, kh, kw, pad, out_c):
    """relu(maxpool2x2(conv2d(x) + b)) in NHWC; writes only out_c channels."""
    n = x.shape[0]
    patches, hp, wp = _pool_corner_patches(x, kh, kw, pad)     # (4, M, K)
    m, k = patches.shape[1], patches.shape[2]
    assert k == w_pad.shape[0], (k, w_pad.shape)
    tm = _row_tile(m)
    out = pl.pallas_call(
        _conv_relu_pool_kernel,
        grid=(m // tm,),
        out_shape=jax.ShapeDtypeStruct((m, out_c), jnp.float32),
        in_specs=[
            pl.BlockSpec((4, tm, k), lambda i: (0, i, 0)),
            pl.BlockSpec((k, LANE), lambda i: (0, 0)),
            pl.BlockSpec((1, LANE), lambda i: (0, 0)),
        ],
        out_specs=pl.BlockSpec((tm, out_c), lambda i: (i, 0)),
        compiler_params=_COMPILER_PARAMS,
    )(patches, w_pad, b_pad)
    return out.reshape(n, hp, wp, out_c)


# ----------------------------------------------------------------------------
# Classifier: single fused Pallas kernel (all weights VMEM-resident)
# ----------------------------------------------------------------------------
def classifier(feats, prep):
    n, k = feats.shape                                         # (N_pad, 400)
    tm = _row_tile(n)
    return pl.pallas_call(
        _mlp3_kernel,
        grid=(n // tm,),
        out_shape=jax.ShapeDtypeStruct((n, 16), jnp.float32),
        in_specs=[
            pl.BlockSpec((tm, k), lambda i: (i, 0)),
            pl.BlockSpec((k, LANE), lambda i: (0, 0)),
            pl.BlockSpec((1, LANE), lambda i: (0, 0)),
            pl.BlockSpec((LANE, LANE), lambda i: (0, 0)),
            pl.BlockSpec((1, LANE), lambda i: (0, 0)),
            pl.BlockSpec((LANE, LANE), lambda i: (0, 0)),
            pl.BlockSpec((1, LANE), lambda i: (0, 0)),
        ],
        out_specs=pl.BlockSpec((tm, 16), lambda i: (i, 0)),
        compiler_params=_COMPILER_PARAMS,
    )(feats, prep["fc1_w"], prep["fc1_b"], prep["fc2_w"], prep["fc2_b"],
      prep["fc3_w"], prep["fc3_b"])


# ----------------------------------------------------------------------------
# Parameters: PyTorch-style init + one-time layout/padding prep
# ----------------------------------------------------------------------------
def _uniform(key, shape, fan_in):
    bound = 1.0 / jnp.sqrt(jnp.float32(fan_in))
    return jax.random.uniform(key, shape, jnp.float32, -bound, bound)


def init_params(key):
    ks = jax.random.split(key, 10)
    return {
        "conv1_w": _uniform(ks[0], (6, 1, 5, 5), 25),
        "conv1_b": _uniform(ks[1], (6,), 25),
        "conv2_w": _uniform(ks[2], (16, 6, 5, 5), 150),
        "conv2_b": _uniform(ks[3], (16,), 150),
        "fc1_w": _uniform(ks[4], (120, 400), 400),
        "fc1_b": _uniform(ks[5], (120,), 400),
        "fc2_w": _uniform(ks[6], (84, 120), 120),
        "fc2_b": _uniform(ks[7], (84,), 120),
        "fc3_w": _uniform(ks[8], (10, 84), 84),
        "fc3_b": _uniform(ks[9], (10,), 84),
    }


def prepare_params(p):
    """One-time layout prep: flatten/transpose every weight into the layout the
    kernels consume.  Conv K dims are padded only to a multiple of 8; output
    (lane) dims of the weight matrices are padded to 128 for lane-dense MXU
    operands, with the real channel count sliced at store time in-kernel."""

    def conv_w(w, cin_pad):
        o, ci, kh, kw = w.shape
        wm = jnp.transpose(w, (2, 3, 1, 0))                    # (KH, KW, Cin, O)
        if cin_pad > ci:
            wm = jnp.pad(wm, ((0, 0), (0, 0), (0, cin_pad - ci), (0, 0)))
        wm = wm.reshape(kh * kw * cin_pad, o)
        k_pad = _round_up(kh * kw * cin_pad, 8)
        return jnp.pad(wm, ((0, k_pad - wm.shape[0]), (0, LANE - o)))

    def bias(b):
        return jnp.pad(b.reshape(1, -1), ((0, 0), (0, LANE - b.shape[0])))

    # fc1 columns: PyTorch flattens NCHW (c, h, w); our features are NHWC (h, w, c).
    fc1 = p["fc1_w"].reshape(120, 16, 5, 5).transpose(0, 2, 3, 1).reshape(120, 400)
    return {
        # conv1: Cin=1 (K 25->32); conv2 consumes conv1's 8-channel output, so
        # its Cin is padded 6->8 with zero rows (K = 25*8 = 200).
        "conv1_w": conv_w(p["conv1_w"], 1), "conv1_b": bias(p["conv1_b"]),
        "conv2_w": conv_w(p["conv2_w"], 8), "conv2_b": bias(p["conv2_b"]),
        "fc1_w": jnp.pad(fc1.T, ((0, 0), (0, LANE - 120))),      # (400, 128)
        "fc1_b": bias(p["fc1_b"]),
        "fc2_w": jnp.pad(p["fc2_w"].T, ((0, 8), (0, LANE - 84))),   # (128, 128)
        "fc2_b": bias(p["fc2_b"]),
        "fc3_w": jnp.pad(p["fc3_w"].T, ((0, 44), (0, LANE - 10))),  # (128, 128)
        "fc3_b": bias(p["fc3_b"]),
    }


# ----------------------------------------------------------------------------
# Full forward pass (mirrors Net.forward)
# ----------------------------------------------------------------------------
def net_forward(prep, x_nchw):
    n = x_nchw.shape[0]
    n_pad = _round_up(n, 8)          # 8-aligned rows at every stage (cheap: raw input only)
    x = jnp.transpose(x_nchw, (0, 2, 3, 1))                               # NHWC
    if n_pad != n:
        x = jnp.pad(x, ((0, n_pad - n), (0, 0), (0, 0), (0, 0)))
    x = conv_relu_pool(x, prep["conv1_w"], prep["conv1_b"],
                       kh=5, kw=5, pad=2, out_c=8)        # (Np,14,14,8), ch 6..7 are 0
    x = conv_relu_pool(x, prep["conv2_w"], prep["conv2_b"],
                       kh=5, kw=5, pad=0, out_c=16)       # (Np,5,5,16)
    feats = x.reshape(n_pad, 400)
    logits = classifier(feats, prep)                      # (Np,16), cols 10..15 are 0
    return logits[:n, :10]


# ----------------------------------------------------------------------------
# Pure-XLA reference (PyTorch semantics) for the in-script correctness check
# ----------------------------------------------------------------------------
def net_reference(params, x_nchw):
    def conv(x, w, b, pad):
        out = lax.conv_general_dilated(
            x, w, window_strides=(1, 1), padding=[(pad, pad), (pad, pad)],
            dimension_numbers=("NCHW", "OIHW", "NCHW"))
        return out + b.reshape(1, -1, 1, 1)

    def pool(x):
        return lax.reduce_window(x, -jnp.inf, lax.max,
                                 (1, 1, 2, 2), (1, 1, 2, 2), "VALID")

    h = pool(jax.nn.relu(conv(x_nchw, params["conv1_w"], params["conv1_b"], 2)))
    h = pool(jax.nn.relu(conv(h, params["conv2_w"], params["conv2_b"], 0)))
    h = h.reshape(h.shape[0], -1)                          # NCHW flatten (c, h, w)
    h = h @ params["fc1_w"].T + params["fc1_b"]
    h = h @ params["fc2_w"].T + params["fc2_b"]
    h = h @ params["fc3_w"].T + params["fc3_b"]
    return h


if __name__ == "__main__":
    key = jax.random.PRNGKey(0)
    k_x, k_p = jax.random.split(key)
    # Classifier expects 400 = 16*5*5 features => 1x28x28 MNIST-style input.
    x = jax.random.normal(k_x, (2, 1, 28, 28), dtype=jnp.float32)
    params = init_params(k_p)
    prep = prepare_params(params)

    fwd = jax.jit(net_forward)
    out = jax.block_until_ready(fwd(prep, x))

    assert out.shape == (2, 10), out.shape
    assert bool(jnp.all(jnp.isfinite(out)))

    ref = net_reference(params, x)
    max_err = float(jnp.max(jnp.abs(out - ref)))
    assert bool(jnp.allclose(out, ref, atol=5e-2, rtol=5e-2)), max_err
    print("KERNEL_OK")
</pallas_src>

<mosaic_0001>
module attributes {stable_mosaic.version = 11 : i64} {
  func.func @_conv_relu_pool_kernel(%arg0: i32, %arg1: memref<4x784x32xf32, #tpu.memory_space<vmem>>, %arg2: memref<32x128xf32, #tpu.memory_space<vmem>>, %arg3: memref<1x128xf32, #tpu.memory_space<vmem>>, %arg4: memref<784x8xf32, #tpu.memory_space<vmem>>) attributes {dimension_semantics = [#tpu.dimension_semantics<parallel>], iteration_bounds = array<i64: 2>, scalar_prefetch = 0 : i64, scratch_operands = 0 : i64, tpu.core_type = #tpu.core_type<tc>, window_params = [{transform_indices = @transform_0, window_bounds = array<i64: 4, 784, 32>}, {pipeline_mode = #tpu.pipeline_mode<synchronous>, transform_indices = @transform_1, window_bounds = array<i64: 32, 128>}, {pipeline_mode = #tpu.pipeline_mode<synchronous>, transform_indices = @transform_2, window_bounds = array<i64: 1, 128>}, {transform_indices = @transform_3, window_bounds = array<i64: 784, 8>}]} {
    %c0 = arith.constant 0 : index
    %c0_0 = arith.constant 0 : index
    %c0_1 = arith.constant 0 : index
    %0 = vector.load %arg1[%c0, %c0_0, %c0_1] : memref<4x784x32xf32, #tpu.memory_space<vmem>>, vector<4x784x32xf32>
    %1 = vector.shape_cast %0 : vector<4x784x32xf32> to vector<3136x32xf32>
    %c0_2 = arith.constant 0 : index
    %c0_3 = arith.constant 0 : index
    %2 = vector.load %arg2[%c0_2, %c0_3] : memref<32x128xf32, #tpu.memory_space<vmem>>, vector<32x128xf32>
    %cst = arith.constant dense<0.000000e+00> : vector<3136x128xf32>
    %3 = tpu.matmul %1, %2, %cst {dimension_numbers = #tpu.dot_dimension_numbers<[1], [0], [0], [1], [0, 0, 1, 1], [], []>} : vector<3136x32xf32>, vector<32x128xf32>, vector<3136x128xf32> -> vector<3136x128xf32>
    %4 = vector.shape_cast %3 : vector<3136x128xf32> to vector<4x784x128xf32>
    %cst_4 = arith.constant dense<0xFF800000> : vector<784x128xf32>
    %5 = vector.multi_reduction <maximumf>, %4, %cst_4 [0] : vector<4x784x128xf32> to vector<784x128xf32>
    %c0_5 = arith.constant 0 : index
    %c0_6 = arith.constant 0 : index
    %6 = vector.load %arg3[%c0_5, %c0_6] : memref<1x128xf32, #tpu.memory_space<vmem>>, vector<1x128xf32>
    %7 = vector.broadcast %6 : vector<1x128xf32> to vector<784x128xf32>
    %8 = arith.addf %5, %7 : vector<784x128xf32>
    %cst_7 = arith.constant 0.000000e+00 : f32
    %9 = vector.broadcast %cst_7 : f32 to vector<784x128xf32>
    %10 = arith.maximumf %8, %9 : vector<784x128xf32>
    %11 = vector.extract_strided_slice %10 {offsets = [0, 0], sizes = [784, 8], strides = [1, 1]} : vector<784x128xf32> to vector<784x8xf32>
    %c0_8 = arith.constant 0 : index
    %c0_9 = arith.constant 0 : index
    %12 = vector.load %arg4[%c0_8, %c0_9] : memref<784x8xf32, #tpu.memory_space<vmem>>, vector<784x8xf32>
    tpu.vector_store %arg4[%c0_8, %c0_9], %11 {strides = array<i32>} : memref<784x8xf32, #tpu.memory_space<vmem>>, vector<784x8xf32>,
    return
  }
  func.func @transform_0(%arg0: i32) -> (i32, i32, i32) {
    %c0_i32 = arith.constant 0 : i32
    %c0_i32_0 = arith.constant 0 : i32
    %c0_i32_1 = arith.constant 0 : i32
    return %c0_i32, %arg0, %c0_i32_0 : i32, i32, i32
  }
  func.func @transform_1(%arg0: i32) -> (i32, i32) {
    %c0_i32 = arith.constant 0 : i32
    %c0_i32_0 = arith.constant 0 : i32
    %c0_i32_1 = arith.constant 0 : i32
    return %c0_i32, %c0_i32_0 : i32, i32
  }
  func.func @transform_2(%arg0: i32) -> (i32, i32) {
    %c0_i32 = arith.constant 0 : i32
    %c0_i32_0 = arith.constant 0 : i32
    %c0_i32_1 = arith.constant 0 : i32
    return %c0_i32, %c0_i32_0 : i32, i32
  }
  func.func @transform_3(%arg0: i32) -> (i32, i32) {
    %c0_i32 = arith.constant 0 : i32
    %c0_i32_0 = arith.constant 0 : i32
    return %arg0, %c0_i32 : i32, i32
  }
}

module attributes {stable_mosaic.version = 11 : i64} {
  func.func @_conv_relu_pool_kernel(%arg0: i32, %arg1: memref<4x40x200xf32, #tpu.memory_space<vmem>>, %arg2: memref<200x128xf32, #tpu.memory_space<vmem>>, %arg3: memref<1x128xf32, #tpu.memory_space<vmem>>, %arg4: memref<40x16xf32, #tpu.memory_space<vmem>>) attributes {dimension_semantics = [#tpu.dimension_semantics<parallel>], iteration_bounds = array<i64: 5>, scalar_prefetch = 0 : i64, scratch_operands = 0 : i64, tpu.core_type = #tpu.core_type<tc>, window_params = [{transform_indices = @transform_0, window_bounds = array<i64: 4, 40, 200>}, {pipeline_mode = #tpu.pipeline_mode<synchronous>, transform_indices = @transform_1, window_bounds = array<i64: 200, 128>}, {pipeline_mode = #tpu.pipeline_mode<synchronous>, transform_indices = @transform_2, window_bounds = array<i64: 1, 128>}, {transform_indices = @transform_3, window_bounds = array<i64: 40, 16>}]} {
    %c0 = arith.constant 0 : index
    %c0_0 = arith.constant 0 : index
    %c0_1 = arith.constant 0 : index
    %0 = vector.load %arg1[%c0, %c0_0, %c0_1] : memref<4x40x200xf32, #tpu.memory_space<vmem>>, vector<4x40x200xf32>
    %1 = vector.shape_cast %0 : vector<4x40x200xf32> to vector<160x200xf32>
    %c0_2 = arith.constant 0 : index
    %c0_3 = arith.constant 0 : index
    %2 = vector.load %arg2[%c0_2, %c0_3] : memref<200x128xf32, #tpu.memory_space<vmem>>, vector<200x128xf32>
    %cst = arith.constant dense<0.000000e+00> : vector<160x128xf32>
    %3 = tpu.matmul %1, %2, %cst {dimension_numbers = #tpu.dot_dimension_numbers<[1], [0], [0], [1], [0, 0, 1, 1], [], []>} : vector<160x200xf32>, vector<200x128xf32>, vector<160x128xf32> -> vector<160x128xf32>
    %4 = vector.shape_cast %3 : vector<160x128xf32> to vector<4x40x128xf32>
    %cst_4 = arith.constant dense<0xFF800000> : vector<40x128xf32>
    %5 = vector.multi_reduction <maximumf>, %4, %cst_4 [0] : vector<4x40x128xf32> to vector<40x128xf32>
    %c0_5 = arith.constant 0 : index
    %c0_6 = arith.constant 0 : index
    %6 = vector.load %arg3[%c0_5, %c0_6] : memref<1x128xf32, #tpu.memory_space<vmem>>, vector<1x128xf32>
    %7 = vector.broadcast %6 : vector<1x128xf32> to vector<40x128xf32>
    %8 = arith.addf %5, %7 : vector<40x128xf32>
    %cst_7 = arith.constant 0.000000e+00 : f32
    %9 = vector.broadcast %cst_7 : f32 to vector<40x128xf32>
    %10 = arith.maximumf %8, %9 : vector<40x128xf32>
    %11 = vector.extract_strided_slice %10 {offsets = [0, 0], sizes = [40, 16], strides = [1, 1]} : vector<40x128xf32> to vector<40x16xf32>
    %c0_8 = arith.constant 0 : index
    %c0_9 = arith.constant 0 : index
    %12 = vector.load %arg4[%c0_8, %c0_9] : memref<40x16xf32, #tpu.memory_space<vmem>>, vector<40x16xf32>
    tpu.vector_store %arg4[%c0_8, %c0_9], %11 {strides = array<i32>} : memref<40x16xf32, #tpu.memory_space<vmem>>, vector<40x16xf32>,
    return
  }
  func.func @transform_0(%arg0: i32) -> (i32, i32, i32) {
    %c0_i32 = arith.constant 0 : i32
    %c0_i32_0 = arith.constant 0 : i32
    %c0_i32_1 = arith.constant 0 : i32
    return %c0_i32, %arg0, %c0_i32_0 : i32, i32, i32
  }
  func.func @transform_1(%arg0: i32) -> (i32, i32) {
    %c0_i32 = arith.constant 0 : i32
    %c0_i32_0 = arith.constant 0 : i32
    %c0_i32_1 = arith.constant 0 : i32
    return %c0_i32, %c0_i32_0 : i32, i32
  }
  func.func @transform_2(%arg0: i32) -> (i32, i32) {
    %c0_i32 = arith.constant 0 : i32
    %c0_i32_0 = arith.constant 0 : i32
    %c0_i32_1 = arith.constant 0 : i32
    return %c0_i32, %c0_i32_0 : i32, i32
  }
  func.func @transform_3(%arg0: i32) -> (i32, i32) {
    %c0_i32 = arith.constant 0 : i32
    %c0_i32_0 = arith.constant 0 : i32
    return %arg0, %c0_i32 : i32, i32
  }
}

module attributes {stable_mosaic.version = 11 : i64} {
  func.func @_mlp3_kernel(%arg0: i32, %arg1: memref<8x400xf32, #tpu.memory_space<vmem>>, %arg2: memref<400x128xf32, #tpu.memory_space<vmem>>, %arg3: memref<1x128xf32, #tpu.memory_space<vmem>>, %arg4: memref<128x128xf32, #tpu.memory_space<vmem>>, %arg5: memref<1x128xf32, #tpu.memory_space<vmem>>, %arg6: memref<128x128xf32, #tpu.memory_space<vmem>>, %arg7: memref<1x128xf32, #tpu.memory_space<vmem>>, %arg8: memref<8x16xf32, #tpu.memory_space<vmem>>) attributes {dimension_semantics = [#tpu.dimension_semantics<parallel>], iteration_bounds = array<i64: 1>, scalar_prefetch = 0 : i64, scratch_operands = 0 : i64, tpu.core_type = #tpu.core_type<tc>, window_params = [{transform_indices = @transform_0, window_bounds = array<i64: 8, 400>}, {pipeline_mode = #tpu.pipeline_mode<synchronous>, transform_indices = @transform_1, window_bounds = array<i64: 400, 128>}, {pipeline_mode = #tpu.pipeline_mode<synchronous>, transform_indices = @transform_2, window_bounds = array<i64: 1, 128>}, {pipeline_mode = #tpu.pipeline_mode<synchronous>, transform_indices = @transform_3, window_bounds = array<i64: 128, 128>}, {pipeline_mode = #tpu.pipeline_mode<synchronous>, transform_indices = @transform_4, window_bounds = array<i64: 1, 128>}, {pipeline_mode = #tpu.pipeline_mode<synchronous>, transform_indices = @transform_5, window_bounds = array<i64: 128, 128>}, {pipeline_mode = #tpu.pipeline_mode<synchronous>, transform_indices = @transform_6, window_bounds = array<i64: 1, 128>}, {transform_indices = @transform_7, window_bounds = array<i64: 8, 16>}]} {
    %c0 = arith.constant 0 : index
    %c0_0 = arith.constant 0 : index
    %0 = vector.load %arg1[%c0, %c0_0] : memref<8x400xf32, #tpu.memory_space<vmem>>, vector<8x400xf32>
    %c0_1 = arith.constant 0 : index
    %c0_2 = arith.constant 0 : index
    %1 = vector.load %arg2[%c0_1, %c0_2] : memref<400x128xf32, #tpu.memory_space<vmem>>, vector<400x128xf32>
    %cst = arith.constant dense<0.000000e+00> : vector<8x128xf32>
    %2 = tpu.matmul %0, %1, %cst {dimension_numbers = #tpu.dot_dimension_numbers<[1], [0], [0], [1], [0, 0, 1, 1], [], []>} : vector<8x400xf32>, vector<400x128xf32>, vector<8x128xf32> -> vector<8x128xf32>
    %c0_3 = arith.constant 0 : index
    %c0_4 = arith.constant 0 : index
    %3 = vector.load %arg3[%c0_3, %c0_4] : memref<1x128xf32, #tpu.memory_space<vmem>>, vector<1x128xf32>
    %4 = vector.broadcast %3 : vector<1x128xf32> to vector<8x128xf32>
    %5 = arith.addf %2, %4 : vector<8x128xf32>
    %c0_5 = arith.constant 0 : index
    %c0_6 = arith.constant 0 : index
    %6 = vector.load %arg4[%c0_5, %c0_6] : memref<128x128xf32, #tpu.memory_space<vmem>>, vector<128x128xf32>
    %cst_7 = arith.constant dense<0.000000e+00> : vector<8x128xf32>
    %7 = tpu.matmul %5, %6, %cst_7 {dimension_numbers = #tpu.dot_dimension_numbers<[1], [0], [0], [1], [0, 0, 1, 1], [], []>} : vector<8x128xf32>, vector<128x128xf32>, vector<8x128xf32> -> vector<8x128xf32>
    %c0_8 = arith.constant 0 : index
    %c0_9 = arith.constant 0 : index
    %8 = vector.load %arg5[%c0_8, %c0_9] : memref<1x128xf32, #tpu.memory_space<vmem>>, vector<1x128xf32>
    %9 = vector.broadcast %8 : vector<1x128xf32> to vector<8x128xf32>
    %10 = arith.addf %7, %9 : vector<8x128xf32>
    %c0_10 = arith.constant 0 : index
    %c0_11 = arith.constant 0 : index
    %11 = vector.load %arg6[%c0_10, %c0_11] : memref<128x128xf32, #tpu.memory_space<vmem>>, vector<128x128xf32>
    %cst_12 = arith.constant dense<0.000000e+00> : vector<8x128xf32>
    %12 = tpu.matmul %10, %11, %cst_12 {dimension_numbers = #tpu.dot_dimension_numbers<[1], [0], [0], [1], [0, 0, 1, 1], [], []>} : vector<8x128xf32>, vector<128x128xf32>, vector<8x128xf32> -> vector<8x128xf32>
    %c0_13 = arith.constant 0 : index
    %c0_14 = arith.constant 0 : index
    %13 = vector.load %arg7[%c0_13, %c0_14] : memref<1x128xf32, #tpu.memory_space<vmem>>, vector<1x128xf32>
    %14 = vector.broadcast %13 : vector<1x128xf32> to vector<8x128xf32>
    %15 = arith.addf %12, %14 : vector<8x128xf32>
    %16 = vector.extract_strided_slice %15 {offsets = [0, 0], sizes = [8, 16], strides = [1, 1]} : vector<8x128xf32> to vector<8x16xf32>
    %c0_15 = arith.constant 0 : index
    %c0_16 = arith.constant 0 : index
    %17 = vector.load %arg8[%c0_15, %c0_16] : memref<8x16xf32, #tpu.memory_space<vmem>>, vector<8x16xf32>
    tpu.vector_store %arg8[%c0_15, %c0_16], %16 {strides = array<i32>} : memref<8x16xf32, #tpu.memory_space<vmem>>, vector<8x16xf32>,
    return
  }
  func.func @transform_0(%arg0: i32) -> (i32, i32) {
    %c0_i32 = arith.constant 0 : i32
    %c0_i32_0 = arith.constant 0 : i32
    return %arg0, %c0_i32 : i32, i32
  }
  func.func @transform_1(%arg0: i32) -> (i32, i32) {
    %c0_i32 = arith.constant 0 : i32
    %c0_i32_0 = arith.constant 0 : i32
    %c0_i32_1 = arith.constant 0 : i32
    return %c0_i32, %c0_i32_0 : i32, i32
  }
  func.func @transform_2(%arg0: i32) -> (i32, i32) {
    %c0_i32 = arith.constant 0 : i32
    %c0_i32_0 = arith.constant 0 : i32
    %c0_i32_1 = arith.constant 0 : i32
    return %c0_i32, %c0_i32_0 : i32, i32
  }
  func.func @transform_3(%arg0: i32) -> (i32, i32) {
    %c0_i32 = arith.constant 0 : i32
    %c0_i32_0 = arith.constant 0 : i32
    %c0_i32_1 = arith.constant 0 : i32
    return %c0_i32, %c0_i32_0 : i32, i32
  }
  func.func @transform_4(%arg0: i32) -> (i32, i32) {
    %c0_i32 = arith.constant 0 : i32
    %c0_i32_0 = arith.constant 0 : i32
    %c0_i32_1 = arith.constant 0 : i32
    return %c0_i32, %c0_i32_0 : i32, i32
  }
  func.func @transform_5(%arg0: i32) -> (i32, i32) {
    %c0_i32 = arith.constant 0 : i32
    %c0_i32_0 = arith.constant 0 : i32
    %c0_i32_1 = arith.constant 0 : i32
    return %c0_i32, %c0_i32_0 : i32, i32
  }
  func.func @transform_6(%arg0: i32) -> (i32, i32) {
    %c0_i32 = arith.constant 0 : i32
    %c0_i32_0 = arith.constant 0 : i32
    %c0_i32_1 = arith.constant 0 : i32
    return %c0_i32, %c0_i32_0 : i32, i32
  }
  func.func @transform_7(%arg0: i32) -> (i32, i32) {
    %c0_i32 = arith.constant 0 : i32
    %c0_i32_0 = arith.constant 0 : i32
    return %arg0, %c0_i32 : i32, i32
  }
}

</mosaic_0001>

<bundles_post_ra>
// kernel: net_forward.3
= control target key start
LH: loop header
LB: loop body
LE: loop exit
PB: predicated region body
PF: predicated region fallthrough
CT: control target
= control target key end

     0   :  { %s7295_s12 = smov 0   ;;  %s7297_s13 = smov 0   ;;  %s9249_s0 = inlined_call_operand.vmem [shape: f32[4,1568,32], index: 0, kind: input, shape index: {}]   ;;  %s9250_s1 = inlined_call_operand.vmem [shape: f32[32,128], index: 1, kind: input, shape index: {}]   ;;  %s9251_s2 = inlined_call_operand.vmem [shape: f32[1,128], index: 2, kind: input, shape index: {}]   ;;  %s9252_s3 = inlined_call_operand.vmem [shape: f32[1568,8], index: 3, kind: output, shape index: {}]  }
   0x1   :  { %s7299_s14 = smov 0  }
   0x2 LB: > { %s6807_s15 = sadd.s32 4294967295, %s7273_s14   ;;  %s7312_s16 = sadd.s32 1, %s7273_s14   ;;  %s7273_s14 = sphi %s7299_s14, %s9255_s14   ;;  %s7269_s13 = sphi %s7297_s13, %s9254_s13   ;;  %s7265_s12 = sphi %s7295_s12, %s9253_s12  }
   0x3   : > { %s17_s17 = ssub.s32 %s7273_s14, %s7312_s16  ;;  %s20_s18 = sadd.s32 1, %s7269_s13 }
   0x4   : > { %p18_p0 = scmp.eq.s32.totalorder %s17_s17, 0  ;;  %p27_p1 = scmp.ne.s32.totalorder %s7269_s13, %s7265_s12 }
   0x5   : > { %p28_p2 = scmp.eq.s32.totalorder %s7273_s14, 0  ;;  %p6810_p4 = scmp.ge.s32.totalorder %s7273_s14, 2 }
   0x6   : > { %s7321_s19 = scalar_select %p18_p0, %s7269_s13, %s20_s18  }
   0x7   : > { %p29_p3 = por %p28_p2, %p27_p1  ;;  %127 = sbr.rel (%p6810_p4) target bundleno = 409 (0x199), region = 24 }
   0xc   : > { %130 = sbr.rel (!%p29_p3) target bundleno = 409 (0x199), region = 28  ;;  %s132_s20 = sand.u32 (%p29_p3), 1, %s7269_s13  }
   0xd   : > { %s7208_s21 = smul.u32 (%p29_p3), 784, %s7273_s14 }
   0xe   : > { %s7221_s22 = smul.u32 (%p29_p3), 3136, %s132_s20 }
   0xf   : > { %s7329_s25 = scalar_lea.vmem (%p29_p3), %s9249_s0, %s7208_s21 }
  0x10   : > { %v949_v0 = vld [vmem:[%s7329_s25] sm:$0xff] (%p29_p3)  ;;  %v951_v1 = vld [vmem:[%s7329_s25 + $0x8] sm:$0xff] (%p29_p3)  ;;  %v953_v2 = vld [vmem:[%s7329_s25 + $0x10] sm:$0xff] (%p29_p3)  ;;  %s7334_s26 = scalar_lea.vmem (%p29_p3), [#allocation2], %s7221_s22 }
  0x11   : > { %950 = vst [vmem:[%s7334_s26] sm:$0xff] %v949_v0  ;;  %v955_v3 = vld [vmem:[%s7329_s25 + $0x18] sm:$0xff]  ;;  %v957_v4 = vld [vmem:[%s7329_s25 + $0x20] sm:$0xff]  ;;  %v959_v5 = vld [vmem:[%s7329_s25 + $0x28] sm:$0xff] }
  0x12   : > { %952 = vst [vmem:[%s7334_s26 + $0x8] sm:$0xff] %v951_v1  ;;  %v961_v6 = vld [vmem:[%s7329_s25 + $0x30] sm:$0xff]  ;;  %v963_v7 = vld [vmem:[%s7329_s25 + $0x38] sm:$0xff]  ;;  %v965_v8 = vld [vmem:[%s7329_s25 + $0x40] sm:$0xff] }
  0x13   : > { %954 = vst [vmem:[%s7334_s26 + $0x10] sm:$0xff] %v953_v2  ;;  %v967_v9 = vld [vmem:[%s7329_s25 + $0x48] sm:$0xff]  ;;  %v969_v10 = vld [vmem:[%s7329_s25 + $0x50] sm:$0xff]  ;;  %v971_v11 = vld [vmem:[%s7329_s25 + $0x58] sm:$0xff] }
  0x14   : > { %956 = vst [vmem:[%s7334_s26 + $0x18] sm:$0xff] %v955_v3  ;;  %v973_v12 = vld [vmem:[%s7329_s25 + $0x60] sm:$0xff]  ;;  %v975_v13 = vld [vmem:[%s7329_s25 + $0x68] sm:$0xff]  ;;  %v977_v14 = vld [vmem:[%s7329_s25 + $0x70] sm:$0xff] }
  0x15   : > { %958 = vst [vmem:[%s7334_s26 + $0x20] sm:$0xff] %v957_v4  ;;  %v979_v15 = vld [vmem:[%s7329_s25 + $0x78] sm:$0xff]  ;;  %v981_v16 = vld [vmem:[%s7329_s25 + $0x80] sm:$0xff]  ;;  %v983_v17 = vld [vmem:[%s7329_s25 + $0x88] sm:$0xff] }
  0x16   : > { %960 = vst [vmem:[%s7334_s26 + $0x28] sm:$0xff] %v959_v5  ;;  %v985_v18 = vld [vmem:[%s7329_s25 + $0x90] sm:$0xff]  ;;  %v987_v19 = vld [vmem:[%s7329_s25 + $0x98] sm:$0xff]  ;;  %v989_v20 = vld [vmem:[%s7329_s25 + $0xa0] sm:$0xff] }
  0x17   : > { %962 = vst [vmem:[%s7334_s26 + $0x30] sm:$0xff] %v961_v6  ;;  %v991_v21 = vld [vmem:[%s7329_s25 + $0xa8] sm:$0xff]  ;;  %v993_v22 = vld [vmem:[%s7329_s25 + $0xb0] sm:$0xff]  ;;  %v995_v23 = vld [vmem:[%s7329_s25 + $0xb8] sm:$0xff] }
  0x18   : > { %964 = vst [vmem:[%s7334_s26 + $0x38] sm:$0xff] %v963_v7  ;;  %v997_v24 = vld [vmem:[%s7329_s25 + $0xc0] sm:$0xff]  ;;  %v999_v25 = vld [vmem:[%s7329_s25 + $0xc8] sm:$0xff]  ;;  %v1001_v26 = vld [vmem:[%s7329_s25 + $0xd0] sm:$0xff] }
  0x19   : > { %966 = vst [vmem:[%s7334_s26 + $0x40] sm:$0xff] %v965_v8  ;;  %v1003_v27 = vld [vmem:[%s7329_s25 + $0xd8] sm:$0xff]  ;;  %v1005_v28 = vld [vmem:[%s7329_s25 + $0xe0] sm:$0xff]  ;;  %v1007_v29 = vld [vmem:[%s7329_s25 + $0xe8] sm:$0xff] }
  0x1a   : > { %968 = vst [vmem:[%s7334_s26 + $0x48] sm:$0xff] %v967_v9  ;;  %v1009_v30 = vld [vmem:[%s7329_s25 + $0xf0] sm:$0xff]  ;;  %v1011_v31 = vld [vmem:[%s7329_s25 + $0xf8] sm:$0xff]  ;;  %v1013_v32 = vld [vmem:[%s7329_s25 + $0x100] sm:$0xff] }
  0x1b   : > { %970 = vst [vmem:[%s7334_s26 + $0x50] sm:$0xff] %v969_v10  ;;  %v1015_v33 = vld [vmem:[%s7329_s25 + $0x108] sm:$0xff]  ;;  %v1017_v34 = vld [vmem:[%s7329_s25 + $0x110] sm:$0xff]  ;;  %v1019_v35 = vld [vmem:[%s7329_s25 + $0x118] sm:$0xff] }
  0x1c   : > { %972 = vst [vmem:[%s7334_s26 + $0x58] sm:$0xff] %v971_v11  ;;  %v1021_v36 = vld [vmem:[%s7329_s25 + $0x120] sm:$0xff]  ;;  %v1023_v37 = vld [vmem:[%s7329_s25 + $0x128] sm:$0xff]  ;;  %v1025_v38 = vld [vmem:[%s7329_s25 + $0x130] sm:$0xff] }
  0x1d   : > { %974 = vst [vmem:[%s7334_s26 + $0x60] sm:$0xff] %v973_v12  ;;  %v1027_v39 = vld [vmem:[%s7329_s25 + $0x138] sm:$0xff]  ;;  %v1029_v40 = vld [vmem:[%s7329_s25 + $0x140] sm:$0xff]  ;;  %v1031_v41 = vld [vmem:[%s7329_s25 + $0x148] sm:$0xff] }
  0x1e   : > { %976 = vst [vmem:[%s7334_s26 + $0x68] sm:$0xff] %v975_v13  ;;  %v1033_v42 = vld [vmem:[%s7329_s25 + $0x150] sm:$0xff]  ;;  %v1035_v43 = vld [vmem:[%s7329_s25 + $0x158] sm:$0xff]  ;;  %v1037_v44 = vld [vmem:[%s7329_s25 + $0x160] sm:$0xff] }
  0x1f   : > { %978 = vst [vmem:[%s7334_s26 + $0x70] sm:$0xff] %v977_v14  ;;  %v1039_v45 = vld [vmem:[%s7329_s25 + $0x168] sm:$0xff]  ;;  %v1041_v46 = vld [vmem:[%s7329_s25 + $0x170] sm:$0xff]  ;;  %v1043_v47 = vld [vmem:[%s7329_s25 + $0x178] sm:$0xff] }
  0x20   : > { %980 = vst [vmem:[%s7334_s26 + $0x78] sm:$0xff] %v979_v15  ;;  %v1045_v48 = vld [vmem:[%s7329_s25 + $0x180] sm:$0xff]  ;;  %v1047_v49 = vld [vmem:[%s7329_s25 + $0x188] sm:$0xff]  ;;  %v1049_v50 = vld [vmem:[%s7329_s25 + $0x190] sm:$0xff] }
  0x21   : > { %982 = vst [vmem:[%s7334_s26 + $0x80] sm:$0xff] %v981_v16  ;;  %v1051_v51 = vld [vmem:[%s7329_s25 + $0x198] sm:$0xff]  ;;  %v1053_v52 = vld [vmem:[%s7329_s25 + $0x1a0] sm:$0xff]  ;;  %v1055_v53 = vld [vmem:[%s7329_s25 + $0x1a8] sm:$0xff] }
  0x22   : > { %984 = vst [vmem:[%s7334_s26 + $0x88] sm:$0xff] %v983_v17  ;;  %v1057_v54 = vld [vmem:[%s7329_s25 + $0x1b0] sm:$0xff]  ;;  %v1059_v55 = vld [vmem:[%s7329_s25 + $0x1b8] sm:$0xff]  ;;  %v1061_v56 = vld [vmem:[%s7329_s25 + $0x1c0] sm:$0xff] }
  0x23   : > { %986 = vst [vmem:[%s7334_s26 + $0x90] sm:$0xff] %v985_v18  ;;  %v1063_v57 = vld [vmem:[%s7329_s25 + $0x1c8] sm:$0xff]  ;;  %v1065_v58 = vld [vmem:[%s7329_s25 + $0x1d0] sm:$0xff]  ;;  %v1067_v59 = vld [vmem:[%s7329_s25 + $0x1d8] sm:$0xff] }
  0x24   : > { %988 = vst [vmem:[%s7334_s26 + $0x98] sm:$0xff] %v987_v19  ;;  %v1069_v60 = vld [vmem:[%s7329_s25 + $0x1e0] sm:$0xff]  ;;  %v1071_v61 = vld [vmem:[%s7329_s25 + $0x1e8] sm:$0xff]  ;;  %v1073_v62 = vld [vmem:[%s7329_s25 + $0x1f0] sm:$0xff] }
  0x25   : > { %990 = vst [vmem:[%s7334_s26 + $0xa0] sm:$0xff] %v989_v20  ;;  %v1075_v63 = vld [vmem:[%s7329_s25 + $0x1f8] sm:$0xff]  ;;  %v1077_v0 = vld [vmem:[%s7329_s25 + $0x200] sm:$0xff]  ;;  %v1079_v1 = vld [vmem:[%s7329_s25 + $0x208] sm:$0xff] }
  0x26   : > { %992 = vst [vmem:[%s7334_s26 + $0xa8] sm:$0xff] %v991_v21  ;;  %v1081_v2 = vld [vmem:[%s7329_s25 + $0x210] sm:$0xff]  ;;  %v1083_v3 = vld [vmem:[%s7329_s25 + $0x218] sm:$0xff]  ;;  %v1085_v4 = vld [vmem:[%s7329_s25 + $0x220] sm:$0xff] }
  0x27   : > { %994 = vst [vmem:[%s7334_s26 + $0xb0] sm:$0xff] %v993_v22  ;;  %v1087_v5 = vld [vmem:[%s7329_s25 + $0x228] sm:$0xff]  ;;  %v1089_v6 = vld [vmem:[%s7329_s25 + $0x230] sm:$0xff]  ;;  %v1091_v7 = vld [vmem:[%s7329_s25 + $0x238] sm:$0xff] }
  0x28   : > { %996 = vst [vmem:[%s7334_s26 + $0xb8] sm:$0xff] %v995_v23  ;;  %v1093_v8 = vld [vmem:[%s7329_s25 + $0x240] sm:$0xff]  ;;  %v1095_v9 = vld [vmem:[%s7329_s25 + $0x248] sm:$0xff]  ;;  %v1097_v10 = vld [vmem:[%s7329_s25 + $0x250] sm:$0xff] }
  0x29   : > { %998 = vst [vmem:[%s7334_s26 + $0xc0] sm:$0xff] %v997_v24  ;;  %v1099_v11 = vld [vmem:[%s7329_s25 + $0x258] sm:$0xff]  ;;  %v1101_v12 = vld [vmem:[%s7329_s25 + $0x260] sm:$0xff]  ;;  %v1103_v13 = vld [vmem:[%s7329_s25 + $0x268] sm:$0xff] }
  0x2a   : > { %1000 = vst [vmem:[%s7334_s26 + $0xc8] sm:$0xff] %v999_v25  ;;  %v1105_v14 = vld [vmem:[%s7329_s25 + $0x270] sm:$0xff]  ;;  %v1107_v15 = vld [vmem:[%s7329_s25 + $0x278] sm:$0xff]  ;;  %v1109_v16 = vld [vmem:[%s7329_s25 + $0x280] sm:$0xff] }
  0x2b   : > { %1002 = vst [vmem:[%s7334_s26 + $0xd0] sm:$0xff] %v1001_v26  ;;  %v1111_v17 = vld [vmem:[%s7329_s25 + $0x288] sm:$0xff]  ;;  %v1113_v18 = vld [vmem:[%s7329_s25 + $0x290] sm:$0xff]  ;;  %v1115_v19 = vld [vmem:[%s7329_s25 + $0x298] sm:$0xff] }
  0x2c   : > { %1004 = vst [vmem:[%s7334_s26 + $0xd8] sm:$0xff] %v1003_v27  ;;  %v1117_v20 = vld [vmem:[%s7329_s25 + $0x2a0] sm:$0xff]  ;;  %v1119_v21 = vld [vmem:[%s7329_s25 + $0x2a8] sm:$0xff]  ;;  %v1121_v22 = vld [vmem:[%s7329_s25 + $0x2b0] sm:$0xff] }
  0x2d   : > { %1006 = vst [vmem:[%s7334_s26 + $0xe0] sm:$0xff] %v1005_v28  ;;  %v1123_v23 = vld [vmem:[%s7329_s25 + $0x2b8] sm:$0xff]  ;;  %v1125_v24 = vld [vmem:[%s7329_s25 + $0x2c0] sm:$0xff]  ;;  %v1127_v25 = vld [vmem:[%s7329_s25 + $0x2c8] sm:$0xff] }
  0x2e   : > { %1008 = vst [vmem:[%s7334_s26 + $0xe8] sm:$0xff] %v1007_v29  ;;  %v1129_v26 = vld [vmem:[%s7329_s25 + $0x2d0] sm:$0xff]  ;;  %v1131_v27 = vld [vmem:[%s7329_s25 + $0x2d8] sm:$0xff]  ;;  %v1133_v28 = vld [vmem:[%s7329_s25 + $0x2e0] sm:$0xff] }
  0x2f   : > { %1010 = vst [vmem:[%s7334_s26 + $0xf0] sm:$0xff] %v1009_v30  ;;  %v1135_v29 = vld [vmem:[%s7329_s25 + $0x2e8] sm:$0xff]  ;;  %v1137_v30 = vld [vmem:[%s7329_s25 + $0x2f0] sm:$0xff] }
  0x30   : > { %1012 = vst [vmem:[%s7334_s26 + $0xf8] sm:$0xff] %v1011_v31  ;;  %v1139_v31 = vld [vmem:[%s7329_s25 + $0x2f8] sm:$0xff] }
  0x31   : > { %1014 = vst [vmem:[%s7334_s26 + $0x100] sm:$0xff] %v1013_v32  ;;  %v1141_v32 = vld [vmem:[%s7329_s25 + $0x300] sm:$0xff] }
  0x32   : > { %1016 = vst [vmem:[%s7334_s26 + $0x108] sm:$0xff] %v1015_v33  ;;  %v1143_v33 = vld [vmem:[%s7329_s25 + $0x308] sm:$0xff] }
  0x33   : > { %1018 = vst [vmem:[%s7334_s26 + $0x110] sm:$0xff] %v1017_v34  ;;  %v1145_v34 = vld [vmem:[%s7329_s25 + $0x620] sm:$0xff] }
  0x34   : > { %1020 = vst [vmem:[%s7334_s26 + $0x118] sm:$0xff] %v1019_v35  ;;  %v1147_v35 = vld [vmem:[%s7329_s25 + $0x628] sm:$0xff] }
  0x35   : > { %1022 = vst [vmem:[%s7334_s26 + $0x120] sm:$0xff] %v1021_v36  ;;  %v1149_v36 = vld [vmem:[%s7329_s25 + $0x630] sm:$0xff] }
  0x36   : > { %1024 = vst [vmem:[%s7334_s26 + $0x128] sm:$0xff] %v1023_v37  ;;  %v1151_v37 = vld [vmem:[%s7329_s25 + $0x638] sm:$0xff] }
  0x37   : > { %1026 = vst [vmem:[%s7334_s26 + $0x130] sm:$0xff] %v1025_v38  ;;  %v1153_v38 = vld [vmem:[%s7329_s25 + $0x640] sm:$0xff] }
  0x38   : > { %1028 = vst [vmem:[%s7334_s26 + $0x138] sm:$0xff] %v1027_v39  ;;  %v1155_v39 = vld [vmem:[%s7329_s25 + $0x648] sm:$0xff] }
  0x39   : > { %1030 = vst [vmem:[%s7334_s26 + $0x140] sm:$0xff] %v1029_v40  ;;  %v1157_v40 = vld [vmem:[%s7329_s25 + $0x650] sm:$0xff] }
  0x3a   : > { %1032 = vst [vmem:[%s7334_s26 + $0x148] sm:$0xff] %v1031_v41  ;;  %v1159_v41 = vld [vmem:[%s7329_s25 + $0x658] sm:$0xff] }
  0x3b   : > { %1034 = vst [vmem:[%s7334_s26 + $0x150] sm:$0xff] %v1033_v42  ;;  %v1161_v42 = vld [vmem:[%s7329_s25 + $0x660] sm:$0xff] }
  0x3c   : > { %1036 = vst [vmem:[%s7334_s26 + $0x158] sm:$0xff] %v1035_v43  ;;  %v1163_v43 = vld [vmem:[%s7329_s25 + $0x668] sm:$0xff] }
  0x3d   : > { %1038 = vst [vmem:[%s7334_s26 + $0x160] sm:$0xff] %v1037_v44  ;;  %v1165_v44 = vld [vmem:[%s7329_s25 + $0x670] sm:$0xff] }
  0x3e   : > { %1040 = vst [vmem:[%s7334_s26 + $0x168] sm:$0xff] %v1039_v45  ;;  %v1167_v45 = vld [vmem:[%s7329_s25 + $0x678] sm:$0xff] }
  0x3f   : > { %1042 = vst [vmem:[%s7334_s26 + $0x170] sm:$0xff] %v1041_v46  ;;  %v1169_v46 = vld [vmem:[%s7329_s25 + $0x680] sm:$0xff] }
  0x40   : > { %1044 = vst [vmem:[%s7334_s26 + $0x178] sm:$0xff] %v1043_v47  ;;  %v1171_v47 = vld [vmem:[%s7329_s25 + $0x688] sm:$0xff] }
  0x41   : > { %1046 = vst [vmem:[%s7334_s26 + $0x180] sm:$0xff] %v1045_v48  ;;  %v1173_v48 = vld [vmem:[%s7329_s25 + $0x690] sm:$0xff] }
  0x42   : > { %1048 = vst [vmem:[%s7334_s26 + $0x188] sm:$0xff] %v1047_v49  ;;  %v1175_v49 = vld [vmem:[%s7329_s25 + $0x698] sm:$0xff] }
  0x43   : > { %1050 = vst [vmem:[%s7334_s26 + $0x190] sm:$0xff] %v1049_v50  ;;  %v1177_v50 = vld [vmem:[%s7329_s25 + $0x6a0] sm:$0xff] }
  0x44   : > { %1052 = vst [vmem:[%s7334_s26 + $0x198] sm:$0xff] %v1051_v51  ;;  %v1179_v51 = vld [vmem:[%s7329_s25 + $0x6a8] sm:$0xff] }
  0x45   : > { %1054 = vst [vmem:[%s7334_s26 + $0x1a0] sm:$0xff] %v1053_v52  ;;  %v1181_v52 = vld [vmem:[%s7329_s25 + $0x6b0] sm:$0xff] }
  0x46   : > { %1056 = vst [vmem:[%s7334_s26 + $0x1a8] sm:$0xff] %v1055_v53  ;;  %v1183_v53 = vld [vmem:[%s7329_s25 + $0x6b8] sm:$0xff] }
  0x47   : > { %1058 = vst [vmem:[%s7334_s26 + $0x1b0] sm:$0xff] %v1057_v54  ;;  %v1185_v54 = vld [vmem:[%s7329_s25 + $0x6c0] sm:$0xff] }
  0x48   : > { %1060 = vst [vmem:[%s7334_s26 + $0x1b8] sm:$0xff] %v1059_v55  ;;  %v1187_v55 = vld [vmem:[%s7329_s25 + $0x6c8] sm:$0xff] }
  0x49   : > { %1062 = vst [vmem:[%s7334_s26 + $0x1c0] sm:$0xff] %v1061_v56  ;;  %v1189_v56 = vld [vmem:[%s7329_s25 + $0x6d0] sm:$0xff] }
  0x4a   : > { %1064 = vst [vmem:[%s7334_s26 + $0x1c8] sm:$0xff] %v1063_v57  ;;  %v1191_v57 = vld [vmem:[%s7329_s25 + $0x6d8] sm:$0xff] }
  0x4b   : > { %1066 = vst [vmem:[%s7334_s26 + $0x1d0] sm:$0xff] %v1065_v58  ;;  %v1193_v58 = vld [vmem:[%s7329_s25 + $0x6e0] sm:$0xff] }
  0x4c   : > { %1068 = vst [vmem:[%s7334_s26 + $0x1d8] sm:$0xff] %v1067_v59  ;;  %v1195_v59 = vld [vmem:[%s7329_s25 + $0x6e8] sm:$0xff] }
  0x4d   : > { %1070 = vst [vmem:[%s7334_s26 + $0x1e0] sm:$0xff] %v1069_v60  ;;  %v1197_v60 = vld [vmem:[%s7329_s25 + $0x6f0] sm:$0xff] }
  0x4e   : > { %1072 = vst [vmem:[%s7334_s26 + $0x1e8] sm:$0xff] %v1071_v61  ;;  %v1199_v61 = vld [vmem:[%s7329_s25 + $0x6f8] sm:$0xff] }
  0x4f   : > { %1074 = vst [vmem:[%s7334_s26 + $0x1f0] sm:$0xff] %v1073_v62  ;;  %v1201_v62 = vld [vmem:[%s7329_s25 + $0x700] sm:$0xff] }
  0x50   : > { %1076 = vst [vmem:[%s7334_s26 + $0x1f8] sm:$0xff] %v1075_v63  ;;  %v1203_v63 = vld [vmem:[%s7329_s25 + $0x708] sm:$0xff] }
  0x51   : > { %1078 = vst [vmem:[%s7334_s26 + $0x200] sm:$0xff] %v1077_v0  ;;  %v1205_v0 = vld [vmem:[%s7329_s25 + $0x710] sm:$0xff] }
  0x52   : > { %1080 = vst [vmem:[%s7334_s26 + $0x208] sm:$0xff] %v1079_v1  ;;  %v1207_v1 = vld [vmem:[%s7329_s25 + $0x718] sm:$0xff] }
  0x53   : > { %1082 = vst [vmem:[%s7334_s26 + $0x210] sm:$0xff] %v1081_v2  ;;  %v1209_v2 = vld [vmem:[%s7329_s25 + $0x720] sm:$0xff] }
  0x54   : > { %1084 = vst [vmem:[%s7334_s26 + $0x218] sm:$0xff] %v1083_v3  ;;  %v1211_v3 = vld [vmem:[%s7329_s25 + $0x728] sm:$0xff] }
  0x55   : > { %1086 = vst [vmem:[%s7334_s26 + $0x220] sm:$0xff] %v1085_v4  ;;  %v1213_v4 = vld [vmem:[%s7329_s25 + $0x730] sm:$0xff] }
  0x56   : > { %1088 = vst [vmem:[%s7334_s26 + $0x228] sm:$0xff] %v1087_v5  ;;  %v1215_v5 = vld [vmem:[%s7329_s25 + $0x738] sm:$0xff] }
  0x57   : > { %1090 = vst [vmem:[%s7334_s26 + $0x230] sm:$0xff] %v1089_v6  ;;  %v1217_v6 = vld [vmem:[%s7329_s25 + $0x740] sm:$0xff] }
  0x58   : > { %1092 = vst [vmem:[%s7334_s26 + $0x238] sm:$0xff] %v1091_v7  ;;  %v1219_v7 = vld [vmem:[%s7329_s25 + $0x748] sm:$0xff] }
  0x59   : > { %1094 = vst [vmem:[%s7334_s26 + $0x240] sm:$0xff] %v1093_v8  ;;  %v1221_v8 = vld [vmem:[%s7329_s25 + $0x750] sm:$0xff] }
  0x5a   : > { %1096 = vst [vmem:[%s7334_s26 + $0x248] sm:$0xff] %v1095_v9  ;;  %v1223_v9 = vld [vmem:[%s7329_s25 + $0x758] sm:$0xff] }
  0x5b   : > { %1098 = vst [vmem:[%s7334_s26 + $0x250] sm:$0xff] %v1097_v10  ;;  %v1225_v10 = vld [vmem:[%s7329_s25 + $0x760] sm:$0xff] }
  0x5c   : > { %1100 = vst [vmem:[%s7334_s26 + $0x258] sm:$0xff] %v1099_v11  ;;  %v1227_v11 = vld [vmem:[%s7329_s25 + $0x768] sm:$0xff] }
  0x5d   : > { %1102 = vst [vmem:[%s7334_s26 + $0x260] sm:$0xff] %v1101_v12  ;;  %v1229_v12 = vld [vmem:[%s7329_s25 + $0x770] sm:$0xff] }
  0x5e   : > { %1104 = vst [vmem:[%s7334_s26 + $0x268] sm:$0xff] %v1103_v13  ;;  %v1231_v13 = vld [vmem:[%s7329_s25 + $0x778] sm:$0xff] }
  0x5f   : > { %1106 = vst [vmem:[%s7334_s26 + $0x270] sm:$0xff] %v1105_v14  ;;  %v1233_v14 = vld [vmem:[%s7329_s25 + $0x780] sm:$0xff] }
  0x60   : > { %1108 = vst [vmem:[%s7334_s26 + $0x278] sm:$0xff] %v1107_v15  ;;  %v1235_v15 = vld [vmem:[%s7329_s25 + $0x788] sm:$0xff] }
  0x61   : > { %1110 = vst [vmem:[%s7334_s26 + $0x280] sm:$0xff] %v1109_v16  ;;  %v1237_v16 = vld [vmem:[%s7329_s25 + $0x790] sm:$0xff] }
  0x62   : > { %1112 = vst [vmem:[%s7334_s26 + $0x288] sm:$0xff] %v1111_v17  ;;  %v1239_v17 = vld [vmem:[%s7329_s25 + $0x798] sm:$0xff] }
  0x63   : > { %1114 = vst [vmem:[%s7334_s26 + $0x290] sm:$0xff] %v1113_v18  ;;  %v1241_v18 = vld [vmem:[%s7329_s25 + $0x7a0] sm:$0xff] }
  0x64   : > { %1116 = vst [vmem:[%s7334_s26 + $0x298] sm:$0xff] %v1115_v19  ;;  %v1243_v19 = vld [vmem:[%s7329_s25 + $0x7a8] sm:$0xff] }
  0x65   : > { %1118 = vst [vmem:[%s7334_s26 + $0x2a0] sm:$0xff] %v1117_v20  ;;  %v1245_v20 = vld [vmem:[%s7329_s25 + $0x7b0] sm:$0xff] }
  0x66   : > { %1120 = vst [vmem:[%s7334_s26 + $0x2a8] sm:$0xff] %v1119_v21  ;;  %v1247_v21 = vld [vmem:[%s7329_s25 + $0x7b8] sm:$0xff] }
  0x67   : > { %1122 = vst [vmem:[%s7334_s26 + $0x2b0] sm:$0xff] %v1121_v22  ;;  %v1249_v22 = vld [vmem:[%s7329_s25 + $0x7c0] sm:$0xff] }
  0x68   : > { %1124 = vst [vmem:[%s7334_s26 + $0x2b8] sm:$0xff] %v1123_v23  ;;  %v1251_v23 = vld [vmem:[%s7329_s25 + $0x7c8] sm:$0xff] }
  0x69   : > { %1126 = vst [vmem:[%s7334_s26 + $0x2c0] sm:$0xff] %v1125_v24  ;;  %v1253_v24 = vld [vmem:[%s7329_s25 + $0x7d0] sm:$0xff] }
  0x6a   : > { %1128 = vst [vmem:[%s7334_s26 + $0x2c8] sm:$0xff] %v1127_v25  ;;  %v1255_v25 = vld [vmem:[%s7329_s25 + $0x7d8] sm:$0xff] }
  0x6b   : > { %1130 = vst [vmem:[%s7334_s26 + $0x2d0] sm:$0xff] %v1129_v26  ;;  %v1257_v26 = vld [vmem:[%s7329_s25 + $0x7e0] sm:$0xff] }
  0x6c   : > { %1132 = vst [vmem:[%s7334_s26 + $0x2d8] sm:$0xff] %v1131_v27  ;;  %v1259_v27 = vld [vmem:[%s7329_s25 + $0x7e8] sm:$0xff] }
  0x6d   : > { %1134 = vst [vmem:[%s7334_s26 + $0x2e0] sm:$0xff] %v1133_v28  ;;  %v1261_v28 = vld [vmem:[%s7329_s25 + $0x7f0] sm:$0xff] }
  0x6e   : > { %1136 = vst [vmem:[%s7334_s26 + $0x2e8] sm:$0xff] %v1135_v29  ;;  %v1263_v29 = vld [vmem:[%s7329_s25 + $0x7f8] sm:$0xff] }
  0x6f   : > { %1138 = vst [vmem:[%s7334_s26 + $0x2f0] sm:$0xff] %v1137_v30  ;;  %v1265_v30 = vld [vmem:[%s7329_s25 + $0x800] sm:$0xff] }
  0x70   : > { %1140 = vst [vmem:[%s7334_s26 + $0x2f8] sm:$0xff] %v1139_v31  ;;  %v1267_v31 = vld [vmem:[%s7329_s25 + $0x808] sm:$0xff] }
  0x71   : > { %1142 = vst [vmem:[%s7334_s26 + $0x300] sm:$0xff] %v1141_v32  ;;  %v1269_v32 = vld [vmem:[%s7329_s25 + $0x810] sm:$0xff] }
  0x72   : > { %1144 = vst [vmem:[%s7334_s26 + $0x308] sm:$0xff] %v1143_v33  ;;  %v1271_v33 = vld [vmem:[%s7329_s25 + $0x818] sm:$0xff] }
  0x73   : > { %1146 = vst [vmem:[%s7334_s26 + $0x310] sm:$0xff] %v1145_v34  ;;  %v1273_v34 = vld [vmem:[%s7329_s25 + $0x820] sm:$0xff] }
  0x74   : > { %1148 = vst [vmem:[%s7334_s26 + $0x318] sm:$0xff] %v1147_v35  ;;  %v1275_v35 = vld [vmem:[%s7329_s25 + $0x828] sm:$0xff] }
  0x75   : > { %1150 = vst [vmem:[%s7334_s26 + $0x320] sm:$0xff] %v1149_v36  ;;  %v1277_v36 = vld [vmem:[%s7329_s25 + $0x830] sm:$0xff] }
  0x76   : > { %1152 = vst [vmem:[%s7334_s26 + $0x328] sm:$0xff] %v1151_v37  ;;  %v1279_v37 = vld [vmem:[%s7329_s25 + $0x838] sm:$0xff] }
  0x77   : > { %1154 = vst [vmem:[%s7334_s26 + $0x330] sm:$0xff] %v1153_v38  ;;  %v1281_v38 = vld [vmem:[%s7329_s25 + $0x840] sm:$0xff] }
  0x78   : > { %1156 = vst [vmem:[%s7334_s26 + $0x338] sm:$0xff] %v1155_v39  ;;  %v1283_v39 = vld [vmem:[%s7329_s25 + $0x848] sm:$0xff] }
  0x79   : > { %1158 = vst [vmem:[%s7334_s26 + $0x340] sm:$0xff] %v1157_v40  ;;  %v1285_v40 = vld [vmem:[%s7329_s25 + $0x850] sm:$0xff] }
  0x7a   : > { %1160 = vst [vmem:[%s7334_s26 + $0x348] sm:$0xff] %v1159_v41  ;;  %v1287_v41 = vld [vmem:[%s7329_s25 + $0x858] sm:$0xff] }
  0x7b   : > { %1162 = vst [vmem:[%s7334_s26 + $0x350] sm:$0xff] %v1161_v42  ;;  %v1289_v42 = vld [vmem:[%s7329_s25 + $0x860] sm:$0xff] }
  0x7c   : > { %1164 = vst [vmem:[%s7334_s26 + $0x358] sm:$0xff] %v1163_v43  ;;  %v1291_v43 = vld [vmem:[%s7329_s25 + $0x868] sm:$0xff] }
  0x7d   : > { %1166 = vst [vmem:[%s7334_s26 + $0x360] sm:$0xff] %v1165_v44  ;;  %v1293_v44 = vld [vmem:[%s7329_s25 + $0x870] sm:$0xff] }
  0x7e   : > { %1168 = vst [vmem:[%s7334_s26 + $0x368] sm:$0xff] %v1167_v45  ;;  %v1295_v45 = vld [vmem:[%s7329_s25 + $0x878] sm:$0xff] }
  0x7f   : > { %1170 = vst [vmem:[%s7334_s26 + $0x370] sm:$0xff] %v1169_v46  ;;  %v1297_v46 = vld [vmem:[%s7329_s25 + $0x880] sm:$0xff] }
  0x80   : > { %1172 = vst [vmem:[%s7334_s26 + $0x378] sm:$0xff] %v1171_v47  ;;  %v1299_v47 = vld [vmem:[%s7329_s25 + $0x888] sm:$0xff] }
  0x81   : > { %1174 = vst [vmem:[%s7334_s26 + $0x380] sm:$0xff] %v1173_v48  ;;  %v1301_v48 = vld [vmem:[%s7329_s25 + $0x890] sm:$0xff] }
  0x82   : > { %1176 = vst [vmem:[%s7334_s26 + $0x388] sm:$0xff] %v1175_v49  ;;  %v1303_v49 = vld [vmem:[%s7329_s25 + $0x898] sm:$0xff] }
  0x83   : > { %1178 = vst [vmem:[%s7334_s26 + $0x390] sm:$0xff] %v1177_v50  ;;  %v1305_v50 = vld [vmem:[%s7329_s25 + $0x8a0] sm:$0xff] }
  0x84   : > { %1180 = vst [vmem:[%s7334_s26 + $0x398] sm:$0xff] %v1179_v51  ;;  %v1307_v51 = vld [vmem:[%s7329_s25 + $0x8a8] sm:$0xff] }
  0x85   : > { %1182 = vst [vmem:[%s7334_s26 + $0x3a0] sm:$0xff] %v1181_v52  ;;  %v1309_v52 = vld [vmem:[%s7329_s25 + $0x8b0] sm:$0xff] }
  0x86   : > { %1184 = vst [vmem:[%s7334_s26 + $0x3a8] sm:$0xff] %v1183_v53  ;;  %v1311_v53 = vld [vmem:[%s7329_s25 + $0x8b8] sm:$0xff] }
  0x87   : > { %1186 = vst [vmem:[%s7334_s26 + $0x3b0] sm:$0xff] %v1185_v54  ;;  %v1313_v54 = vld [vmem:[%s7329_s25 + $0x8c0] sm:$0xff] }
  0x88   : > { %1188 = vst [vmem:[%s7334_s26 + $0x3b8] sm:$0xff] %v1187_v55  ;;  %v1315_v55 = vld [vmem:[%s7329_s25 + $0x8c8] sm:$0xff] }
  0x89   : > { %1190 = vst [vmem:[%s7334_s26 + $0x3c0] sm:$0xff] %v1189_v56  ;;  %v1317_v56 = vld [vmem:[%s7329_s25 + $0x8d0] sm:$0xff] }
  0x8a   : > { %1192 = vst [vmem:[%s7334_s26 + $0x3c8] sm:$0xff] %v1191_v57  ;;  %v1319_v57 = vld [vmem:[%s7329_s25 + $0x8d8] sm:$0xff] }
  0x8b   : > { %1194 = vst [vmem:[%s7334_s26 + $0x3d0] sm:$0xff] %v1193_v58  ;;  %v1321_v58 = vld [vmem:[%s7329_s25 + $0x8e0] sm:$0xff] }
  0x8c   : > { %1196 = vst [vmem:[%s7334_s26 + $0x3d8] sm:$0xff] %v1195_v59  ;;  %v1323_v59 = vld [vmem:[%s7329_s25 + $0x8e8] sm:$0xff] }
  0x8d   : > { %1198 = vst [vmem:[%s7334_s26 + $0x3e0] sm:$0xff] %v1197_v60  ;;  %v1325_v60 = vld [vmem:[%s7329_s25 + $0x8f0] sm:$0xff] }
  0x8e   : > { %1200 = vst [vmem:[%s7334_s26 + $0x3e8] sm:$0xff] %v1199_v61  ;;  %v1327_v61 = vld [vmem:[%s7329_s25 + $0x8f8] sm:$0xff] }
  0x8f   : > { %1202 = vst [vmem:[%s7334_s26 + $0x3f0] sm:$0xff] %v1201_v62  ;;  %v1329_v62 = vld [vmem:[%s7329_s25 + $0x900] sm:$0xff] }
  0x90   : > { %1204 = vst [vmem:[%s7334_s26 + $0x3f8] sm:$0xff] %v1203_v63  ;;  %v1331_v63 = vld [vmem:[%s7329_s25 + $0x908] sm:$0xff] }
  0x91   : > { %1206 = vst [vmem:[%s7334_s26 + $0x400] sm:$0xff] %v1205_v0  ;;  %v1333_v0 = vld [vmem:[%s7329_s25 + $0x910] sm:$0xff] }
  0x92   : > { %1208 = vst [vmem:[%s7334_s26 + $0x408] sm:$0xff] %v1207_v1  ;;  %v1335_v1 = vld [vmem:[%s7329_s25 + $0x918] sm:$0xff] }
  0x93   : > { %1210 = vst [vmem:[%s7334_s26 + $0x410] sm:$0xff] %v1209_v2  ;;  %v1337_v2 = vld [vmem:[%s7329_s25 + $0x920] sm:$0xff] }
  0x94   : > { %1212 = vst [vmem:[%s7334_s26 + $0x418] sm:$0xff] %v1211_v3  ;;  %v1339_v3 = vld [vmem:[%s7329_s25 + $0x928] sm:$0xff] }
  0x95   : > { %1214 = vst [vmem:[%s7334_s26 + $0x420] sm:$0xff] %v1213_v4  ;;  %v1341_v4 = vld [vmem:[%s7329_s25 + $0xc40] sm:$0xff] }
  0x96   : > { %1216 = vst [vmem:[%s7334_s26 + $0x428] sm:$0xff] %v1215_v5  ;;  %v1343_v5 = vld [vmem:[%s7329_s25 + $0xc48] sm:$0xff] }
  0x97   : > { %1218 = vst [vmem:[%s7334_s26 + $0x430] sm:$0xff] %v1217_v6  ;;  %v1345_v6 = vld [vmem:[%s7329_s25 + $0xc50] sm:$0xff] }
  0x98   : > { %1220 = vst [vmem:[%s7334_s26 + $0x438] sm:$0xff] %v1219_v7  ;;  %v1347_v7 = vld [vmem:[%s7329_s25 + $0xc58] sm:$0xff] }
  0x99   : > { %1222 = vst [vmem:[%s7334_s26 + $0x440] sm:$0xff] %v1221_v8  ;;  %v1349_v8 = vld [vmem:[%s7329_s25 + $0xc60] sm:$0xff] }
  0x9a   : > { %1224 = vst [vmem:[%s7334_s26 + $0x448] sm:$0xff] %v1223_v9  ;;  %v1351_v9 = vld [vmem:[%s7329_s25 + $0xc68] sm:$0xff] }
  0x9b   : > { %1226 = vst [vmem:[%s7334_s26 + $0x450] sm:$0xff] %v1225_v10  ;;  %v1353_v10 = vld [vmem:[%s7329_s25 + $0xc70] sm:$0xff] }
  0x9c   : > { %1228 = vst [vmem:[%s7334_s26 + $0x458] sm:$0xff] %v1227_v11  ;;  %v1355_v11 = vld [vmem:[%s7329_s25 + $0xc78] sm:$0xff] }
  0x9d   : > { %1230 = vst [vmem:[%s7334_s26 + $0x460] sm:$0xff] %v1229_v12  ;;  %v1357_v12 = vld [vmem:[%s7329_s25 + $0xc80] sm:$0xff] }
  0x9e   : > { %1232 = vst [vmem:[%s7334_s26 + $0x468] sm:$0xff] %v1231_v13  ;;  %v1359_v13 = vld [vmem:[%s7329_s25 + $0xc88] sm:$0xff] }
  0x9f   : > { %1234 = vst [vmem:[%s7334_s26 + $0x470] sm:$0xff] %v1233_v14  ;;  %v1361_v14 = vld [vmem:[%s7329_s25 + $0xc90] sm:$0xff] }
  0xa0   : > { %1236 = vst [vmem:[%s7334_s26 + $0x478] sm:$0xff] %v1235_v15  ;;  %v1363_v15 = vld [vmem:[%s7329_s25 + $0xc98] sm:$0xff] }
  0xa1   : > { %1238 = vst [vmem:[%s7334_s26 + $0x480] sm:$0xff] %v1237_v16  ;;  %v1365_v16 = vld [vmem:[%s7329_s25 + $0xca0] sm:$0xff] }
  0xa2   : > { %1240 = vst [vmem:[%s7334_s26 + $0x488] sm:$0xff] %v1239_v17  ;;  %v1367_v17 = vld [vmem:[%s7329_s25 + $0xca8] sm:$0xff] }
  0xa3   : > { %1242 = vst [vmem:[%s7334_s26 + $0x490] sm:$0xff] %v1241_v18  ;;  %v1369_v18 = vld [vmem:[%s7329_s25 + $0xcb0] sm:$0xff] }
  0xa4   : > { %1244 = vst [vmem:[%s7334_s26 + $0x498] sm:$0xff] %v1243_v19  ;;  %v1371_v19 = vld [vmem:[%s7329_s25 + $0xcb8] sm:$0xff] }
  0xa5   : > { %1246 = vst [vmem:[%s7334_s26 + $0x4a0] sm:$0xff] %v1245_v20  ;;  %v1373_v20 = vld [vmem:[%s7329_s25 + $0xcc0] sm:$0xff] }
  0xa6   : > { %1248 = vst [vmem:[%s7334_s26 + $0x4a8] sm:$0xff] %v1247_v21  ;;  %v1375_v21 = vld [vmem:[%s7329_s25 + $0xcc8] sm:$0xff] }
  0xa7   : > { %1250 = vst [vmem:[%s7334_s26 + $0x4b0] sm:$0xff] %v1249_v22  ;;  %v1377_v22 = vld [vmem:[%s7329_s25 + $0xcd0] sm:$0xff] }
  0xa8   : > { %1252 = vst [vmem:[%s7334_s26 + $0x4b8] sm:$0xff] %v1251_v23  ;;  %v1379_v23 = vld [vmem:[%s7329_s25 + $0xcd8] sm:$0xff] }
  0xa9   : > { %1254 = vst [vmem:[%s7334_s26 + $0x4c0] sm:$0xff] %v1253_v24  ;;  %v1381_v24 = vld [vmem:[%s7329_s25 + $0xce0] sm:$0xff] }
  0xaa   : > { %1256 = vst [vmem:[%s7334_s26 + $0x4c8] sm:$0xff] %v1255_v25  ;;  %v1383_v25 = vld [vmem:[%s7329_s25 + $0xce8] sm:$0xff] }
  0xab   : > { %1258 = vst [vmem:[%s7334_s26 + $0x4d0] sm:$0xff] %v1257_v26  ;;  %v1385_v26 = vld [vmem:[%s7329_s25 + $0xcf0] sm:$0xff] }
  0xac   : > { %1260 = vst [vmem:[%s7334_s26 + $0x4d8] sm:$0xff] %v1259_v27  ;;  %v1387_v27 = vld [vmem:[%s7329_s25 + $0xcf8] sm:$0xff] }
  0xad   : > { %1262 = vst [vmem:[%s7334_s26 + $0x4e0] sm:$0xff] %v1261_v28  ;;  %v1389_v28 = vld [vmem:[%s7329_s25 + $0xd00] sm:$0xff] }
  0xae   : > { %1264 = vst [vmem:[%s7334_s26 + $0x4e8] sm:$0xff] %v1263_v29  ;;  %v1391_v29 = vld [vmem:[%s7329_s25 + $0xd08] sm:$0xff] }
  0xaf   : > { %1266 = vst [vmem:[%s7334_s26 + $0x4f0] sm:$0xff] %v1265_v30  ;;  %v1393_v30 = vld [vmem:[%s7329_s25 + $0xd10] sm:$0xff] }
  0xb0   : > { %1268 = vst [vmem:[%s7334_s26 + $0x4f8] sm:$0xff] %v1267_v31  ;;  %v1395_v31 = vld [vmem:[%s7329_s25 + $0xd18] sm:$0xff] }
  0xb1   : > { %1270 = vst [vmem:[%s7334_s26 + $0x500] sm:$0xff] %v1269_v32  ;;  %v1397_v32 = vld [vmem:[%s7329_s25 + $0xd20] sm:$0xff] }
  0xb2   : > { %1272 = vst [vmem:[%s7334_s26 + $0x508] sm:$0xff] %v1271_v33  ;;  %v1399_v33 = vld [vmem:[%s7329_s25 + $0xd28] sm:$0xff] }
  0xb3   : > { %1274 = vst [vmem:[%s7334_s26 + $0x510] sm:$0xff] %v1273_v34  ;;  %v1401_v34 = vld [vmem:[%s7329_s25 + $0xd30] sm:$0xff] }
  0xb4   : > { %1276 = vst [vmem:[%s7334_s26 + $0x518] sm:$0xff] %v1275_v35  ;;  %v1403_v35 = vld [vmem:[%s7329_s25 + $0xd38] sm:$0xff] }
  0xb5   : > { %1278 = vst [vmem:[%s7334_s26 + $0x520] sm:$0xff] %v1277_v36  ;;  %v1405_v36 = vld [vmem:[%s7329_s25 + $0xd40] sm:$0xff] }
  0xb6   : > { %1280 = vst [vmem:[%s7334_s26 + $0x528] sm:$0xff] %v1279_v37  ;;  %v1407_v37 = vld [vmem:[%s7329_s25 + $0xd48] sm:$0xff] }
  0xb7   : > { %1282 = vst [vmem:[%s7334_s26 + $0x530] sm:$0xff] %v1281_v38  ;;  %v1409_v38 = vld [vmem:[%s7329_s25 + $0xd50] sm:$0xff] }
  0xb8   : > { %1284 = vst [vmem:[%s7334_s26 + $0x538] sm:$0xff] %v1283_v39  ;;  %v1411_v39 = vld [vmem:[%s7329_s25 + $0xd58] sm:$0xff] }
  0xb9   : > { %1286 = vst [vmem:[%s7334_s26 + $0x540] sm:$0xff] %v1285_v40  ;;  %v1413_v40 = vld [vmem:[%s7329_s25 + $0xd60] sm:$0xff] }
  0xba   : > { %1288 = vst [vmem:[%s7334_s26 + $0x548] sm:$0xff] %v1287_v41  ;;  %v1415_v41 = vld [vmem:[%s7329_s25 + $0xd68] sm:$0xff] }
  0xbb   : > { %1290 = vst [vmem:[%s7334_s26 + $0x550] sm:$0xff] %v1289_v42  ;;  %v1417_v42 = vld [vmem:[%s7329_s25 + $0xd70] sm:$0xff] }
  0xbc   : > { %1292 = vst [vmem:[%s7334_s26 + $0x558] sm:$0xff] %v1291_v43  ;;  %v1419_v43 = vld [vmem:[%s7329_s25 + $0xd78] sm:$0xff] }
  0xbd   : > { %1294 = vst [vmem:[%s7334_s26 + $0x560] sm:$0xff] %v1293_v44  ;;  %v1421_v44 = vld [vmem:[%s7329_s25 + $0xd80] sm:$0xff] }
  0xbe   : > { %1296 = vst [vmem:[%s7334_s26 + $0x568] sm:$0xff] %v1295_v45  ;;  %v1423_v45 = vld [vmem:[%s7329_s25 + $0xd88] sm:$0xff] }
  0xbf   : > { %1298 = vst [vmem:[%s7334_s26 + $0x570] sm:$0xff] %v1297_v46  ;;  %v1425_v46 = vld [vmem:[%s7329_s25 + $0xd90] sm:$0xff] }
  0xc0   : > { %1300 = vst [vmem:[%s7334_s26 + $0x578] sm:$0xff] %v1299_v47  ;;  %v1427_v47 = vld [vmem:[%s7329_s25 + $0xd98] sm:$0xff] }
  0xc1   : > { %1302 = vst [vmem:[%s7334_s26 + $0x580] sm:$0xff] %v1301_v48  ;;  %v1429_v48 = vld [vmem:[%s7329_s25 + $0xda0] sm:$0xff] }
  0xc2   : > { %1304 = vst [vmem:[%s7334_s26 + $0x588] sm:$0xff] %v1303_v49  ;;  %v1431_v49 = vld [vmem:[%s7329_s25 + $0xda8] sm:$0xff] }
  0xc3   : > { %1306 = vst [vmem:[%s7334_s26 + $0x590] sm:$0xff] %v1305_v50  ;;  %v1433_v50 = vld [vmem:[%s7329_s25 + $0xdb0] sm:$0xff] }
  0xc4   : > { %1308 = vst [vmem:[%s7334_s26 + $0x598] sm:$0xff] %v1307_v51  ;;  %v1435_v51 = vld [vmem:[%s7329_s25 + $0xdb8] sm:$0xff] }
  0xc5   : > { %1310 = vst [vmem:[%s7334_s26 + $0x5a0] sm:$0xff] %v1309_v52  ;;  %v1437_v52 = vld [vmem:[%s7329_s25 + $0xdc0] sm:$0xff] }
  0xc6   : > { %1312 = vst [vmem:[%s7334_s26 + $0x5a8] sm:$0xff] %v1311_v53  ;;  %v1439_v53 = vld [vmem:[%s7329_s25 + $0xdc8] sm:$0xff] }
  0xc7   : > { %1314 = vst [vmem:[%s7334_s26 + $0x5b0] sm:$0xff] %v1313_v54  ;;  %v1441_v54 = vld [vmem:[%s7329_s25 + $0xdd0] sm:$0xff] }
  0xc8   : > { %1316 = vst [vmem:[%s7334_s26 + $0x5b8] sm:$0xff] %v1315_v55  ;;  %v1443_v55 = vld [vmem:[%s7329_s25 + $0xdd8] sm:$0xff] }
  0xc9   : > { %1318 = vst [vmem:[%s7334_s26 + $0x5c0] sm:$0xff] %v1317_v56  ;;  %v1445_v56 = vld [vmem:[%s7329_s25 + $0xde0] sm:$0xff] }
  0xca   : > { %1320 = vst [vmem:[%s7334_s26 + $0x5c8] sm:$0xff] %v1319_v57  ;;  %v1447_v57 = vld [vmem:[%s7329_s25 + $0xde8] sm:$0xff] }
  0xcb   : > { %1322 = vst [vmem:[%s7334_s26 + $0x5d0] sm:$0xff] %v1321_v58  ;;  %v1449_v58 = vld [vmem:[%s7329_s25 + $0xdf0] sm:$0xff] }
  0xcc   : > { %1324 = vst [vmem:[%s7334_s26 + $0x5d8] sm:$0xff] %v1323_v59  ;;  %v1451_v59 = vld [vmem:[%s7329_s25 + $0xdf8] sm:$0xff] }
  0xcd   : > { %1326 = vst [vmem:[%s7334_s26 + $0x5e0] sm:$0xff] %v1325_v60  ;;  %v1453_v60 = vld [vmem:[%s7329_s25 + $0xe00] sm:$0xff] }
  0xce   : > { %1328 = vst [vmem:[%s7334_s26 + $0x5e8] sm:$0xff] %v1327_v61  ;;  %v1455_v61 = vld [vmem:[%s7329_s25 + $0xe08] sm:$0xff] }
  0xcf   : > { %1330 = vst [vmem:[%s7334_s26 + $0x5f0] sm:$0xff] %v1329_v62  ;;  %v1457_v62 = vld [vmem:[%s7329_s25 + $0xe10] sm:$0xff] }
  0xd0   : > { %1332 = vst [vmem:[%s7334_s26 + $0x5f8] sm:$0xff] %v1331_v63  ;;  %v1459_v63 = vld [vmem:[%s7329_s25 + $0xe18] sm:$0xff] }
  0xd1   : > { %1334 = vst [vmem:[%s7334_s26 + $0x600] sm:$0xff] %v1333_v0  ;;  %v1461_v0 = vld [vmem:[%s7329_s25 + $0xe20] sm:$0xff] }
  0xd2   : > { %1336 = vst [vmem:[%s7334_s26 + $0x608] sm:$0xff] %v1335_v1  ;;  %v1463_v1 = vld [vmem:[%s7329_s25 + $0xe28] sm:$0xff] }
  0xd3   : > { %1338 = vst [vmem:[%s7334_s26 + $0x610] sm:$0xff] %v1337_v2  ;;  %v1465_v2 = vld [vmem:[%s7329_s25 + $0xe30] sm:$0xff] }
  0xd4   : > { %1340 = vst [vmem:[%s7334_s26 + $0x618] sm:$0xff] %v1339_v3  ;;  %v1467_v3 = vld [vmem:[%s7329_s25 + $0xe38] sm:$0xff] }
  0xd5   : > { %1342 = vst [vmem:[%s7334_s26 + $0x620] sm:$0xff] %v1341_v4  ;;  %v1469_v4 = vld [vmem:[%s7329_s25 + $0xe40] sm:$0xff] }
  0xd6   : > { %1344 = vst [vmem:[%s7334_s26 + $0x628] sm:$0xff] %v1343_v5  ;;  %v1471_v5 = vld [vmem:[%s7329_s25 + $0xe48] sm:$0xff] }
  0xd7   : > { %1346 = vst [vmem:[%s7334_s26 + $0x630] sm:$0xff] %v1345_v6  ;;  %v1473_v6 = vld [vmem:[%s7329_s25 + $0xe50] sm:$0xff] }
  0xd8   : > { %1348 = vst [vmem:[%s7334_s26 + $0x638] sm:$0xff] %v1347_v7  ;;  %v1475_v7 = vld [vmem:[%s7329_s25 + $0xe58] sm:$0xff] }
  0xd9   : > { %1350 = vst [vmem:[%s7334_s26 + $0x640] sm:$0xff] %v1349_v8  ;;  %v1477_v8 = vld [vmem:[%s7329_s25 + $0xe60] sm:$0xff] }
  0xda   : > { %1352 = vst [vmem:[%s7334_s26 + $0x648] sm:$0xff] %v1351_v9  ;;  %v1479_v9 = vld [vmem:[%s7329_s25 + $0xe68] sm:$0xff] }
  0xdb   : > { %1354 = vst [vmem:[%s7334_s26 + $0x650] sm:$0xff] %v1353_v10  ;;  %v1481_v10 = vld [vmem:[%s7329_s25 + $0xe70] sm:$0xff] }
  0xdc   : > { %1356 = vst [vmem:[%s7334_s26 + $0x658] sm:$0xff] %v1355_v11  ;;  %v1483_v11 = vld [vmem:[%s7329_s25 + $0xe78] sm:$0xff] }
  0xdd   : > { %1358 = vst [vmem:[%s7334_s26 + $0x660] sm:$0xff] %v1357_v12  ;;  %v1485_v12 = vld [vmem:[%s7329_s25 + $0xe80] sm:$0xff] }
  0xde   : > { %1360 = vst [vmem:[%s7334_s26 + $0x668] sm:$0xff] %v1359_v13  ;;  %v1487_v13 = vld [vmem:[%s7329_s25 + $0xe88] sm:$0xff] }
  0xdf   : > { %1362 = vst [vmem:[%s7334_s26 + $0x670] sm:$0xff] %v1361_v14  ;;  %v1489_v14 = vld [vmem:[%s7329_s25 + $0xe90] sm:$0xff] }
  0xe0   : > { %1364 = vst [vmem:[%s7334_s26 + $0x678] sm:$0xff] %v1363_v15  ;;  %v1491_v15 = vld [vmem:[%s7329_s25 + $0xe98] sm:$0xff] }
  0xe1   : > { %1366 = vst [vmem:[%s7334_s26 + $0x680] sm:$0xff] %v1365_v16  ;;  %v1493_v16 = vld [vmem:[%s7329_s25 + $0xea0] sm:$0xff] }
  0xe2   : > { %1368 = vst [vmem:[%s7334_s26 + $0x688] sm:$0xff] %v1367_v17  ;;  %v1495_v17 = vld [vmem:[%s7329_s25 + $0xea8] sm:$0xff] }
  0xe3   : > { %1370 = vst [vmem:[%s7334_s26 + $0x690] sm:$0xff] %v1369_v18  ;;  %v1497_v18 = vld [vmem:[%s7329_s25 + $0xeb0] sm:$0xff] }
  0xe4   : > { %1372 = vst [vmem:[%s7334_s26 + $0x698] sm:$0xff] %v1371_v19  ;;  %v1499_v19 = vld [vmem:[%s7329_s25 + $0xeb8] sm:$0xff] }
  0xe5   : > { %1374 = vst [vmem:[%s7334_s26 + $0x6a0] sm:$0xff] %v1373_v20  ;;  %v1501_v20 = vld [vmem:[%s7329_s25 + $0xec0] sm:$0xff] }
  0xe6   : > { %1376 = vst [vmem:[%s7334_s26 + $0x6a8] sm:$0xff] %v1375_v21  ;;  %v1503_v21 = vld [vmem:[%s7329_s25 + $0xec8] sm:$0xff] }
  0xe7   : > { %1378 = vst [vmem:[%s7334_s26 + $0x6b0] sm:$0xff] %v1377_v22  ;;  %v1505_v22 = vld [vmem:[%s7329_s25 + $0xed0] sm:$0xff] }
  0xe8   : > { %1380 = vst [vmem:[%s7334_s26 + $0x6b8] sm:$0xff] %v1379_v23  ;;  %v1507_v23 = vld [vmem:[%s7329_s25 + $0xed8] sm:$0xff] }
  0xe9   : > { %1382 = vst [vmem:[%s7334_s26 + $0x6c0] sm:$0xff] %v1381_v24  ;;  %v1509_v24 = vld [vmem:[%s7329_s25 + $0xee0] sm:$0xff] }
  0xea   : > { %1384 = vst [vmem:[%s7334_s26 + $0x6c8] sm:$0xff] %v1383_v25  ;;  %v1511_v25 = vld [vmem:[%s7329_s25 + $0xee8] sm:$0xff] }
  0xeb   : > { %1386 = vst [vmem:[%s7334_s26 + $0x6d0] sm:$0xff] %v1385_v26  ;;  %v1513_v26 = vld [vmem:[%s7329_s25 + $0xef0] sm:$0xff] }
  0xec   : > { %1388 = vst [vmem:[%s7334_s26 + $0x6d8] sm:$0xff] %v1387_v27  ;;  %v1515_v27 = vld [vmem:[%s7329_s25 + $0xef8] sm:$0xff] }
  0xed   : > { %1390 = vst [vmem:[%s7334_s26 + $0x6e0] sm:$0xff] %v1389_v28  ;;  %v1517_v28 = vld [vmem:[%s7329_s25 + $0xf00] sm:$0xff] }
  0xee   : > { %1392 = vst [vmem:[%s7334_s26 + $0x6e8] sm:$0xff] %v1391_v29  ;;  %v1519_v29 = vld [vmem:[%s7329_s25 + $0xf08] sm:$0xff] }
  0xef   : > { %1394 = vst [vmem:[%s7334_s26 + $0x6f0] sm:$0xff] %v1393_v30  ;;  %v1521_v30 = vld [vmem:[%s7329_s25 + $0xf10] sm:$0xff] }
  0xf0   : > { %1396 = vst [vmem:[%s7334_s26 + $0x6f8] sm:$0xff] %v1395_v31  ;;  %v1523_v31 = vld [vmem:[%s7329_s25 + $0xf18] sm:$0xff] }
  0xf1   : > { %1398 = vst [vmem:[%s7334_s26 + $0x700] sm:$0xff] %v1397_v32  ;;  %v1525_v32 = vld [vmem:[%s7329_s25 + $0xf20] sm:$0xff] }
  0xf2   : > { %1400 = vst [vmem:[%s7334_s26 + $0x708] sm:$0xff] %v1399_v33  ;;  %v1527_v33 = vld [vmem:[%s7329_s25 + $0xf28] sm:$0xff] }
  0xf3   : > { %1402 = vst [vmem:[%s7334_s26 + $0x710] sm:$0xff] %v1401_v34  ;;  %v1529_v34 = vld [vmem:[%s7329_s25 + $0xf30] sm:$0xff] }
  0xf4   : > { %1404 = vst [vmem:[%s7334_s26 + $0x718] sm:$0xff] %v1403_v35  ;;  %v1531_v35 = vld [vmem:[%s7329_s25 + $0xf38] sm:$0xff] }
  0xf5   : > { %1406 = vst [vmem:[%s7334_s26 + $0x720] sm:$0xff] %v1405_v36  ;;  %v1533_v36 = vld [vmem:[%s7329_s25 + $0xf40] sm:$0xff] }
  0xf6   : > { %1408 = vst [vmem:[%s7334_s26 + $0x728] sm:$0xff] %v1407_v37  ;;  %v1535_v37 = vld [vmem:[%s7329_s25 + $0xf48] sm:$0xff] }
  0xf7   : > { %1410 = vst [vmem:[%s7334_s26 + $0x730] sm:$0xff] %v1409_v38  ;;  %v1537_v38 = vld [vmem:[%s7329_s25 + $0x1260] sm:$0xff] }
  0xf8   : > { %1412 = vst [vmem:[%s7334_s26 + $0x738] sm:$0xff] %v1411_v39  ;;  %v1539_v39 = vld [vmem:[%s7329_s25 + $0x1268] sm:$0xff] }
  0xf9   : > { %1414 = vst [vmem:[%s7334_s26 + $0x740] sm:$0xff] %v1413_v40  ;;  %v1541_v40 = vld [vmem:[%s7329_s25 + $0x1270] sm:$0xff] }
  0xfa   : > { %1416 = vst [vmem:[%s7334_s26 + $0x748] sm:$0xff] %v1415_v41  ;;  %v1543_v41 = vld [vmem:[%s7329_s25 + $0x1278] sm:$0xff] }
  0xfb   : > { %1418 = vst [vmem:[%s7334_s26 + $0x750] sm:$0xff] %v1417_v42  ;;  %v1545_v42 = vld [vmem:[%s7329_s25 + $0x1280] sm:$0xff] }
  0xfc   : > { %1420 = vst [vmem:[%s7334_s26 + $0x758] sm:$0xff] %v1419_v43  ;;  %v1547_v43 = vld [vmem:[%s7329_s25 + $0x1288] sm:$0xff] }
  0xfd   : > { %1422 = vst [vmem:[%s7334_s26 + $0x760] sm:$0xff] %v1421_v44  ;;  %v1549_v44 = vld [vmem:[%s7329_s25 + $0x1290] sm:$0xff] }
  0xfe   : > { %1424 = vst [vmem:[%s7334_s26 + $0x768] sm:$0xff] %v1423_v45  ;;  %v1551_v45 = vld [vmem:[%s7329_s25 + $0x1298] sm:$0xff] }
  0xff   : > { %1426 = vst [vmem:[%s7334_s26 + $0x770] sm:$0xff] %v1425_v46  ;;  %v1553_v46 = vld [vmem:[%s7329_s25 + $0x12a0] sm:$0xff] }
 0x100   : > { %1428 = vst [vmem:[%s7334_s26 + $0x778] sm:$0xff] %v1427_v47  ;;  %v1555_v47 = vld [vmem:[%s7329_s25 + $0x12a8] sm:$0xff] }
 0x101   : > { %1430 = vst [vmem:[%s7334_s26 + $0x780] sm:$0xff] %v1429_v48  ;;  %v1557_v48 = vld [vmem:[%s7329_s25 + $0x12b0] sm:$0xff] }
 0x102   : > { %1432 = vst [vmem:[%s7334_s26 + $0x788] sm:$0xff] %v1431_v49  ;;  %v1559_v49 = vld [vmem:[%s7329_s25 + $0x12b8] sm:$0xff] }
 0x103   : > { %1434 = vst [vmem:[%s7334_s26 + $0x790] sm:$0xff] %v1433_v50  ;;  %v1561_v50 = vld [vmem:[%s7329_s25 + $0x12c0] sm:$0xff] }
 0x104   : > { %1436 = vst [vmem:[%s7334_s26 + $0x798] sm:$0xff] %v1435_v51  ;;  %v1563_v51 = vld [vmem:[%s7329_s25 + $0x12c8] sm:$0xff] }
 0x105   : > { %1438 = vst [vmem:[%s7334_s26 + $0x7a0] sm:$0xff] %v1437_v52  ;;  %v1565_v52 = vld [vmem:[%s7329_s25 + $0x12d0] sm:$0xff] }
 0x106   : > { %1440 = vst [vmem:[%s7334_s26 + $0x7a8] sm:$0xff] %v1439_v53  ;;  %v1567_v53 = vld [vmem:[%s7329_s25 + $0x12d8] sm:$0xff] }
 0x107   : > { %1442 = vst [vmem:[%s7334_s26 + $0x7b0] sm:$0xff] %v1441_v54  ;;  %v1569_v54 = vld [vmem:[%s7329_s25 + $0x12e0] sm:$0xff] }
 0x108   : > { %1444 = vst [vmem:[%s7334_s26 + $0x7b8] sm:$0xff] %v1443_v55  ;;  %v1571_v55 = vld [vmem:[%s7329_s25 + $0x12e8] sm:$0xff] }
 0x109   : > { %1446 = vst [vmem:[%s7334_s26 + $0x7c0] sm:$0xff] %v1445_v56  ;;  %v1573_v56 = vld [vmem:[%s7329_s25 + $0x12f0] sm:$0xff] }
 0x10a   : > { %1448 = vst [vmem:[%s7334_s26 + $0x7c8] sm:$0xff] %v1447_v57  ;;  %v1575_v57 = vld [vmem:[%s7329_s25 + $0x12f8] sm:$0xff] }
 0x10b   : > { %1450 = vst [vmem:[%s7334_s26 + $0x7d0] sm:$0xff] %v1449_v58  ;;  %v1577_v58 = vld [vmem:[%s7329_s25 + $0x1300] sm:$0xff] }
 0x10c   : > { %1452 = vst [vmem:[%s7334_s26 + $0x7d8] sm:$0xff] %v1451_v59  ;;  %v1579_v59 = vld [vmem:[%s7329_s25 + $0x1308] sm:$0xff] }
 0x10d   : > { %1454 = vst [vmem:[%s7334_s26 + $0x7e0] sm:$0xff] %v1453_v60  ;;  %v1581_v60 = vld [vmem:[%s7329_s25 + $0x1310] sm:$0xff] }
 0x10e   : > { %1456 = vst [vmem:[%s7334_s26 + $0x7e8] sm:$0xff] %v1455_v61  ;;  %v1583_v61 = vld [vmem:[%s7329_s25 + $0x1318] sm:$0xff] }
 0x10f   : > { %1458 = vst [vmem:[%s7334_s26 + $0x7f0] sm:$0xff] %v1457_v62  ;;  %v1585_v62 = vld [vmem:[%s7329_s25 + $0x1320] sm:$0xff] }
 0x110   : > { %1460 = vst [vmem:[%s7334_s26 + $0x7f8] sm:$0xff] %v1459_v63  ;;  %v1587_v63 = vld [vmem:[%s7329_s25 + $0x1328] sm:$0xff] }
 0x111   : > { %1462 = vst [vmem:[%s7334_s26 + $0x800] sm:$0xff] %v1461_v0  ;;  %v1589_v0 = vld [vmem:[%s7329_s25 + $0x1330] sm:$0xff] }
 0x112   : > { %1464 = vst [vmem:[%s7334_s26 + $0x808] sm:$0xff] %v1463_v1  ;;  %v1591_v1 = vld [vmem:[%s7329_s25 + $0x1338] sm:$0xff] }
 0x113   : > { %1466 = vst [vmem:[%s7334_s26 + $0x810] sm:$0xff] %v1465_v2  ;;  %v1593_v2 = vld [vmem:[%s7329_s25 + $0x1340] sm:$0xff] }
 0x114   : > { %1468 = vst [vmem:[%s7334_s26 + $0x818] sm:$0xff] %v1467_v3  ;;  %v1595_v3 = vld [vmem:[%s7329_s25 + $0x1348] sm:$0xff] }
 0x115   : > { %1470 = vst [vmem:[%s7334_s26 + $0x820] sm:$0xff] %v1469_v4  ;;  %v1597_v4 = vld [vmem:[%s7329_s25 + $0x1350] sm:$0xff] }
 0x116   : > { %1472 = vst [vmem:[%s7334_s26 + $0x828] sm:$0xff] %v1471_v5  ;;  %v1599_v5 = vld [vmem:[%s7329_s25 + $0x1358] sm:$0xff] }
 0x117   : > { %1474 = vst [vmem:[%s7334_s26 + $0x830] sm:$0xff] %v1473_v6  ;;  %v1601_v6 = vld [vmem:[%s7329_s25 + $0x1360] sm:$0xff] }
 0x118   : > { %1476 = vst [vmem:[%s7334_s26 + $0x838] sm:$0xff] %v1475_v7  ;;  %v1603_v7 = vld [vmem:[%s7329_s25 + $0x1368] sm:$0xff] }
 0x119   : > { %1478 = vst [vmem:[%s7334_s26 + $0x840] sm:$0xff] %v1477_v8  ;;  %v1605_v8 = vld [vmem:[%s7329_s25 + $0x1370] sm:$0xff] }
 0x11a   : > { %1480 = vst [vmem:[%s7334_s26 + $0x848] sm:$0xff] %v1479_v9  ;;  %v1607_v9 = vld [vmem:[%s7329_s25 + $0x1378] sm:$0xff] }
 0x11b   : > { %1482 = vst [vmem:[%s7334_s26 + $0x850] sm:$0xff] %v1481_v10  ;;  %v1609_v10 = vld [vmem:[%s7329_s25 + $0x1380] sm:$0xff] }
 0x11c   : > { %1484 = vst [vmem:[%s7334_s26 + $0x858] sm:$0xff] %v1483_v11  ;;  %v1611_v11 = vld [vmem:[%s7329_s25 + $0x1388] sm:$0xff] }
 0x11d   : > { %1486 = vst [vmem:[%s7334_s26 + $0x860] sm:$0xff] %v1485_v12  ;;  %v1613_v12 = vld [vmem:[%s7329_s25 + $0x1390] sm:$0xff] }
 0x11e   : > { %1488 = vst [vmem:[%s7334_s26 + $0x868] sm:$0xff] %v1487_v13  ;;  %v1615_v13 = vld [vmem:[%s7329_s25 + $0x1398] sm:$0xff] }
 0x11f   : > { %1490 = vst [vmem:[%s7334_s26 + $0x870] sm:$0xff] %v1489_v14  ;;  %v1617_v14 = vld [vmem:[%s7329_s25 + $0x13a0] sm:$0xff] }
 0x120   : > { %1492 = vst [vmem:[%s7334_s26 + $0x878] sm:$0xff] %v1491_v15  ;;  %v1619_v15 = vld [vmem:[%s7329_s25 + $0x13a8] sm:$0xff] }
 0x121   : > { %1494 = vst [vmem:[%s7334_s26 + $0x880] sm:$0xff] %v1493_v16  ;;  %v1621_v16 = vld [vmem:[%s7329_s25 + $0x13b0] sm:$0xff] }
 0x122   : > { %1496 = vst [vmem:[%s7334_s26 + $0x888] sm:$0xff] %v1495_v17  ;;  %v1623_v17 = vld [vmem:[%s7329_s25 + $0x13b8] sm:$0xff] }
 0x123   : > { %1498 = vst [vmem:[%s7334_s26 + $0x890] sm:$0xff] %v1497_v18  ;;  %v1625_v18 = vld [vmem:[%s7329_s25 + $0x13c0] sm:$0xff] }
 0x124   : > { %1500 = vst [vmem:[%s7334_s26 + $0x898] sm:$0xff] %v1499_v19  ;;  %v1627_v19 = vld [vmem:[%s7329_s25 + $0x13c8] sm:$0xff] }
 0x125   : > { %1502 = vst [vmem:[%s7334_s26 + $0x8a0] sm:$0xff] %v1501_v20  ;;  %v1629_v20 = vld [vmem:[%s7329_s25 + $0x13d0] sm:$0xff] }
 0x126   : > { %1504 = vst [vmem:[%s7334_s26 + $0x8a8] sm:$0xff] %v1503_v21  ;;  %v1631_v21 = vld [vmem:[%s7329_s25 + $0x13d8] sm:$0xff] }
 0x127   : > { %1506 = vst [vmem:[%s7334_s26 + $0x8b0] sm:$0xff] %v1505_v22  ;;  %v1633_v22 = vld [vmem:[%s7329_s25 + $0x13e0] sm:$0xff] }
 0x128   : > { %1508 = vst [vmem:[%s7334_s26 + $0x8b8] sm:$0xff] %v1507_v23  ;;  %v1635_v23 = vld [vmem:[%s7329_s25 + $0x13e8] sm:$0xff] }
 0x129   : > { %1510 = vst [vmem:[%s7334_s26 + $0x8c0] sm:$0xff] %v1509_v24  ;;  %v1637_v24 = vld [vmem:[%s7329_s25 + $0x13f0] sm:$0xff] }
 0x12a   : > { %1512 = vst [vmem:[%s7334_s26 + $0x8c8] sm:$0xff] %v1511_v25  ;;  %v1639_v25 = vld [vmem:[%s7329_s25 + $0x13f8] sm:$0xff] }
 0x12b   : > { %1514 = vst [vmem:[%s7334_s26 + $0x8d0] sm:$0xff] %v1513_v26  ;;  %v1641_v26 = vld [vmem:[%s7329_s25 + $0x1400] sm:$0xff] }
 0x12c   : > { %1516 = vst [vmem:[%s7334_s26 + $0x8d8] sm:$0xff] %v1515_v27  ;;  %v1643_v27 = vld [vmem:[%s7329_s25 + $0x1408] sm:$0xff] }
 0x12d   : > { %1518 = vst [vmem:[%s7334_s26 + $0x8e0] sm:$0xff] %v1517_v28  ;;  %v1645_v28 = vld [vmem:[%s7329_s25 + $0x1410] sm:$0xff] }
 0x12e   : > { %1520 = vst [vmem:[%s7334_s26 + $0x8e8] sm:$0xff] %v1519_v29  ;;  %v1647_v29 = vld [vmem:[%s7329_s25 + $0x1418] sm:$0xff] }
 0x12f   : > { %1522 = vst [vmem:[%s7334_s26 + $0x8f0] sm:$0xff] %v1521_v30  ;;  %v1649_v30 = vld [vmem:[%s7329_s25 + $0x1420] sm:$0xff] }
 0x130   : > { %1524 = vst [vmem:[%s7334_s26 + $0x8f8] sm:$0xff] %v1523_v31  ;;  %v1651_v31 = vld [vmem:[%s7329_s25 + $0x1428] sm:$0xff] }
 0x131   : > { %1526 = vst [vmem:[%s7334_s26 + $0x900] sm:$0xff] %v1525_v32  ;;  %v1653_v32 = vld [vmem:[%s7329_s25 + $0x1430] sm:$0xff] }
 0x132   : > { %1528 = vst [vmem:[%s7334_s26 + $0x908] sm:$0xff] %v1527_v33  ;;  %v1655_v33 = vld [vmem:[%s7329_s25 + $0x1438] sm:$0xff] }
 0x133   : > { %1530 = vst [vmem:[%s7334_s26 + $0x910] sm:$0xff] %v1529_v34  ;;  %v1657_v34 = vld [vmem:[%s7329_s25 + $0x1440] sm:$0xff] }
 0x134   : > { %1532 = vst [vmem:[%s7334_s26 + $0x918] sm:$0xff] %v1531_v35  ;;  %v1659_v35 = vld [vmem:[%s7329_s25 + $0x1448] sm:$0xff] }
 0x135   : > { %1534 = vst [vmem:[%s7334_s26 + $0x920] sm:$0xff] %v1533_v36  ;;  %v1661_v36 = vld [vmem:[%s7329_s25 + $0x1450] sm:$0xff] }
 0x136   : > { %1536 = vst [vmem:[%s7334_s26 + $0x928] sm:$0xff] %v1535_v37  ;;  %v1663_v37 = vld [vmem:[%s7329_s25 + $0x1458] sm:$0xff] }
 0x137   : > { %1538 = vst [vmem:[%s7334_s26 + $0x930] sm:$0xff] %v1537_v38  ;;  %v1665_v38 = vld [vmem:[%s7329_s25 + $0x1460] sm:$0xff] }
 0x138   : > { %1540 = vst [vmem:[%s7334_s26 + $0x938] sm:$0xff] %v1539_v39  ;;  %v1667_v39 = vld [vmem:[%s7329_s25 + $0x1468] sm:$0xff] }
 0x139   : > { %1542 = vst [vmem:[%s7334_s26 + $0x940] sm:$0xff] %v1541_v40  ;;  %v1669_v40 = vld [vmem:[%s7329_s25 + $0x1470] sm:$0xff] }
 0x13a   : > { %1544 = vst [vmem:[%s7334_s26 + $0x948] sm:$0xff] %v1543_v41  ;;  %v1671_v41 = vld [vmem:[%s7329_s25 + $0x1478] sm:$0xff] }
 0x13b   : > { %1546 = vst [vmem:[%s7334_s26 + $0x950] sm:$0xff] %v1545_v42  ;;  %v1673_v42 = vld [vmem:[%s7329_s25 + $0x1480] sm:$0xff] }
 0x13c   : > { %1548 = vst [vmem:[%s7334_s26 + $0x958] sm:$0xff] %v1547_v43  ;;  %v1675_v43 = vld [vmem:[%s7329_s25 + $0x1488] sm:$0xff] }
 0x13d   : > { %1550 = vst [vmem:[%s7334_s26 + $0x960] sm:$0xff] %v1549_v44  ;;  %v1677_v44 = vld [vmem:[%s7329_s25 + $0x1490] sm:$0xff] }
 0x13e   : > { %1552 = vst [vmem:[%s7334_s26 + $0x968] sm:$0xff] %v1551_v45  ;;  %v1679_v45 = vld [vmem:[%s7329_s25 + $0x1498] sm:$0xff] }
 0x13f   : > { %1554 = vst [vmem:[%s7334_s26 + $0x970] sm:$0xff] %v1553_v46  ;;  %v1681_v46 = vld [vmem:[%s7329_s25 + $0x14a0] sm:$0xff] }
 0x140   : > { %1556 = vst [vmem:[%s7334_s26 + $0x978] sm:$0xff] %v1555_v47  ;;  %v1683_v47 = vld [vmem:[%s7329_s25 + $0x14a8] sm:$0xff] }
 0x141   : > { %1558 = vst [vmem:[%s7334_s26 + $0x980] sm:$0xff] %v1557_v48  ;;  %v1685_v48 = vld [vmem:[%s7329_s25 + $0x14b0] sm:$0xff] }
 0x142   : > { %1560 = vst [vmem:[%s7334_s26 + $0x988] sm:$0xff] %v1559_v49  ;;  %v1687_v49 = vld [vmem:[%s7329_s25 + $0x14b8] sm:$0xff] }
 0x143   : > { %1562 = vst [vmem:[%s7334_s26 + $0x990] sm:$0xff] %v1561_v50  ;;  %v1689_v50 = vld [vmem:[%s7329_s25 + $0x14c0] sm:$0xff] }
 0x144   : > { %1564 = vst [vmem:[%s7334_s26 + $0x998] sm:$0xff] %v1563_v51  ;;  %v1691_v51 = vld [vmem:[%s7329_s25 + $0x14c8] sm:$0xff] }
 0x145   : > { %1566 = vst [vmem:[%s7334_s26 + $0x9a0] sm:$0xff] %v1565_v52  ;;  %v1693_v52 = vld [vmem:[%s7329_s25 + $0x14d0] sm:$0xff] }
 0x146   : > { %1568 = vst [vmem:[%s7334_s26 + $0x9a8] sm:$0xff] %v1567_v53  ;;  %v1695_v53 = vld [vmem:[%s7329_s25 + $0x14d8] sm:$0xff] }
 0x147   : > { %1570 = vst [vmem:[%s7334_s26 + $0x9b0] sm:$0xff] %v1569_v54  ;;  %v1697_v54 = vld [vmem:[%s7329_s25 + $0x14e0] sm:$0xff] }
 0x148   : > { %1572 = vst [vmem:[%s7334_s26 + $0x9b8] sm:$0xff] %v1571_v55  ;;  %v1699_v55 = vld [vmem:[%s7329_s25 + $0x14e8] sm:$0xff] }
 0x149   : > { %1574 = vst [vmem:[%s7334_s26 + $0x9c0] sm:$0xff] %v1573_v56  ;;  %v1701_v56 = vld [vmem:[%s7329_s25 + $0x14f0] sm:$0xff] }
 0x14a   : > { %1576 = vst [vmem:[%s7334_s26 + $0x9c8] sm:$0xff] %v1575_v57  ;;  %v1703_v57 = vld [vmem:[%s7329_s25 + $0x14f8] sm:$0xff] }
 0x14b   : > { %1578 = vst [vmem:[%s7334_s26 + $0x9d0] sm:$0xff] %v1577_v58  ;;  %v1705_v58 = vld [vmem:[%s7329_s25 + $0x1500] sm:$0xff] }
 0x14c   : > { %1580 = vst [vmem:[%s7334_s26 + $0x9d8] sm:$0xff] %v1579_v59  ;;  %v1707_v59 = vld [vmem:[%s7329_s25 + $0x1508] sm:$0xff] }
 0x14d   : > { %1582 = vst [vmem:[%s7334_s26 + $0x9e0] sm:$0xff] %v1581_v60  ;;  %v1709_v60 = vld [vmem:[%s7329_s25 + $0x1510] sm:$0xff] }
 0x14e   : > { %1584 = vst [vmem:[%s7334_s26 + $0x9e8] sm:$0xff] %v1583_v61  ;;  %v1711_v61 = vld [vmem:[%s7329_s25 + $0x1518] sm:$0xff] }
 0x14f   : > { %1586 = vst [vmem:[%s7334_s26 + $0x9f0] sm:$0xff] %v1585_v62  ;;  %v1713_v62 = vld [vmem:[%s7329_s25 + $0x1520] sm:$0xff] }
 0x150   : > { %1588 = vst [vmem:[%s7334_s26 + $0x9f8] sm:$0xff] %v1587_v63  ;;  %v1715_v63 = vld [vmem:[%s7329_s25 + $0x1528] sm:$0xff] }
 0x151   : > { %1590 = vst [vmem:[%s7334_s26 + $0xa00] sm:$0xff] %v1589_v0  ;;  %v1717_v0 = vld [vmem:[%s7329_s25 + $0x1530] sm:$0xff] }
 0x152   : > { %1592 = vst [vmem:[%s7334_s26 + $0xa08] sm:$0xff] %v1591_v1  ;;  %v1719_v1 = vld [vmem:[%s7329_s25 + $0x1538] sm:$0xff] }
 0x153   : > { %1594 = vst [vmem:[%s7334_s26 + $0xa10] sm:$0xff] %v1593_v2  ;;  %v1721_v2 = vld [vmem:[%s7329_s25 + $0x1540] sm:$0xff] }
 0x154   : > { %1596 = vst [vmem:[%s7334_s26 + $0xa18] sm:$0xff] %v1595_v3  ;;  %v1723_v3 = vld [vmem:[%s7329_s25 + $0x1548] sm:$0xff] }
 0x155   : > { %1598 = vst [vmem:[%s7334_s26 + $0xa20] sm:$0xff] %v1597_v4  ;;  %v1725_v4 = vld [vmem:[%s7329_s25 + $0x1550] sm:$0xff] }
 0x156   : > { %1600 = vst [vmem:[%s7334_s26 + $0xa28] sm:$0xff] %v1599_v5  ;;  %v1727_v5 = vld [vmem:[%s7329_s25 + $0x1558] sm:$0xff] }
 0x157   : > { %1602 = vst [vmem:[%s7334_s26 + $0xa30] sm:$0xff] %v1601_v6  ;;  %v1729_v6 = vld [vmem:[%s7329_s25 + $0x1560] sm:$0xff] }
 0x158   : > { %1604 = vst [vmem:[%s7334_s26 + $0xa38] sm:$0xff] %v1603_v7  ;;  %v1731_v7 = vld [vmem:[%s7329_s25 + $0x1568] sm:$0xff] }
 0x159   : > { %1606 = vst [vmem:[%s7334_s26 + $0xa40] sm:$0xff] %v1605_v8 }
 0x15a   : > { %1608 = vst [vmem:[%s7334_s26 + $0xa48] sm:$0xff] %v1607_v9 }
 0x15b   : > { %1610 = vst [vmem:[%s7334_s26 + $0xa50] sm:$0xff] %v1609_v10 }
 0x15c   : > { %1612 = vst [vmem:[%s7334_s26 + $0xa58] sm:$0xff] %v1611_v11 }
 0x15d   : > { %1614 = vst [vmem:[%s7334_s26 + $0xa60] sm:$0xff] %v1613_v12 }
 0x15e   : > { %1616 = vst [vmem:[%s7334_s26 + $0xa68] sm:$0xff] %v1615_v13 }
 0x15f   : > { %1618 = vst [vmem:[%s7334_s26 + $0xa70] sm:$0xff] %v1617_v14 }
 0x160   : > { %1620 = vst [vmem:[%s7334_s26 + $0xa78] sm:$0xff] %v1619_v15 }
 0x161   : > { %1622 = vst [vmem:[%s7334_s26 + $0xa80] sm:$0xff] %v1621_v16 }
 0x162   : > { %1624 = vst [vmem:[%s7334_s26 + $0xa88] sm:$0xff] %v1623_v17 }
 0x163   : > { %1626 = vst [vmem:[%s7334_s26 + $0xa90] sm:$0xff] %v1625_v18 }
 0x164   : > { %1628 = vst [vmem:[%s7334_s26 + $0xa98] sm:$0xff] %v1627_v19 }
 0x165   : > { %1630 = vst [vmem:[%s7334_s26 + $0xaa0] sm:$0xff] %v1629_v20 }
 0x166   : > { %1632 = vst [vmem:[%s7334_s26 + $0xaa8] sm:$0xff] %v1631_v21 }
 0x167   : > { %1634 = vst [vmem:[%s7334_s26 + $0xab0] sm:$0xff] %v1633_v22 }
 0x168   : > { %1636 = vst [vmem:[%s7334_s26 + $0xab8] sm:$0xff] %v1635_v23 }
 0x169   : > { %1638 = vst [vmem:[%s7334_s26 + $0xac0] sm:$0xff] %v1637_v24 }
 0x16a   : > { %1640 = vst [vmem:[%s7334_s26 + $0xac8] sm:$0xff] %v1639_v25 }
 0x16b   : > { %1642 = vst [vmem:[%s7334_s26 + $0xad0] sm:$0xff] %v1641_v26 }
 0x16c   : > { %1644 = vst [vmem:[%s7334_s26 + $0xad8] sm:$0xff] %v1643_v27 }
 0x16d   : > { %1646 = vst [vmem:[%s7334_s26 + $0xae0] sm:$0xff] %v1645_v28 }
 0x16e   : > { %1648 = vst [vmem:[%s7334_s26 + $0xae8] sm:$0xff] %v1647_v29 }
 0x16f   : > { %1650 = vst [vmem:[%s7334_s26 + $0xaf0] sm:$0xff] %v1649_v30 }
 0x170   : > { %1652 = vst [vmem:[%s7334_s26 + $0xaf8] sm:$0xff] %v1651_v31 }
 0x171   : > { %1654 = vst [vmem:[%s7334_s26 + $0xb00] sm:$0xff] %v1653_v32 }
 0x172   : > { %1656 = vst [vmem:[%s7334_s26 + $0xb08] sm:$0xff] %v1655_v33 }
 0x173   : > { %1658 = vst [vmem:[%s7334_s26 + $0xb10] sm:$0xff] %v1657_v34 }
 0x174   : > { %1660 = vst [vmem:[%s7334_s26 + $0xb18] sm:$0xff] %v1659_v35 }
 0x175   : > { %1662 = vst [vmem:[%s7334_s26 + $0xb20] sm:$0xff] %v1661_v36 }
 0x176   : > { %1664 = vst [vmem:[%s7334_s26 + $0xb28] sm:$0xff] %v1663_v37 }
 0x177   : > { %1666 = vst [vmem:[%s7334_s26 + $0xb30] sm:$0xff] %v1665_v38 }
 0x178   : > { %1668 = vst [vmem:[%s7334_s26 + $0xb38] sm:$0xff] %v1667_v39 }
 0x179   : > { %1670 = vst [vmem:[%s7334_s26 + $0xb40] sm:$0xff] %v1669_v40 }
 0x17a   : > { %1672 = vst [vmem:[%s7334_s26 + $0xb48] sm:$0xff] %v1671_v41 }
 0x17b   : > { %1674 = vst [vmem:[%s7334_s26 + $0xb50] sm:$0xff] %v1673_v42 }
 0x17c   : > { %1676 = vst [vmem:[%s7334_s26 + $0xb58] sm:$0xff] %v1675_v43 }
 0x17d   : > { %1678 = vst [vmem:[%s7334_s26 + $0xb60] sm:$0xff] %v1677_v44 }
 0x17e   : > { %1680 = vst [vmem:[%s7334_s26 + $0xb68] sm:$0xff] %v1679_v45 }
 0x17f   : > { %1682 = vst [vmem:[%s7334_s26 + $0xb70] sm:$0xff] %v1681_v46 }
 0x180   : > { %1684 = vst [vmem:[%s7334_s26 + $0xb78] sm:$0xff] %v1683_v47 }
 0x181   : > { %1686 = vst [vmem:[%s7334_s26 + $0xb80] sm:$0xff] %v1685_v48 }
 0x182   : > { %1688 = vst [vmem:[%s7334_s26 + $0xb88] sm:$0xff] %v1687_v49 }
 0x183   : > { %1690 = vst [vmem:[%s7334_s26 + $0xb90] sm:$0xff] %v1689_v50 }
 0x184   : > { %1692 = vst [vmem:[%s7334_s26 + $0xb98] sm:$0xff] %v1691_v51 }
 0x185   : > { %1694 = vst [vmem:[%s7334_s26 + $0xba0] sm:$0xff] %v1693_v52 }
 0x186   : > { %1696 = vst [vmem:[%s7334_s26 + $0xba8] sm:$0xff] %v1695_v53 }
 0x187   : > { %1698 = vst [vmem:[%s7334_s26 + $0xbb0] sm:$0xff] %v1697_v54 }
 0x188   : > { %1700 = vst [vmem:[%s7334_s26 + $0xbb8] sm:$0xff] %v1699_v55 }
 0x189   : > { %1702 = vst [vmem:[%s7334_s26 + $0xbc0] sm:$0xff] %v1701_v56 }
 0x18a   : > { %1704 = vst [vmem:[%s7334_s26 + $0xbc8] sm:$0xff] %v1703_v57 }
 0x18b   : > { %1706 = vst [vmem:[%s7334_s26 + $0xbd0] sm:$0xff] %v1705_v58 }
 0x18c   : > { %1708 = vst [vmem:[%s7334_s26 + $0xbd8] sm:$0xff] %v1707_v59 }
 0x18d   : > { %1710 = vst [vmem:[%s7334_s26 + $0xbe0] sm:$0xff] %v1709_v60 }
 0x18e   : > { %1712 = vst [vmem:[%s7334_s26 + $0xbe8] sm:$0xff] %v1711_v61 }
 0x18f   : > { %1714 = vst [vmem:[%s7334_s26 + $0xbf0] sm:$0xff] %v1713_v62 }
 0x190   : > { %1716 = vst [vmem:[%s7334_s26 + $0xbf8] sm:$0xff] %v1715_v63 }
 0x191   : > { %1718 = vst [vmem:[%s7334_s26 + $0xc00] sm:$0xff] %v1717_v0 }
 0x192   : > { %1720 = vst [vmem:[%s7334_s26 + $0xc08] sm:$0xff] %v1719_v1 }
 0x193   : > { %1722 = vst [vmem:[%s7334_s26 + $0xc10] sm:$0xff] %v1721_v2 }
 0x194   : > { %1724 = vst [vmem:[%s7334_s26 + $0xc18] sm:$0xff] %v1723_v3 }
 0x195   : > { %1726 = vst [vmem:[%s7334_s26 + $0xc20] sm:$0xff] %v1725_v4 }
 0x196   : > { %1728 = vst [vmem:[%s7334_s26 + $0xc28] sm:$0xff] %v1727_v5 }
 0x197   : > { %1730 = vst [vmem:[%s7334_s26 + $0xc30] sm:$0xff] %v1729_v6 }
 0x198   : > { %1732 = vst [vmem:[%s7334_s26 + $0xc38] sm:$0xff] %v1731_v7 }
 0x199 PF: > { %p6812_p5 = scmp.ge.s32.totalorder %s7273_s14, 1  ;;  %p3340_p6 = scmp.lt.s32.totalorder %s7273_s14, 3 }
 0x19b   : > { %p3341_p7 = pnand %p6812_p5, %p3340_p6 }
 0x19c   : > { %s3347_s4 = sand.u32 (!%p3341_p7), 1, %s7265_s12   ;;  %s3371_s11 = smul.u32 (!%p3341_p7), 98, %s6807_s15 }
 0x19d   : > { %3344 = sbr.rel (%p3341_p7) target bundleno = 1343 (0x53f), region = 80 }
 0x19e   : > { %s7222_s5 = smul.u32 (!%p3341_p7), 3136, %s3347_s4  ;;  %p3372_p8 = scmp.lt.s32.totalorder (!%p3341_p7), %s3371_s11, 195 }
 0x1a0   : > { %s8132_s10 = scalar_lea.vmem (!%p3341_p7), [#allocation2], %s7222_s5 }
 0x1a2   : > { %v3772_v8 = vld [vmem:[%s9250_s1 + $0x18] sm:$0xff]  ;;  %v3771_v9 = vld [vmem:[%s9250_s1 + $0x10] sm:$0xff]  ;;  %v3770_v10 = vld [vmem:[%s9250_s1 + $0x8] sm:$0xff]  ;;  %vm3773_vm0 = vcmask 261120   ;;  %s9257_s11 = smov (!%p3372_p8, %s3371_s11), 195  ;;  %vm6637_vm1 = vcmask 64512  }
 0x1a3   : > { %7210 = vmatpush.msra.mxu2 %v3772_v8  ;;  %7211 = vmatpush.msra.mxu3 %v3772_v8  ;;  %v3769_v11 = vld [vmem:[%s9250_s1] sm:$0xff]  ;;  %v3671_v13 = vld [vmem:[%s8132_s10 + $0x930] sm:$0xff]  ;;  %v3574_v16 = vld [vmem:[%s8132_s10 + $0x628] sm:$0xff]  ;;  %s6813_s15 = sshll.u32 %s9257_s11, 3 }
 0x1a4   : > { %4962 = vmatpush.msra.mxu0 %v3772_v8  ;;  %7209 = vmatpush.msra.mxu1 %v3772_v8  ;;  %v3573_v12 = vld [vmem:[%s8132_s10 + $0x620] sm:$0xff]  ;;  %v3475_v15 = vld [vmem:[%s8132_s10 + $0x310] sm:$0xff]  ;;  %v3672_v17 = vld [vmem:[%s8132_s10 + $0x938] sm:$0xff]  ;;  %s8287_s20 = scalar_lea.vmem %s9252_s3, %s6813_s15 }
 0x1a5   : > { %7213 = vmatpush.msra.mxu2 %v3771_v9  ;;  %7214 = vmatpush.msra.mxu3 %v3771_v9  ;;  %v3377_v14 = vld [vmem:[%s8132_s10] sm:$0xff]  ;;  %v3378_v18 = vld [vmem:[%s8132_s10 + $0x8] sm:$0xff]  ;;  %v3476_v19 = vld [vmem:[%s8132_s10 + $0x318] sm:$0xff] }
 0x1a6   : > { %4963 = vmatpush.msra.mxu0 %v3771_v9  ;;  %7212 = vmatpush.msra.mxu1 %v3771_v9  ;;  %v3575_v20 = vld [vmem:[%s8132_s10 + $0x630] sm:$0xff]  ;;  %v3673_v21 = vld [vmem:[%s8132_s10 + $0x940] sm:$0xff]  ;;  %v3576_v24 = vld [vmem:[%s8132_s10 + $0x638] sm:$0xff] }
 0x1a7   : > { %7216 = vmatpush.msra.mxu2 %v3770_v10  ;;  %7217 = vmatpush.msra.mxu3 %v3770_v10  ;;  %v3379_v22 = vld [vmem:[%s8132_s10 + $0x10] sm:$0xff]  ;;  %v3477_v23 = vld [vmem:[%s8132_s10 + $0x320] sm:$0xff]  ;;  %v3674_v25 = vld [vmem:[%s8132_s10 + $0x948] sm:$0xff] }
 0x1a8   : > { %4964 = vmatpush.msra.mxu0 %v3770_v10  ;;  %7215 = vmatpush.msra.mxu1 %v3770_v10  ;;  %v3380_v26 = vld [vmem:[%s8132_s10 + $0x18] sm:$0xff]  ;;  %v3478_v27 = vld [vmem:[%s8132_s10 + $0x328] sm:$0xff]  ;;  %v3577_v28 = vld [vmem:[%s8132_s10 + $0x640] sm:$0xff] }
 0x1a9   : > { %7219 = vmatpush.msra.mxu2 %v3769_v11  ;;  %7220 = vmatpush.msra.mxu3 %v3769_v11  ;;  %v3675_v29 = vld [vmem:[%s8132_s10 + $0x950] sm:$0xff]  ;;  %v3381_v30 = vld [vmem:[%s8132_s10 + $0x20] sm:$0xff]  ;;  %v3578_v32 = vld [vmem:[%s8132_s10 + $0x648] sm:$0xff] }
 0x1aa   : > { %7010 = vmatmul.msk.f32.vlgmr.msra.gmra.mxu2 %vm3773_vm0, %v3573_v12  ;;  %7108 = vmatmul.msk.f32.vlgmr.msra.gmra.mxu3 %vm3773_vm0, %v3671_v13  ;;  %v3479_v31 = vld [vmem:[%s8132_s10 + $0x330] sm:$0xff]  ;;  %v3676_v33 = vld [vmem:[%s8132_s10 + $0x958] sm:$0xff]  ;;  %v3382_v34 = vld [vmem:[%s8132_s10 + $0x28] sm:$0xff] }
 0x1ab   : > { %4965 = vmatpush.msra.mxu0 %v3769_v11  ;;  %7218 = vmatpush.msra.mxu1 %v3769_v11  ;;  %v3480_v35 = vld [vmem:[%s8132_s10 + $0x338] sm:$0xff]  ;;  %v3579_v36 = vld [vmem:[%s8132_s10 + $0x650] sm:$0xff]  ;;  %v3677_v37 = vld [vmem:[%s8132_s10 + $0x960] sm:$0xff] }
 0x1ac   : > { %6814 = vmatmul.msk.f32.vlgmr.msra.gmra.mxu0 %vm3773_vm0, %v3377_v14  ;;  %6912 = vmatmul.msk.f32.vlgmr.msra.gmra.mxu1 %vm3773_vm0, %v3475_v15  ;;  %v3383_v38 = vld [vmem:[%s8132_s10 + $0x30] sm:$0xff]  ;;  %v3481_v39 = vld [vmem:[%s8132_s10 + $0x340] sm:$0xff]  ;;  %v3580_v40 = vld [vmem:[%s8132_s10 + $0x658] sm:$0xff] }
 0x1ad   : > { %v3678_v41 = vld [vmem:[%s8132_s10 + $0x968] sm:$0xff]  ;;  %v3384_v42 = vld [vmem:[%s8132_s10 + $0x38] sm:$0xff]  ;;  %v3581_v44 = vld [vmem:[%s8132_s10 + $0x660] sm:$0xff] }
 0x1ae   : > { %v3482_v43 = vld [vmem:[%s8132_s10 + $0x348] sm:$0xff]  ;;  %v3679_v45 = vld [vmem:[%s8132_s10 + $0x970] sm:$0xff]  ;;  %v3385_v46 = vld [vmem:[%s8132_s10 + $0x40] sm:$0xff] }
 0x1af   : > { %v3483_v47 = vld [vmem:[%s8132_s10 + $0x350] sm:$0xff]  ;;  %v3582_v48 = vld [vmem:[%s8132_s10 + $0x668] sm:$0xff]  ;;  %v3680_v49 = vld [vmem:[%s8132_s10 + $0x978] sm:$0xff] }
 0x1b0   : > { %v3386_v50 = vld [vmem:[%s8132_s10 + $0x48] sm:$0xff]  ;;  %v3484_v51 = vld [vmem:[%s8132_s10 + $0x358] sm:$0xff]  ;;  %v3583_v52 = vld [vmem:[%s8132_s10 + $0x670] sm:$0xff] }
 0x1b1   : > { %v3681_v53 = vld [vmem:[%s8132_s10 + $0x980] sm:$0xff]  ;;  %v3387_v54 = vld [vmem:[%s8132_s10 + $0x50] sm:$0xff]  ;;  %v3584_v56 = vld [vmem:[%s8132_s10 + $0x678] sm:$0xff] }
 0x1b2   : > { %7011 = vmatmul.msk.f32.gmra.mxu2 %vm3773_vm0, %v3574_v16  ;;  %7109 = vmatmul.msk.f32.gmra.mxu3 %vm3773_vm0, %v3672_v17  ;;  %v3485_v55 = vld [vmem:[%s8132_s10 + $0x360] sm:$0xff]  ;;  %v3682_v57 = vld [vmem:[%s8132_s10 + $0x988] sm:$0xff]  ;;  %v3388_v58 = vld [vmem:[%s8132_s10 + $0x58] sm:$0xff] }
 0x1b3   : > { %v3486_v59 = vld [vmem:[%s8132_s10 + $0x368] sm:$0xff]  ;;  %v3585_v60 = vld [vmem:[%s8132_s10 + $0x680] sm:$0xff]  ;;  %v3683_v61 = vld [vmem:[%s8132_s10 + $0x990] sm:$0xff] }
 0x1b4   : > { %6815 = vmatmul.msk.f32.gmra.mxu0 %vm3773_vm0, %v3378_v18  ;;  %6913 = vmatmul.msk.f32.gmra.mxu1 %vm3773_vm0, %v3476_v19  ;;  %v3389_v62 = vld [vmem:[%s8132_s10 + $0x60] sm:$0xff]  ;;  %v3487_v63 = vld [vmem:[%s8132_s10 + $0x370] sm:$0xff]  ;;  %v3586_v0 = vld [vmem:[%s8132_s10 + $0x688] sm:$0xff] }
 0x1b5   : > { %v3684_v1 = vld [vmem:[%s8132_s10 + $0x998] sm:$0xff]  ;;  %v3390_v2 = vld [vmem:[%s8132_s10 + $0x68] sm:$0xff]  ;;  %v3587_v4 = vld [vmem:[%s8132_s10 + $0x690] sm:$0xff] }
 0x1b6   : > { %v3488_v3 = vld [vmem:[%s8132_s10 + $0x378] sm:$0xff]  ;;  %v3685_v5 = vld [vmem:[%s8132_s10 + $0x9a0] sm:$0xff]  ;;  %v3391_v6 = vld [vmem:[%s8132_s10 + $0x70] sm:$0xff] }
 0x1b7   : > { %v3489_v7 = vld [vmem:[%s8132_s10 + $0x380] sm:$0xff]  ;;  %v3588_v8 = vld [vmem:[%s8132_s10 + $0x698] sm:$0xff]  ;;  %v3686_v9 = vld [vmem:[%s8132_s10 + $0x9a8] sm:$0xff] }
 0x1b8   : > { %v3392_v10 = vld [vmem:[%s8132_s10 + $0x78] sm:$0xff]  ;;  %v3490_v11 = vld [vmem:[%s8132_s10 + $0x388] sm:$0xff]  ;;  %v3589_v12 = vld [vmem:[%s8132_s10 + $0x6a0] sm:$0xff] }
 0x1b9   : > { %v3687_v13 = vld [vmem:[%s8132_s10 + $0x9b0] sm:$0xff]  ;;  %v3393_v16 = vld [vmem:[%s8132_s10 + $0x80] sm:$0xff] }
 0x1ba   : > { %7012 = vmatmul.msk.f32.gmra.mxu2 %vm3773_vm0, %v3575_v20  ;;  %7110 = vmatmul.msk.f32.gmra.mxu3 %vm3773_vm0, %v3673_v21  ;;  %v3491_v17 = vld [vmem:[%s8132_s10 + $0x390] sm:$0xff] }
 0x1bc   : > { %6816 = vmatmul.msk.f32.gmra.mxu0 %vm3773_vm0, %v3379_v22  ;;  %6914 = vmatmul.msk.f32.gmra.mxu1 %vm3773_vm0, %v3477_v23  ;;  %v8275_v22 = vld [vmem:[%s9251_s2] ss:$0 sm:$0xff]  ;;  %v3590_v23 = vld [vmem:[%s8132_s10 + $0x6a8] sm:$0xff] }
 0x1c2   : > { %7013 = vmatmul.msk.f32.gmra.mxu2 %vm3773_vm0, %v3576_v24  ;;  %7111 = vmatmul.msk.f32.gmra.mxu3 %vm3773_vm0, %v3674_v25  ;;  %v3688_v24 = vld [vmem:[%s8132_s10 + $0x9b8] sm:$0xff] }
 0x1c4   : > { %6817 = vmatmul.msk.f32.gmra.mxu0 %vm3773_vm0, %v3380_v26  ;;  %6915 = vmatmul.msk.f32.gmra.mxu1 %vm3773_vm0, %v3478_v27 }
 0x1ca   : > { %7014 = vmatmul.msk.f32.gmra.mxu2 %vm3773_vm0, %v3577_v28  ;;  %7112 = vmatmul.msk.f32.gmra.mxu3 %vm3773_vm0, %v3675_v29  ;;  %v3394_v28 = vld [vmem:[%s8132_s10 + $0x88] sm:$0xff]  ;;  %v3492_v29 = vld [vmem:[%s8132_s10 + $0x398] sm:$0xff] }
 0x1cc   : > { %6818 = vmatmul.msk.f32.gmra.mxu0 %vm3773_vm0, %v3381_v30  ;;  %6916 = vmatmul.msk.f32.gmra.mxu1 %vm3773_vm0, %v3479_v31 }
 0x1d2   : > { %7015 = vmatmul.msk.f32.gmra.mxu2 %vm3773_vm0, %v3578_v32  ;;  %7113 = vmatmul.msk.f32.gmra.mxu3 %vm3773_vm0, %v3676_v33 }
 0x1d4   : > { %6819 = vmatmul.msk.f32.gmra.mxu0 %vm3773_vm0, %v3382_v34  ;;  %6917 = vmatmul.msk.f32.gmra.mxu1 %vm3773_vm0, %v3480_v35 }
 0x1da   : > { %7016 = vmatmul.msk.f32.gmra.mxu2 %vm3773_vm0, %v3579_v36  ;;  %7114 = vmatmul.msk.f32.gmra.mxu3 %vm3773_vm0, %v3677_v37  ;;  %v3591_v36 = vld [vmem:[%s8132_s10 + $0x6b0] sm:$0xff]  ;;  %v3689_v37 = vld [vmem:[%s8132_s10 + $0x9c0] sm:$0xff] }
 0x1dc   : > { %6820 = vmatmul.msk.f32.gmra.mxu0 %vm3773_vm0, %v3383_v38  ;;  %6918 = vmatmul.msk.f32.gmra.mxu1 %vm3773_vm0, %v3481_v39 }
 0x1e2   : > { %7017 = vmatmul.msk.f32.gmra.mxu2 %vm3773_vm0, %v3580_v40  ;;  %7115 = vmatmul.msk.f32.gmra.mxu3 %vm3773_vm0, %v3678_v41  ;;  %v3395_v41 = vld [vmem:[%s8132_s10 + $0x90] sm:$0xff] }
 0x1e4   : > { %6821 = vmatmul.msk.f32.gmra.mxu0 %vm3773_vm0, %v3384_v42  ;;  %6919 = vmatmul.msk.f32.gmra.mxu1 %vm3773_vm0, %v3482_v43  ;;  %v3493_v42 = vld [vmem:[%s8132_s10 + $0x3a0] sm:$0xff] }
 0x1ea   : > { %7018 = vmatmul.msk.f32.gmra.mxu2 %vm3773_vm0, %v3581_v44  ;;  %7116 = vmatmul.msk.f32.gmra.mxu3 %vm3773_vm0, %v3679_v45 }
 0x1ec   : > { %6822 = vmatmul.msk.f32.gmra.mxu0 %vm3773_vm0, %v3385_v46  ;;  %6920 = vmatmul.msk.f32.gmra.mxu1 %vm3773_vm0, %v3483_v47 }
 0x1f2   : > { %7019 = vmatmul.msk.f32.gmra.mxu2 %vm3773_vm0, %v3582_v48  ;;  %7117 = vmatmul.msk.f32.gmra.mxu3 %vm3773_vm0, %v3680_v49  ;;  %v3592_v49 = vld [vmem:[%s8132_s10 + $0x6b8] sm:$0xff] }
 0x1f4   : > { %6823 = vmatmul.msk.f32.gmra.mxu0 %vm3773_vm0, %v3386_v50  ;;  %6921 = vmatmul.msk.f32.gmra.mxu1 %vm3773_vm0, %v3484_v51  ;;  %v3690_v50 = vld [vmem:[%s8132_s10 + $0x9c8] sm:$0xff] }
 0x1fa   : > { %7020 = vmatmul.msk.f32.gmra.mxu2 %vm3773_vm0, %v3583_v52  ;;  %7118 = vmatmul.msk.f32.gmra.mxu3 %vm3773_vm0, %v3681_v53 }
 0x1fc   : > { %6824 = vmatmul.msk.f32.gmra.mxu0 %vm3773_vm0, %v3387_v54  ;;  %6922 = vmatmul.msk.f32.gmra.mxu1 %vm3773_vm0, %v3485_v55  ;;  %v3396_v54 = vld [vmem:[%s8132_s10 + $0x98] sm:$0xff]  ;;  %v3494_v55 = vld [vmem:[%s8132_s10 + $0x3a8] sm:$0xff] }
 0x202   : > { %7021 = vmatmul.msk.f32.gmra.mxu2 %vm3773_vm0, %v3584_v56  ;;  %7119 = vmatmul.msk.f32.gmra.mxu3 %vm3773_vm0, %v3682_v57 }
 0x204   : > { %6825 = vmatmul.msk.f32.gmra.mxu0 %vm3773_vm0, %v3388_v58  ;;  %6923 = vmatmul.msk.f32.gmra.mxu1 %vm3773_vm0, %v3486_v59 }
 0x20a   : > { %7022 = vmatmul.msk.f32.gmra.mxu2 %vm3773_vm0, %v3585_v60  ;;  %7120 = vmatmul.msk.f32.gmra.mxu3 %vm3773_vm0, %v3683_v61 }
 0x20c   : > { %6826 = vmatmul.msk.f32.gmra.mxu0 %vm3773_vm0, %v3389_v62  ;;  %6924 = vmatmul.msk.f32.gmra.mxu1 %vm3773_vm0, %v3487_v63  ;;  %v3593_v62 = vld [vmem:[%s8132_s10 + $0x6c0] sm:$0xff]  ;;  %v3691_v63 = vld [vmem:[%s8132_s10 + $0x9d0] sm:$0xff] }
 0x212   : > { %7023 = vmatmul.msk.f32.gmra.mxu2 %vm3773_vm0, %v3586_v0  ;;  %7121 = vmatmul.msk.f32.gmra.mxu3 %vm3773_vm0, %v3684_v1 }
 0x214   : > { %6827 = vmatmul.msk.f32.gmra.mxu0 %vm3773_vm0, %v3390_v2  ;;  %6925 = vmatmul.msk.f32.gmra.mxu1 %vm3773_vm0, %v3488_v3  ;;  %v3397_v3 = vld [vmem:[%s8132_s10 + $0xa0] sm:$0xff] }
 0x21a   : > { %7024 = vmatmul.msk.f32.gmra.mxu2 %vm3773_vm0, %v3587_v4  ;;  %7122 = vmatmul.msk.f32.gmra.mxu3 %vm3773_vm0, %v3685_v5  ;;  %v3495_v4 = vld [vmem:[%s8132_s10 + $0x3b0] sm:$0xff] }
 0x21c   : > { %6828 = vmatmul.msk.f32.gmra.mxu0 %vm3773_vm0, %v3391_v6  ;;  %6926 = vmatmul.msk.f32.gmra.mxu1 %vm3773_vm0, %v3489_v7 }
 0x222   : > { %7025 = vmatmul.msk.f32.gmra.mxu2 %vm3773_vm0, %v3588_v8  ;;  %7123 = vmatmul.msk.f32.gmra.mxu3 %vm3773_vm0, %v3686_v9 }
 0x224   : > { %6829 = vmatmul.msk.f32.gmra.mxu0 %vm3773_vm0, %v3392_v10  ;;  %6927 = vmatmul.msk.f32.gmra.mxu1 %vm3773_vm0, %v3490_v11  ;;  %v3594_v11 = vld [vmem:[%s8132_s10 + $0x6c8] sm:$0xff] }
 0x229   : > { %v4967_v14 = vpop.f32.mrf.mxu0  ;;  %v5261_v15 = vpop.f32.mrf.mxu1 }
 0x22a   : > { %7026 = vmatmul.msk.f32.gmra.mxu2 %vm3773_vm0, %v3589_v12  ;;  %v6143_v18 = vmax.f32 %v4967_v14, %v5261_v15  ;;  %7124 = vmatmul.msk.f32.gmra.mxu3 %vm3773_vm0, %v3687_v13  ;;  %v3692_v12 = vld [vmem:[%s8132_s10 + $0x9d8] sm:$0xff] }
 0x22c   : > { %6830 = vmatmul.msk.f32.gmra.mxu0 %vm3773_vm0, %v3393_v16  ;;  %6928 = vmatmul.msk.f32.gmra.mxu1 %vm3773_vm0, %v3491_v17  ;;  %v3398_v16 = vld [vmem:[%s8132_s10 + $0xa8] sm:$0xff]  ;;  %v3496_v17 = vld [vmem:[%s8132_s10 + $0x3b8] sm:$0xff] }
 0x22d   : > { %v5555_v19 = vpop.f32.mrf.mxu2  ;;  %v5849_v20 = vpop.f32.mrf.mxu3 }
 0x22e   : > { %v6144_v21 = vmax.f32 %v6143_v18, %v5555_v19 }
 0x230   : > { %v6145_v25 = vmax.f32 %v6144_v21, %v5849_v20 }
 0x231   : > { %v4970_v26 = vpop.f32.mrf.mxu0  ;;  %v5264_v27 = vpop.f32.mrf.mxu1 }
 0x232   : > { %v6441_v30 = vadd.f32 %v8275_v22, %v6145_v25  ;;  %7027 = vmatmul.msk.f32.gmra.mxu2 %vm3773_vm0, %v3590_v23  ;;  %v6146_v31 = vmax.f32 %v4970_v26, %v5264_v27  ;;  %7125 = vmatmul.msk.f32.gmra.mxu3 %vm3773_vm0, %v3688_v24  ;;  %v3595_v25 = vld [vmem:[%s8132_s10 + $0x6d0] sm:$0xff]  ;;  %v3693_v26 = vld [vmem:[%s8132_s10 + $0x9e0] sm:$0xff] }
 0x234   : > { %v6539_v32 = vmax.f32 %v6441_v30, 0.0  ;;  %6831 = vmatmul.msk.f32.gmra.mxu0 %vm3773_vm0, %v3394_v28  ;;  %6929 = vmatmul.msk.f32.gmra.mxu1 %vm3773_vm0, %v3492_v29  ;;  %v3399_v30 = vld [vmem:[%s8132_s10 + $0xb0] sm:$0xff] }
 0x235   : > { %v5558_v33 = vpop.f32.mrf.mxu2  ;;  %v5852_v34 = vpop.f32.mrf.mxu3 }
 0x236   : > { %6638 = vst.msk [vmem:[%s8287_s20] sm:$0xff] %vm6637_vm1, %v6539_v32  ;;  %v6147_v35 = vmax.f32 %v6146_v31, %v5558_v33  ;;  %v3497_v31 = vld [vmem:[%s8132_s10 + $0x3c0] sm:$0xff] }
 0x238   : > { %v6148_v38 = vmax.f32 %v6147_v35, %v5852_v34 }
 0x239   : > { %v4973_v39 = vpop.f32.mrf.mxu0  ;;  %v5267_v40 = vpop.f32.mrf.mxu1 }
 0x23a   : > { %v6442_v43 = vadd.f32 %v8275_v22, %v6148_v38  ;;  %7028 = vmatmul.msk.f32.gmra.mxu2 %vm3773_vm0, %v3591_v36  ;;  %v6149_v44 = vmax.f32 %v4973_v39, %v5267_v40  ;;  %7126 = vmatmul.msk.f32.gmra.mxu3 %vm3773_vm0, %v3689_v37  ;;  %v3596_v38 = vld [vmem:[%s8132_s10 + $0x6d8] sm:$0xff]  ;;  %v3694_v39 = vld [vmem:[%s8132_s10 + $0x9e8] sm:$0xff] }
 0x23c   : > { %v6540_v45 = vmax.f32 %v6442_v43, 0.0  ;;  %6832 = vmatmul.msk.f32.gmra.mxu0 %vm3773_vm0, %v3395_v41  ;;  %6930 = vmatmul.msk.f32.gmra.mxu1 %vm3773_vm0, %v3493_v42  ;;  %v3400_v43 = vld [vmem:[%s8132_s10 + $0xb8] sm:$0xff] }
 0x23d   : > { %v5561_v46 = vpop.f32.mrf.mxu2  ;;  %v5855_v47 = vpop.f32.mrf.mxu3 }
 0x23e   : > { %6639 = vst.msk [vmem:[%s8287_s20 + $0x8] sm:$0xff] %vm6637_vm1, %v6540_v45  ;;  %v6150_v48 = vmax.f32 %v6149_v44, %v5561_v46  ;;  %v3498_v44 = vld [vmem:[%s8132_s10 + $0x3c8] sm:$0xff] }
 0x240   : > { %v6151_v51 = vmax.f32 %v6150_v48, %v5855_v47 }
 0x241   : > { %v4976_v52 = vpop.f32.mrf.mxu0  ;;  %v5270_v53 = vpop.f32.mrf.mxu1 }
 0x242   : > { %v6443_v56 = vadd.f32 %v8275_v22, %v6151_v51  ;;  %7029 = vmatmul.msk.f32.gmra.mxu2 %vm3773_vm0, %v3592_v49  ;;  %v6152_v57 = vmax.f32 %v4976_v52, %v5270_v53  ;;  %7127 = vmatmul.msk.f32.gmra.mxu3 %vm3773_vm0, %v3690_v50  ;;  %v3597_v51 = vld [vmem:[%s8132_s10 + $0x6e0] sm:$0xff]  ;;  %v3695_v52 = vld [vmem:[%s8132_s10 + $0x9f0] sm:$0xff] }
 0x244   : > { %v6541_v58 = vmax.f32 %v6443_v56, 0.0  ;;  %6833 = vmatmul.msk.f32.gmra.mxu0 %vm3773_vm0, %v3396_v54  ;;  %6931 = vmatmul.msk.f32.gmra.mxu1 %vm3773_vm0, %v3494_v55  ;;  %v3401_v56 = vld [vmem:[%s8132_s10 + $0xc0] sm:$0xff] }
 0x245   : > { %v5564_v59 = vpop.f32.mrf.mxu2  ;;  %v5858_v60 = vpop.f32.mrf.mxu3 }
 0x246   : > { %6640 = vst.msk [vmem:[%s8287_s20 + $0x10] sm:$0xff] %vm6637_vm1, %v6541_v58  ;;  %v6153_v61 = vmax.f32 %v6152_v57, %v5564_v59  ;;  %v3499_v57 = vld [vmem:[%s8132_s10 + $0x3d0] sm:$0xff] }
 0x248   : > { %v6154_v0 = vmax.f32 %v6153_v61, %v5858_v60 }
 0x249   : > { %v4979_v1 = vpop.f32.mrf.mxu0  ;;  %v5273_v2 = vpop.f32.mrf.mxu1 }
 0x24a   : > { %v6444_v5 = vadd.f32 %v8275_v22, %v6154_v0  ;;  %7030 = vmatmul.msk.f32.gmra.mxu2 %vm3773_vm0, %v3593_v62  ;;  %v6155_v6 = vmax.f32 %v4979_v1, %v5273_v2  ;;  %7128 = vmatmul.msk.f32.gmra.mxu3 %vm3773_vm0, %v3691_v63  ;;  %v3598_v0 = vld [vmem:[%s8132_s10 + $0x6e8] sm:$0xff]  ;;  %v3696_v1 = vld [vmem:[%s8132_s10 + $0x9f8] sm:$0xff] }
 0x24c   : > { %v6542_v7 = vmax.f32 %v6444_v5, 0.0  ;;  %6834 = vmatmul.msk.f32.gmra.mxu0 %vm3773_vm0, %v3397_v3  ;;  %6932 = vmatmul.msk.f32.gmra.mxu1 %vm3773_vm0, %v3495_v4  ;;  %v3402_v5 = vld [vmem:[%s8132_s10 + $0xc8] sm:$0xff] }
 0x24d   : > { %v5567_v8 = vpop.f32.mrf.mxu2  ;;  %v5861_v9 = vpop.f32.mrf.mxu3 }
 0x24e   : > { %6641 = vst.msk [vmem:[%s8287_s20 + $0x18] sm:$0xff] %vm6637_vm1, %v6542_v7  ;;  %v6156_v10 = vmax.f32 %v6155_v6, %v5567_v8  ;;  %v3500_v6 = vld [vmem:[%s8132_s10 + $0x3d8] sm:$0xff] }
 0x250   : > { %v6157_v13 = vmax.f32 %v6156_v10, %v5861_v9 }
 0x251   : > { %v4982_v14 = vpop.f32.mrf.mxu0  ;;  %v5276_v15 = vpop.f32.mrf.mxu1 }
 0x252   : > { %v6445_v18 = vadd.f32 %v8275_v22, %v6157_v13  ;;  %7031 = vmatmul.msk.f32.gmra.mxu2 %vm3773_vm0, %v3594_v11  ;;  %v6158_v19 = vmax.f32 %v4982_v14, %v5276_v15  ;;  %7129 = vmatmul.msk.f32.gmra.mxu3 %vm3773_vm0, %v3692_v12  ;;  %v3599_v13 = vld [vmem:[%s8132_s10 + $0x6f0] sm:$0xff]  ;;  %v3697_v14 = vld [vmem:[%s8132_s10 + $0xa00] sm:$0xff] }
 0x254   : > { %v6543_v20 = vmax.f32 %v6445_v18, 0.0  ;;  %6835 = vmatmul.msk.f32.gmra.mxu0 %vm3773_vm0, %v3398_v16  ;;  %6933 = vmatmul.msk.f32.gmra.mxu1 %vm3773_vm0, %v3496_v17  ;;  %v3403_v18 = vld [vmem:[%s8132_s10 + $0xd0] sm:$0xff] }
 0x255   : > { %v5570_v21 = vpop.f32.mrf.mxu2  ;;  %v5864_v23 = vpop.f32.mrf.mxu3 }
 0x256   : > { %6642 = vst.msk [vmem:[%s8287_s20 + $0x20] sm:$0xff] %vm6637_vm1, %v6543_v20  ;;  %v6159_v24 = vmax.f32 %v6158_v19, %v5570_v21  ;;  %v3501_v19 = vld [vmem:[%s8132_s10 + $0x3e0] sm:$0xff] }
 0x258   : > { %v6160_v27 = vmax.f32 %v6159_v24, %v5864_v23 }
 0x259   : > { %v4985_v28 = vpop.f32.mrf.mxu0  ;;  %v5279_v29 = vpop.f32.mrf.mxu1 }
 0x25a   : > { %v6446_v32 = vadd.f32 %v8275_v22, %v6160_v27  ;;  %7032 = vmatmul.msk.f32.gmra.mxu2 %vm3773_vm0, %v3595_v25  ;;  %v6161_v33 = vmax.f32 %v4985_v28, %v5279_v29  ;;  %7130 = vmatmul.msk.f32.gmra.mxu3 %vm3773_vm0, %v3693_v26  ;;  %v3600_v27 = vld [vmem:[%s8132_s10 + $0x6f8] sm:$0xff]  ;;  %v3698_v28 = vld [vmem:[%s8132_s10 + $0xa08] sm:$0xff] }
 0x25c   : > { %v6544_v34 = vmax.f32 %v6446_v32, 0.0  ;;  %6836 = vmatmul.msk.f32.gmra.mxu0 %vm3773_vm0, %v3399_v30  ;;  %6934 = vmatmul.msk.f32.gmra.mxu1 %vm3773_vm0, %v3497_v31  ;;  %v3404_v32 = vld [vmem:[%s8132_s10 + $0xd8] sm:$0xff] }
 0x25d   : > { %v5573_v35 = vpop.f32.mrf.mxu2  ;;  %v5867_v36 = vpop.f32.mrf.mxu3 }
 0x25e   : > { %6643 = vst.msk [vmem:[%s8287_s20 + $0x28] sm:$0xff] %vm6637_vm1, %v6544_v34  ;;  %v6162_v37 = vmax.f32 %v6161_v33, %v5573_v35  ;;  %v3502_v33 = vld [vmem:[%s8132_s10 + $0x3e8] sm:$0xff] }
 0x260   : > { %v6163_v40 = vmax.f32 %v6162_v37, %v5867_v36 }
 0x261   : > { %v4988_v41 = vpop.f32.mrf.mxu0  ;;  %v5282_v42 = vpop.f32.mrf.mxu1 }
 0x262   : > { %v6447_v45 = vadd.f32 %v8275_v22, %v6163_v40  ;;  %7033 = vmatmul.msk.f32.gmra.mxu2 %vm3773_vm0, %v3596_v38  ;;  %v6164_v46 = vmax.f32 %v4988_v41, %v5282_v42  ;;  %7131 = vmatmul.msk.f32.gmra.mxu3 %vm3773_vm0, %v3694_v39  ;;  %v3601_v40 = vld [vmem:[%s8132_s10 + $0x700] sm:$0xff]  ;;  %v3699_v41 = vld [vmem:[%s8132_s10 + $0xa10] sm:$0xff] }
 0x264   : > { %v6545_v47 = vmax.f32 %v6447_v45, 0.0  ;;  %6837 = vmatmul.msk.f32.gmra.mxu0 %vm3773_vm0, %v3400_v43  ;;  %6935 = vmatmul.msk.f32.gmra.mxu1 %vm3773_vm0, %v3498_v44  ;;  %v3405_v45 = vld [vmem:[%s8132_s10 + $0xe0] sm:$0xff] }
 0x265   : > { %v5576_v48 = vpop.f32.mrf.mxu2  ;;  %v5870_v49 = vpop.f32.mrf.mxu3 }
 0x266   : > { %6644 = vst.msk [vmem:[%s8287_s20 + $0x30] sm:$0xff] %vm6637_vm1, %v6545_v47  ;;  %v6165_v50 = vmax.f32 %v6164_v46, %v5576_v48  ;;  %v3503_v46 = vld [vmem:[%s8132_s10 + $0x3f0] sm:$0xff] }
 0x268   : > { %v6166_v53 = vmax.f32 %v6165_v50, %v5870_v49 }
 0x269   : > { %v4991_v54 = vpop.f32.mrf.mxu0  ;;  %v5285_v55 = vpop.f32.mrf.mxu1 }
 0x26a   : > { %v6448_v58 = vadd.f32 %v8275_v22, %v6166_v53  ;;  %7034 = vmatmul.msk.f32.gmra.mxu2 %vm3773_vm0, %v3597_v51  ;;  %v6167_v59 = vmax.f32 %v4991_v54, %v5285_v55  ;;  %7132 = vmatmul.msk.f32.gmra.mxu3 %vm3773_vm0, %v3695_v52  ;;  %v3602_v53 = vld [vmem:[%s8132_s10 + $0x708] sm:$0xff]  ;;  %v3700_v54 = vld [vmem:[%s8132_s10 + $0xa18] sm:$0xff] }
 0x26c   : > { %v6546_v60 = vmax.f32 %v6448_v58, 0.0  ;;  %6838 = vmatmul.msk.f32.gmra.mxu0 %vm3773_vm0, %v3401_v56  ;;  %6936 = vmatmul.msk.f32.gmra.mxu1 %vm3773_vm0, %v3499_v57  ;;  %v3406_v58 = vld [vmem:[%s8132_s10 + $0xe8] sm:$0xff] }
 0x26d   : > { %v5579_v61 = vpop.f32.mrf.mxu2  ;;  %v5873_v62 = vpop.f32.mrf.mxu3 }
 0x26e   : > { %6645 = vst.msk [vmem:[%s8287_s20 + $0x38] sm:$0xff] %vm6637_vm1, %v6546_v60  ;;  %v6168_v63 = vmax.f32 %v6167_v59, %v5579_v61  ;;  %v3504_v59 = vld [vmem:[%s8132_s10 + $0x3f8] sm:$0xff] }
 0x270   : > { %v6169_v2 = vmax.f32 %v6168_v63, %v5873_v62 }
 0x271   : > { %v4994_v3 = vpop.f32.mrf.mxu0  ;;  %v5288_v4 = vpop.f32.mrf.mxu1 }
 0x272   : > { %v6449_v7 = vadd.f32 %v8275_v22, %v6169_v2  ;;  %7035 = vmatmul.msk.f32.gmra.mxu2 %vm3773_vm0, %v3598_v0  ;;  %v6170_v8 = vmax.f32 %v4994_v3, %v5288_v4  ;;  %7133 = vmatmul.msk.f32.gmra.mxu3 %vm3773_vm0, %v3696_v1  ;;  %v3603_v2 = vld [vmem:[%s8132_s10 + $0x710] sm:$0xff]  ;;  %v3701_v3 = vld [vmem:[%s8132_s10 + $0xa20] sm:$0xff] }
 0x274   : > { %v6547_v9 = vmax.f32 %v6449_v7, 0.0  ;;  %6839 = vmatmul.msk.f32.gmra.mxu0 %vm3773_vm0, %v3402_v5  ;;  %6937 = vmatmul.msk.f32.gmra.mxu1 %vm3773_vm0, %v3500_v6  ;;  %v3407_v7 = vld [vmem:[%s8132_s10 + $0xf0] sm:$0xff] }
 0x275   : > { %v5582_v10 = vpop.f32.mrf.mxu2  ;;  %v5876_v11 = vpop.f32.mrf.mxu3 }
 0x276   : > { %6646 = vst.msk [vmem:[%s8287_s20 + $0x40] sm:$0xff] %vm6637_vm1, %v6547_v9  ;;  %v6171_v12 = vmax.f32 %v6170_v8, %v5582_v10  ;;  %v3505_v8 = vld [vmem:[%s8132_s10 + $0x400] sm:$0xff] }
 0x278   : > { %v6172_v15 = vmax.f32 %v6171_v12, %v5876_v11 }
 0x279   : > { %v4997_v16 = vpop.f32.mrf.mxu0  ;;  %v5291_v17 = vpop.f32.mrf.mxu1 }
 0x27a   : > { %v6450_v20 = vadd.f32 %v8275_v22, %v6172_v15  ;;  %7036 = vmatmul.msk.f32.gmra.mxu2 %vm3773_vm0, %v3599_v13  ;;  %v6173_v21 = vmax.f32 %v4997_v16, %v5291_v17  ;;  %7134 = vmatmul.msk.f32.gmra.mxu3 %vm3773_vm0, %v3697_v14  ;;  %v3604_v15 = vld [vmem:[%s8132_s10 + $0x718] sm:$0xff]  ;;  %v3702_v16 = vld [vmem:[%s8132_s10 + $0xa28] sm:$0xff] }
 0x27c   : > { %v6548_v23 = vmax.f32 %v6450_v20, 0.0  ;;  %6840 = vmatmul.msk.f32.gmra.mxu0 %vm3773_vm0, %v3403_v18  ;;  %6938 = vmatmul.msk.f32.gmra.mxu1 %vm3773_vm0, %v3501_v19  ;;  %v3408_v20 = vld [vmem:[%s8132_s10 + $0xf8] sm:$0xff] }
 0x27d   : > { %v5585_v24 = vpop.f32.mrf.mxu2  ;;  %v5879_v25 = vpop.f32.mrf.mxu3 }
 0x27e   : > { %6647 = vst.msk [vmem:[%s8287_s20 + $0x48] sm:$0xff] %vm6637_vm1, %v6548_v23  ;;  %v6174_v26 = vmax.f32 %v6173_v21, %v5585_v24  ;;  %v3506_v21 = vld [vmem:[%s8132_s10 + $0x408] sm:$0xff] }
 0x280   : > { %v6175_v29 = vmax.f32 %v6174_v26, %v5879_v25 }
 0x281   : > { %v5000_v30 = vpop.f32.mrf.mxu0  ;;  %v5294_v31 = vpop.f32.mrf.mxu1 }
 0x282   : > { %v6451_v34 = vadd.f32 %v8275_v22, %v6175_v29  ;;  %7037 = vmatmul.msk.f32.gmra.mxu2 %vm3773_vm0, %v3600_v27  ;;  %v6176_v35 = vmax.f32 %v5000_v30, %v5294_v31  ;;  %7135 = vmatmul.msk.f32.gmra.mxu3 %vm3773_vm0, %v3698_v28  ;;  %v3605_v29 = vld [vmem:[%s8132_s10 + $0x720] sm:$0xff]  ;;  %v3703_v30 = vld [vmem:[%s8132_s10 + $0xa30] sm:$0xff] }
 0x284   : > { %v6549_v36 = vmax.f32 %v6451_v34, 0.0  ;;  %6841 = vmatmul.msk.f32.gmra.mxu0 %vm3773_vm0, %v3404_v32  ;;  %6939 = vmatmul.msk.f32.gmra.mxu1 %vm3773_vm0, %v3502_v33  ;;  %v3409_v34 = vld [vmem:[%s8132_s10 + $0x100] sm:$0xff] }
 0x285   : > { %v5588_v37 = vpop.f32.mrf.mxu2  ;;  %v5882_v38 = vpop.f32.mrf.mxu3 }
 0x286   : > { %6648 = vst.msk [vmem:[%s8287_s20 + $0x50] sm:$0xff] %vm6637_vm1, %v6549_v36  ;;  %v6177_v39 = vmax.f32 %v6176_v35, %v5588_v37  ;;  %v3507_v35 = vld [vmem:[%s8132_s10 + $0x410] sm:$0xff] }
 0x288   : > { %v6178_v42 = vmax.f32 %v6177_v39, %v5882_v38 }
 0x289   : > { %v5003_v43 = vpop.f32.mrf.mxu0  ;;  %v5297_v44 = vpop.f32.mrf.mxu1 }
 0x28a   : > { %v6452_v47 = vadd.f32 %v8275_v22, %v6178_v42  ;;  %7038 = vmatmul.msk.f32.gmra.mxu2 %vm3773_vm0, %v3601_v40  ;;  %v6179_v48 = vmax.f32 %v5003_v43, %v5297_v44  ;;  %7136 = vmatmul.msk.f32.gmra.mxu3 %vm3773_vm0, %v3699_v41  ;;  %v3606_v42 = vld [vmem:[%s8132_s10 + $0x728] sm:$0xff]  ;;  %v3704_v43 = vld [vmem:[%s8132_s10 + $0xa38] sm:$0xff] }
 0x28c   : > { %v6550_v49 = vmax.f32 %v6452_v47, 0.0  ;;  %6842 = vmatmul.msk.f32.gmra.mxu0 %vm3773_vm0, %v3405_v45  ;;  %6940 = vmatmul.msk.f32.gmra.mxu1 %vm3773_vm0, %v3503_v46  ;;  %v3410_v47 = vld [vmem:[%s8132_s10 + $0x108] sm:$0xff] }
 0x28d   : > { %v5591_v50 = vpop.f32.mrf.mxu2  ;;  %v5885_v51 = vpop.f32.mrf.mxu3 }
 0x28e   : > { %6649 = vst.msk [vmem:[%s8287_s20 + $0x58] sm:$0xff] %vm6637_vm1, %v6550_v49  ;;  %v6180_v52 = vmax.f32 %v6179_v48, %v5591_v50  ;;  %v3508_v48 = vld [vmem:[%s8132_s10 + $0x418] sm:$0xff] }
 0x290   : > { %v6181_v55 = vmax.f32 %v6180_v52, %v5885_v51 }
 0x291   : > { %v5006_v56 = vpop.f32.mrf.mxu0  ;;  %v5300_v57 = vpop.f32.mrf.mxu1 }
 0x292   : > { %v6453_v60 = vadd.f32 %v8275_v22, %v6181_v55  ;;  %7039 = vmatmul.msk.f32.gmra.mxu2 %vm3773_vm0, %v3602_v53  ;;  %v6182_v61 = vmax.f32 %v5006_v56, %v5300_v57  ;;  %7137 = vmatmul.msk.f32.gmra.mxu3 %vm3773_vm0, %v3700_v54  ;;  %v3607_v55 = vld [vmem:[%s8132_s10 + $0x730] sm:$0xff]  ;;  %v3705_v56 = vld [vmem:[%s8132_s10 + $0xa40] sm:$0xff] }
 0x294   : > { %v6551_v62 = vmax.f32 %v6453_v60, 0.0  ;;  %6843 = vmatmul.msk.f32.gmra.mxu0 %vm3773_vm0, %v3406_v58  ;;  %6941 = vmatmul.msk.f32.gmra.mxu1 %vm3773_vm0, %v3504_v59  ;;  %v3411_v60 = vld [vmem:[%s8132_s10 + $0x110] sm:$0xff] }
 0x295   : > { %v5594_v63 = vpop.f32.mrf.mxu2  ;;  %v5888_v0 = vpop.f32.mrf.mxu3 }
 0x296   : > { %6650 = vst.msk [vmem:[%s8287_s20 + $0x60] sm:$0xff] %vm6637_vm1, %v6551_v62  ;;  %v6183_v1 = vmax.f32 %v6182_v61, %v5594_v63  ;;  %v3509_v61 = vld [vmem:[%s8132_s10 + $0x420] sm:$0xff] }
 0x298   : > { %v6184_v4 = vmax.f32 %v6183_v1, %v5888_v0 }
 0x299   : > { %v5009_v5 = vpop.f32.mrf.mxu0  ;;  %v5303_v6 = vpop.f32.mrf.mxu1 }
 0x29a   : > { %v6454_v9 = vadd.f32 %v8275_v22, %v6184_v4  ;;  %7040 = vmatmul.msk.f32.gmra.mxu2 %vm3773_vm0, %v3603_v2  ;;  %v6185_v10 = vmax.f32 %v5009_v5, %v5303_v6  ;;  %7138 = vmatmul.msk.f32.gmra.mxu3 %vm3773_vm0, %v3701_v3  ;;  %v3608_v4 = vld [vmem:[%s8132_s10 + $0x738] sm:$0xff]  ;;  %v3706_v5 = vld [vmem:[%s8132_s10 + $0xa48] sm:$0xff] }
 0x29c   : > { %v6552_v11 = vmax.f32 %v6454_v9, 0.0  ;;  %6844 = vmatmul.msk.f32.gmra.mxu0 %vm3773_vm0, %v3407_v7  ;;  %6942 = vmatmul.msk.f32.gmra.mxu1 %vm3773_vm0, %v3505_v8  ;;  %v3412_v9 = vld [vmem:[%s8132_s10 + $0x118] sm:$0xff] }
 0x29d   : > { %v5597_v12 = vpop.f32.mrf.mxu2  ;;  %v5891_v13 = vpop.f32.mrf.mxu3 }
 0x29e   : > { %6651 = vst.msk [vmem:[%s8287_s20 + $0x68] sm:$0xff] %vm6637_vm1, %v6552_v11  ;;  %v6186_v14 = vmax.f32 %v6185_v10, %v5597_v12  ;;  %v3510_v10 = vld [vmem:[%s8132_s10 + $0x428] sm:$0xff] }
 0x2a0   : > { %v6187_v17 = vmax.f32 %v6186_v14, %v5891_v13 }
 0x2a1   : > { %v5012_v18 = vpop.f32.mrf.mxu0  ;;  %v5306_v19 = vpop.f32.mrf.mxu1 }
 0x2a2   : > { %v6455_v23 = vadd.f32 %v8275_v22, %v6187_v17  ;;  %7041 = vmatmul.msk.f32.gmra.mxu2 %vm3773_vm0, %v3604_v15  ;;  %v6188_v24 = vmax.f32 %v5012_v18, %v5306_v19  ;;  %7139 = vmatmul.msk.f32.gmra.mxu3 %vm3773_vm0, %v3702_v16  ;;  %v3609_v17 = vld [vmem:[%s8132_s10 + $0x740] sm:$0xff]  ;;  %v3707_v18 = vld [vmem:[%s8132_s10 + $0xa50] sm:$0xff] }
 0x2a4   : > { %v6553_v25 = vmax.f32 %v6455_v23, 0.0  ;;  %6845 = vmatmul.msk.f32.gmra.mxu0 %vm3773_vm0, %v3408_v20  ;;  %6943 = vmatmul.msk.f32.gmra.mxu1 %vm3773_vm0, %v3506_v21  ;;  %v3413_v23 = vld [vmem:[%s8132_s10 + $0x120] sm:$0xff] }
 0x2a5   : > { %v5600_v26 = vpop.f32.mrf.mxu2  ;;  %v5894_v27 = vpop.f32.mrf.mxu3 }
 0x2a6   : > { %6652 = vst.msk [vmem:[%s8287_s20 + $0x70] sm:$0xff] %vm6637_vm1, %v6553_v25  ;;  %v6189_v28 = vmax.f32 %v6188_v24, %v5600_v26  ;;  %v3511_v24 = vld [vmem:[%s8132_s10 + $0x430] sm:$0xff] }
 0x2a8   : > { %v6190_v31 = vmax.f32 %v6189_v28, %v5894_v27 }
 0x2a9   : > { %v5015_v32 = vpop.f32.mrf.mxu0  ;;  %v5309_v33 = vpop.f32.mrf.mxu1 }
 0x2aa   : > { %v6456_v36 = vadd.f32 %v8275_v22, %v6190_v31  ;;  %7042 = vmatmul.msk.f32.gmra.mxu2 %vm3773_vm0, %v3605_v29  ;;  %v6191_v37 = vmax.f32 %v5015_v32, %v5309_v33  ;;  %7140 = vmatmul.msk.f32.gmra.mxu3 %vm3773_vm0, %v3703_v30  ;;  %v3610_v31 = vld [vmem:[%s8132_s10 + $0x748] sm:$0xff]  ;;  %v3708_v32 = vld [vmem:[%s8132_s10 + $0xa58] sm:$0xff] }
 0x2ac   : > { %v6554_v38 = vmax.f32 %v6456_v36, 0.0  ;;  %6846 = vmatmul.msk.f32.gmra.mxu0 %vm3773_vm0, %v3409_v34  ;;  %6944 = vmatmul.msk.f32.gmra.mxu1 %vm3773_vm0, %v3507_v35  ;;  %v3414_v36 = vld [vmem:[%s8132_s10 + $0x128] sm:$0xff] }
 0x2ad   : > { %v5603_v39 = vpop.f32.mrf.mxu2  ;;  %v5897_v40 = vpop.f32.mrf.mxu3 }
 0x2ae   : > { %6653 = vst.msk [vmem:[%s8287_s20 + $0x78] sm:$0xff] %vm6637_vm1, %v6554_v38  ;;  %v6192_v41 = vmax.f32 %v6191_v37, %v5603_v39  ;;  %v3512_v37 = vld [vmem:[%s8132_s10 + $0x438] sm:$0xff] }
 0x2b0   : > { %v6193_v44 = vmax.f32 %v6192_v41, %v5897_v40 }
 0x2b1   : > { %v5018_v45 = vpop.f32.mrf.mxu0  ;;  %v5312_v46 = vpop.f32.mrf.mxu1 }
 0x2b2   : > { %v6457_v49 = vadd.f32 %v8275_v22, %v6193_v44  ;;  %7043 = vmatmul.msk.f32.gmra.mxu2 %vm3773_vm0, %v3606_v42  ;;  %v6194_v50 = vmax.f32 %v5018_v45, %v5312_v46  ;;  %7141 = vmatmul.msk.f32.gmra.mxu3 %vm3773_vm0, %v3704_v43  ;;  %v3611_v44 = vld [vmem:[%s8132_s10 + $0x750] sm:$0xff]  ;;  %v3709_v45 = vld [vmem:[%s8132_s10 + $0xa60] sm:$0xff] }
 0x2b4   : > { %v6555_v51 = vmax.f32 %v6457_v49, 0.0  ;;  %6847 = vmatmul.msk.f32.gmra.mxu0 %vm3773_vm0, %v3410_v47  ;;  %6945 = vmatmul.msk.f32.gmra.mxu1 %vm3773_vm0, %v3508_v48  ;;  %v3415_v49 = vld [vmem:[%s8132_s10 + $0x130] sm:$0xff] }
 0x2b5   : > { %v5606_v52 = vpop.f32.mrf.mxu2  ;;  %v5900_v53 = vpop.f32.mrf.mxu3 }
 0x2b6   : > { %6654 = vst.msk [vmem:[%s8287_s20 + $0x80] sm:$0xff] %vm6637_vm1, %v6555_v51  ;;  %v6195_v54 = vmax.f32 %v6194_v50, %v5606_v52  ;;  %v3513_v50 = vld [vmem:[%s8132_s10 + $0x440] sm:$0xff] }
 0x2b8   : > { %v6196_v57 = vmax.f32 %v6195_v54, %v5900_v53 }
 0x2b9   : > { %v5021_v58 = vpop.f32.mrf.mxu0  ;;  %v5315_v59 = vpop.f32.mrf.mxu1 }
 0x2ba   : > { %v6458_v62 = vadd.f32 %v8275_v22, %v6196_v57  ;;  %7044 = vmatmul.msk.f32.gmra.mxu2 %vm3773_vm0, %v3607_v55  ;;  %v6197_v63 = vmax.f32 %v5021_v58, %v5315_v59  ;;  %7142 = vmatmul.msk.f32.gmra.mxu3 %vm3773_vm0, %v3705_v56  ;;  %v3612_v57 = vld [vmem:[%s8132_s10 + $0x758] sm:$0xff]  ;;  %v3710_v58 = vld [vmem:[%s8132_s10 + $0xa68] sm:$0xff] }
 0x2bc   : > { %v6556_v0 = vmax.f32 %v6458_v62, 0.0  ;;  %6848 = vmatmul.msk.f32.gmra.mxu0 %vm3773_vm0, %v3411_v60  ;;  %6946 = vmatmul.msk.f32.gmra.mxu1 %vm3773_vm0, %v3509_v61  ;;  %v3416_v62 = vld [vmem:[%s8132_s10 + $0x138] sm:$0xff] }
 0x2bd   : > { %v5609_v1 = vpop.f32.mrf.mxu2  ;;  %v5903_v2 = vpop.f32.mrf.mxu3 }
 0x2be   : > { %6655 = vst.msk [vmem:[%s8287_s20 + $0x88] sm:$0xff] %vm6637_vm1, %v6556_v0  ;;  %v6198_v3 = vmax.f32 %v6197_v63, %v5609_v1  ;;  %v3514_v63 = vld [vmem:[%s8132_s10 + $0x448] sm:$0xff] }
 0x2c0   : > { %v6199_v6 = vmax.f32 %v6198_v3, %v5903_v2 }
 0x2c1   : > { %v5024_v7 = vpop.f32.mrf.mxu0  ;;  %v5318_v8 = vpop.f32.mrf.mxu1 }
 0x2c2   : > { %v6459_v11 = vadd.f32 %v8275_v22, %v6199_v6  ;;  %7045 = vmatmul.msk.f32.gmra.mxu2 %vm3773_vm0, %v3608_v4  ;;  %v6200_v12 = vmax.f32 %v5024_v7, %v5318_v8  ;;  %7143 = vmatmul.msk.f32.gmra.mxu3 %vm3773_vm0, %v3706_v5  ;;  %v3613_v6 = vld [vmem:[%s8132_s10 + $0x760] sm:$0xff]  ;;  %v3711_v7 = vld [vmem:[%s8132_s10 + $0xa70] sm:$0xff] }
 0x2c4   : > { %v6557_v13 = vmax.f32 %v6459_v11, 0.0  ;;  %6849 = vmatmul.msk.f32.gmra.mxu0 %vm3773_vm0, %v3412_v9  ;;  %6947 = vmatmul.msk.f32.gmra.mxu1 %vm3773_vm0, %v3510_v10  ;;  %v3417_v11 = vld [vmem:[%s8132_s10 + $0x140] sm:$0xff] }
 0x2c5   : > { %v5612_v14 = vpop.f32.mrf.mxu2  ;;  %v5906_v15 = vpop.f32.mrf.mxu3 }
 0x2c6   : > { %6656 = vst.msk [vmem:[%s8287_s20 + $0x90] sm:$0xff] %vm6637_vm1, %v6557_v13  ;;  %v6201_v16 = vmax.f32 %v6200_v12, %v5612_v14  ;;  %v3515_v12 = vld [vmem:[%s8132_s10 + $0x450] sm:$0xff] }
 0x2c8   : > { %v6202_v19 = vmax.f32 %v6201_v16, %v5906_v15 }
 0x2c9   : > { %v5027_v20 = vpop.f32.mrf.mxu0  ;;  %v5321_v21 = vpop.f32.mrf.mxu1 }
 0x2ca   : > { %v6460_v25 = vadd.f32 %v8275_v22, %v6202_v19  ;;  %7046 = vmatmul.msk.f32.gmra.mxu2 %vm3773_vm0, %v3609_v17  ;;  %v6203_v26 = vmax.f32 %v5027_v20, %v5321_v21  ;;  %7144 = vmatmul.msk.f32.gmra.mxu3 %vm3773_vm0, %v3707_v18  ;;  %v3614_v19 = vld [vmem:[%s8132_s10 + $0x768] sm:$0xff]  ;;  %v3712_v20 = vld [vmem:[%s8132_s10 + $0xa78] sm:$0xff] }
 0x2cc   : > { %v6558_v27 = vmax.f32 %v6460_v25, 0.0  ;;  %6850 = vmatmul.msk.f32.gmra.mxu0 %vm3773_vm0, %v3413_v23  ;;  %6948 = vmatmul.msk.f32.gmra.mxu1 %vm3773_vm0, %v3511_v24  ;;  %v3418_v25 = vld [vmem:[%s8132_s10 + $0x148] sm:$0xff] }
 0x2cd   : > { %v5615_v28 = vpop.f32.mrf.mxu2  ;;  %v5909_v29 = vpop.f32.mrf.mxu3 }
 0x2ce   : > { %6657 = vst.msk [vmem:[%s8287_s20 + $0x98] sm:$0xff] %vm6637_vm1, %v6558_v27  ;;  %v6204_v30 = vmax.f32 %v6203_v26, %v5615_v28  ;;  %v3516_v26 = vld [vmem:[%s8132_s10 + $0x458] sm:$0xff] }
 0x2d0   : > { %v6205_v33 = vmax.f32 %v6204_v30, %v5909_v29 }
 0x2d1   : > { %v5030_v34 = vpop.f32.mrf.mxu0  ;;  %v5324_v35 = vpop.f32.mrf.mxu1 }
 0x2d2   : > { %v6461_v38 = vadd.f32 %v8275_v22, %v6205_v33  ;;  %7047 = vmatmul.msk.f32.gmra.mxu2 %vm3773_vm0, %v3610_v31  ;;  %v6206_v39 = vmax.f32 %v5030_v34, %v5324_v35  ;;  %7145 = vmatmul.msk.f32.gmra.mxu3 %vm3773_vm0, %v3708_v32  ;;  %v3615_v33 = vld [vmem:[%s8132_s10 + $0x770] sm:$0xff]  ;;  %v3713_v34 = vld [vmem:[%s8132_s10 + $0xa80] sm:$0xff] }
 0x2d4   : > { %v6559_v40 = vmax.f32 %v6461_v38, 0.0  ;;  %6851 = vmatmul.msk.f32.gmra.mxu0 %vm3773_vm0, %v3414_v36  ;;  %6949 = vmatmul.msk.f32.gmra.mxu1 %vm3773_vm0, %v3512_v37  ;;  %v3419_v38 = vld [vmem:[%s8132_s10 + $0x150] sm:$0xff] }
 0x2d5   : > { %v5618_v41 = vpop.f32.mrf.mxu2  ;;  %v5912_v42 = vpop.f32.mrf.mxu3 }
 0x2d6   : > { %6658 = vst.msk [vmem:[%s8287_s20 + $0xa0] sm:$0xff] %vm6637_vm1, %v6559_v40  ;;  %v6207_v43 = vmax.f32 %v6206_v39, %v5618_v41  ;;  %v3517_v39 = vld [vmem:[%s8132_s10 + $0x460] sm:$0xff] }
 0x2d8   : > { %v6208_v46 = vmax.f32 %v6207_v43, %v5912_v42 }
 0x2d9   : > { %v5033_v47 = vpop.f32.mrf.mxu0  ;;  %v5327_v48 = vpop.f32.mrf.mxu1 }
 0x2da   : > { %v6462_v51 = vadd.f32 %v8275_v22, %v6208_v46  ;;  %7048 = vmatmul.msk.f32.gmra.mxu2 %vm3773_vm0, %v3611_v44  ;;  %v6209_v52 = vmax.f32 %v5033_v47, %v5327_v48  ;;  %7146 = vmatmul.msk.f32.gmra.mxu3 %vm3773_vm0, %v3709_v45  ;;  %v3616_v46 = vld [vmem:[%s8132_s10 + $0x778] sm:$0xff]  ;;  %v3714_v47 = vld [vmem:[%s8132_s10 + $0xa88] sm:$0xff] }
 0x2dc   : > { %v6560_v53 = vmax.f32 %v6462_v51, 0.0  ;;  %6852 = vmatmul.msk.f32.gmra.mxu0 %vm3773_vm0, %v3415_v49  ;;  %6950 = vmatmul.msk.f32.gmra.mxu1 %vm3773_vm0, %v3513_v50  ;;  %v3420_v51 = vld [vmem:[%s8132_s10 + $0x158] sm:$0xff] }
 0x2dd   : > { %v5621_v54 = vpop.f32.mrf.mxu2  ;;  %v5915_v55 = vpop.f32.mrf.mxu3 }
 0x2de   : > { %6659 = vst.msk [vmem:[%s8287_s20 + $0xa8] sm:$0xff] %vm6637_vm1, %v6560_v53  ;;  %v6210_v56 = vmax.f32 %v6209_v52, %v5621_v54  ;;  %v3518_v52 = vld [vmem:[%s8132_s10 + $0x468] sm:$0xff] }
 0x2e0   : > { %v6211_v59 = vmax.f32 %v6210_v56, %v5915_v55 }
 0x2e1   : > { %v5036_v60 = vpop.f32.mrf.mxu0  ;;  %v5330_v61 = vpop.f32.mrf.mxu1 }
 0x2e2   : > { %v6463_v0 = vadd.f32 %v8275_v22, %v6211_v59  ;;  %7049 = vmatmul.msk.f32.gmra.mxu2 %vm3773_vm0, %v3612_v57  ;;  %v6212_v1 = vmax.f32 %v5036_v60, %v5330_v61  ;;  %7147 = vmatmul.msk.f32.gmra.mxu3 %vm3773_vm0, %v3710_v58  ;;  %v3617_v59 = vld [vmem:[%s8132_s10 + $0x780] sm:$0xff]  ;;  %v3715_v60 = vld [vmem:[%s8132_s10 + $0xa90] sm:$0xff] }
 0x2e4   : > { %v6561_v2 = vmax.f32 %v6463_v0, 0.0  ;;  %6853 = vmatmul.msk.f32.gmra.mxu0 %vm3773_vm0, %v3416_v62  ;;  %6951 = vmatmul.msk.f32.gmra.mxu1 %vm3773_vm0, %v3514_v63  ;;  %v3421_v0 = vld [vmem:[%s8132_s10 + $0x160] sm:$0xff] }
 0x2e5   : > { %v5624_v3 = vpop.f32.mrf.mxu2  ;;  %v5918_v4 = vpop.f32.mrf.mxu3 }
 0x2e6   : > { %6660 = vst.msk [vmem:[%s8287_s20 + $0xb0] sm:$0xff] %vm6637_vm1, %v6561_v2  ;;  %v6213_v5 = vmax.f32 %v6212_v1, %v5624_v3  ;;  %v3519_v1 = vld [vmem:[%s8132_s10 + $0x470] sm:$0xff] }
 0x2e8   : > { %v6214_v8 = vmax.f32 %v6213_v5, %v5918_v4 }
 0x2e9   : > { %v5039_v9 = vpop.f32.mrf.mxu0  ;;  %v5333_v10 = vpop.f32.mrf.mxu1 }
 0x2ea   : > { %v6464_v13 = vadd.f32 %v8275_v22, %v6214_v8  ;;  %7050 = vmatmul.msk.f32.gmra.mxu2 %vm3773_vm0, %v3613_v6  ;;  %v6215_v14 = vmax.f32 %v5039_v9, %v5333_v10  ;;  %7148 = vmatmul.msk.f32.gmra.mxu3 %vm3773_vm0, %v3711_v7  ;;  %v3618_v8 = vld [vmem:[%s8132_s10 + $0x788] sm:$0xff]  ;;  %v3716_v9 = vld [vmem:[%s8132_s10 + $0xa98] sm:$0xff] }
 0x2ec   : > { %v6562_v15 = vmax.f32 %v6464_v13, 0.0  ;;  %6854 = vmatmul.msk.f32.gmra.mxu0 %vm3773_vm0, %v3417_v11  ;;  %6952 = vmatmul.msk.f32.gmra.mxu1 %vm3773_vm0, %v3515_v12  ;;  %v3422_v12 = vld [vmem:[%s8132_s10 + $0x168] sm:$0xff]  ;;  %v3520_v13 = vld [vmem:[%s8132_s10 + $0x478] sm:$0xff] }
 0x2ed   : > { %v5627_v16 = vpop.f32.mrf.mxu2  ;;  %v5921_v17 = vpop.f32.mrf.mxu3 }
 0x2ee   : > { %6661 = vst.msk [vmem:[%s8287_s20 + $0xb8] sm:$0xff] %vm6637_vm1, %v6562_v15  ;;  %v6216_v18 = vmax.f32 %v6215_v14, %v5627_v16  ;;  %v8597_v14 = vld [vmem:[%s9251_s2] ss:$0 sm:$0xff] }
 0x2f0   : > { %v6217_v21 = vmax.f32 %v6216_v18, %v5921_v17 }
 0x2f1   : > { %v5042_v23 = vpop.f32.mrf.mxu0  ;;  %v5336_v24 = vpop.f32.mrf.mxu1 }
 0x2f2   : > { %v6465_v27 = vadd.f32 %v8275_v22, %v6217_v21  ;;  %7051 = vmatmul.msk.f32.gmra.mxu2 %vm3773_vm0, %v3614_v19  ;;  %v6218_v28 = vmax.f32 %v5042_v23, %v5336_v24  ;;  %7149 = vmatmul.msk.f32.gmra.mxu3 %vm3773_vm0, %v3712_v20  ;;  %v3619_v21 = vld [vmem:[%s8132_s10 + $0x790] sm:$0xff]  ;;  %v3717_v23 = vld [vmem:[%s8132_s10 + $0xaa0] sm:$0xff] }
 0x2f4   : > { %v6563_v29 = vmax.f32 %v6465_v27, 0.0  ;;  %6855 = vmatmul.msk.f32.gmra.mxu0 %vm3773_vm0, %v3418_v25  ;;  %6953 = vmatmul.msk.f32.gmra.mxu1 %vm3773_vm0, %v3516_v26  ;;  %v3423_v27 = vld [vmem:[%s8132_s10 + $0x170] sm:$0xff] }
 0x2f5   : > { %v5630_v30 = vpop.f32.mrf.mxu2  ;;  %v5924_v31 = vpop.f32.mrf.mxu3 }
 0x2f6   : > { %6662 = vst.msk [vmem:[%s8287_s20 + $0xc0] sm:$0xff] %vm6637_vm1, %v6563_v29  ;;  %v6219_v32 = vmax.f32 %v6218_v28, %v5630_v30  ;;  %v3521_v28 = vld [vmem:[%s8132_s10 + $0x480] sm:$0xff] }
 0x2f8   : > { %v6220_v35 = vmax.f32 %v6219_v32, %v5924_v31 }
 0x2f9   : > { %v5045_v36 = vpop.f32.mrf.mxu0  ;;  %v5339_v37 = vpop.f32.mrf.mxu1 }
 0x2fa   : > { %v6466_v40 = vadd.f32 %v8275_v22, %v6220_v35  ;;  %7052 = vmatmul.msk.f32.gmra.mxu2 %vm3773_vm0, %v3615_v33  ;;  %v6221_v41 = vmax.f32 %v5045_v36, %v5339_v37  ;;  %7150 = vmatmul.msk.f32.gmra.mxu3 %vm3773_vm0, %v3713_v34  ;;  %v3620_v35 = vld [vmem:[%s8132_s10 + $0x798] sm:$0xff]  ;;  %v3718_v36 = vld [vmem:[%s8132_s10 + $0xaa8] sm:$0xff] }
 0x2fc   : > { %v6564_v42 = vmax.f32 %v6466_v40, 0.0  ;;  %6856 = vmatmul.msk.f32.gmra.mxu0 %vm3773_vm0, %v3419_v38  ;;  %6954 = vmatmul.msk.f32.gmra.mxu1 %vm3773_vm0, %v3517_v39  ;;  %v3424_v40 = vld [vmem:[%s8132_s10 + $0x178] sm:$0xff] }
 0x2fd   : > { %v5633_v43 = vpop.f32.mrf.mxu2  ;;  %v5927_v44 = vpop.f32.mrf.mxu3 }
 0x2fe   : > { %6663 = vst.msk [vmem:[%s8287_s20 + $0xc8] sm:$0xff] %vm6637_vm1, %v6564_v42  ;;  %v6222_v45 = vmax.f32 %v6221_v41, %v5633_v43  ;;  %v3522_v41 = vld [vmem:[%s8132_s10 + $0x488] sm:$0xff] }
 0x300   : > { %v6223_v48 = vmax.f32 %v6222_v45, %v5927_v44 }
 0x301   : > { %v5048_v49 = vpop.f32.mrf.mxu0  ;;  %v5342_v50 = vpop.f32.mrf.mxu1 }
 0x302   : > { %v6467_v53 = vadd.f32 %v8275_v22, %v6223_v48  ;;  %7053 = vmatmul.msk.f32.gmra.mxu2 %vm3773_vm0, %v3616_v46  ;;  %v6224_v54 = vmax.f32 %v5048_v49, %v5342_v50  ;;  %7151 = vmatmul.msk.f32.gmra.mxu3 %vm3773_vm0, %v3714_v47  ;;  %v3621_v48 = vld [vmem:[%s8132_s10 + $0x7a0] sm:$0xff]  ;;  %v3719_v49 = vld [vmem:[%s8132_s10 + $0xab0] sm:$0xff] }
 0x304   : > { %v6565_v55 = vmax.f32 %v6467_v53, 0.0  ;;  %6857 = vmatmul.msk.f32.gmra.mxu0 %vm3773_vm0, %v3420_v51  ;;  %6955 = vmatmul.msk.f32.gmra.mxu1 %vm3773_vm0, %v3518_v52  ;;  %v3425_v53 = vld [vmem:[%s8132_s10 + $0x180] sm:$0xff] }
 0x305   : > { %v5636_v56 = vpop.f32.mrf.mxu2  ;;  %v5930_v57 = vpop.f32.mrf.mxu3 }
 0x306   : > { %6664 = vst.msk [vmem:[%s8287_s20 + $0xd0] sm:$0xff] %vm6637_vm1, %v6565_v55  ;;  %v6225_v58 = vmax.f32 %v6224_v54, %v5636_v56  ;;  %v3523_v54 = vld [vmem:[%s8132_s10 + $0x490] sm:$0xff] }
 0x308   : > { %v6226_v61 = vmax.f32 %v6225_v58, %v5930_v57 }
 0x309   : > { %v5051_v62 = vpop.f32.mrf.mxu0  ;;  %v5345_v63 = vpop.f32.mrf.mxu1 }
 0x30a   : > { %v6468_v2 = vadd.f32 %v8275_v22, %v6226_v61  ;;  %7054 = vmatmul.msk.f32.gmra.mxu2 %vm3773_vm0, %v3617_v59  ;;  %v6227_v3 = vmax.f32 %v5051_v62, %v5345_v63  ;;  %7152 = vmatmul.msk.f32.gmra.mxu3 %vm3773_vm0, %v3715_v60  ;;  %v3622_v61 = vld [vmem:[%s8132_s10 + $0x7a8] sm:$0xff]  ;;  %v3720_v62 = vld [vmem:[%s8132_s10 + $0xab8] sm:$0xff] }
 0x30c   : > { %v6566_v4 = vmax.f32 %v6468_v2, 0.0  ;;  %6858 = vmatmul.msk.f32.gmra.mxu0 %vm3773_vm0, %v3421_v0  ;;  %6956 = vmatmul.msk.f32.gmra.mxu1 %vm3773_vm0, %v3519_v1  ;;  %v3426_v2 = vld [vmem:[%s8132_s10 + $0x188] sm:$0xff] }
 0x30d   : > { %v5639_v5 = vpop.f32.mrf.mxu2  ;;  %v5933_v6 = vpop.f32.mrf.mxu3 }
 0x30e   : > { %6665 = vst.msk [vmem:[%s8287_s20 + $0xd8] sm:$0xff] %vm6637_vm1, %v6566_v4  ;;  %v6228_v7 = vmax.f32 %v6227_v3, %v5639_v5  ;;  %v3524_v3 = vld [vmem:[%s8132_s10 + $0x498] sm:$0xff] }
 0x310   : > { %v6229_v22 = vmax.f32 %v6228_v7, %v5933_v6 }
 0x311   : > { %v5054_v10 = vpop.f32.mrf.mxu0  ;;  %v5348_v11 = vpop.f32.mrf.mxu1 }
 0x312   : > { %v6469_v15 = vadd.f32 %v8597_v14, %v6229_v22  ;;  %7055 = vmatmul.msk.f32.gmra.mxu2 %vm3773_vm0, %v3618_v8  ;;  %v6230_v16 = vmax.f32 %v5054_v10, %v5348_v11  ;;  %7153 = vmatmul.msk.f32.gmra.mxu3 %vm3773_vm0, %v3716_v9  ;;  %v3623_v22 = vld [vmem:[%s8132_s10 + $0x7b0] sm:$0xff]  ;;  %v3721_v10 = vld [vmem:[%s8132_s10 + $0xac0] sm:$0xff] }
 0x314   : > { %v6567_v17 = vmax.f32 %v6469_v15, 0.0  ;;  %6859 = vmatmul.msk.f32.gmra.mxu0 %vm3773_vm0, %v3422_v12  ;;  %6957 = vmatmul.msk.f32.gmra.mxu1 %vm3773_vm0, %v3520_v13  ;;  %v3427_v15 = vld [vmem:[%s8132_s10 + $0x190] sm:$0xff] }
 0x315   : > { %v5642_v18 = vpop.f32.mrf.mxu2  ;;  %v5936_v19 = vpop.f32.mrf.mxu3 }
 0x316   : > { %6666 = vst.msk [vmem:[%s8287_s20 + $0xe0] sm:$0xff] %vm6637_vm1, %v6567_v17  ;;  %v6231_v20 = vmax.f32 %v6230_v16, %v5642_v18  ;;  %v3525_v16 = vld [vmem:[%s8132_s10 + $0x4a0] sm:$0xff] }
 0x318   : > { %v6232_v24 = vmax.f32 %v6231_v20, %v5936_v19 }
 0x319   : > { %v5057_v25 = vpop.f32.mrf.mxu0  ;;  %v5351_v26 = vpop.f32.mrf.mxu1 }
 0x31a   : > { %v6470_v29 = vadd.f32 %v8597_v14, %v6232_v24  ;;  %7056 = vmatmul.msk.f32.gmra.mxu2 %vm3773_vm0, %v3619_v21  ;;  %v6233_v30 = vmax.f32 %v5057_v25, %v5351_v26  ;;  %7154 = vmatmul.msk.f32.gmra.mxu3 %vm3773_vm0, %v3717_v23  ;;  %v3624_v24 = vld [vmem:[%s8132_s10 + $0x7b8] sm:$0xff]  ;;  %v3722_v25 = vld [vmem:[%s8132_s10 + $0xac8] sm:$0xff] }
 0x31c   : > { %v6568_v31 = vmax.f32 %v6470_v29, 0.0  ;;  %6860 = vmatmul.msk.f32.gmra.mxu0 %vm3773_vm0, %v3423_v27  ;;  %6958 = vmatmul.msk.f32.gmra.mxu1 %vm3773_vm0, %v3521_v28  ;;  %v3428_v29 = vld [vmem:[%s8132_s10 + $0x198] sm:$0xff] }
 0x31d   : > { %v5645_v32 = vpop.f32.mrf.mxu2  ;;  %v5939_v33 = vpop.f32.mrf.mxu3 }
 0x31e   : > { %6667 = vst.msk [vmem:[%s8287_s20 + $0xe8] sm:$0xff] %vm6637_vm1, %v6568_v31  ;;  %v6234_v34 = vmax.f32 %v6233_v30, %v5645_v32  ;;  %v3526_v30 = vld [vmem:[%s8132_s10 + $0x4a8] sm:$0xff] }
 0x320   : > { %v6235_v37 = vmax.f32 %v6234_v34, %v5939_v33 }
 0x321   : > { %v5060_v38 = vpop.f32.mrf.mxu0  ;;  %v5354_v39 = vpop.f32.mrf.mxu1 }
 0x322   : > { %v6471_v42 = vadd.f32 %v8597_v14, %v6235_v37  ;;  %7057 = vmatmul.msk.f32.gmra.mxu2 %vm3773_vm0, %v3620_v35  ;;  %v6236_v43 = vmax.f32 %v5060_v38, %v5354_v39  ;;  %7155 = vmatmul.msk.f32.gmra.mxu3 %vm3773_vm0, %v3718_v36  ;;  %v3625_v37 = vld [vmem:[%s8132_s10 + $0x7c0] sm:$0xff]  ;;  %v3723_v38 = vld [vmem:[%s8132_s10 + $0xad0] sm:$0xff] }
 0x324   : > { %v6569_v44 = vmax.f32 %v6471_v42, 0.0  ;;  %6861 = vmatmul.msk.f32.gmra.mxu0 %vm3773_vm0, %v3424_v40  ;;  %6959 = vmatmul.msk.f32.gmra.mxu1 %vm3773_vm0, %v3522_v41  ;;  %v3429_v42 = vld [vmem:[%s8132_s10 + $0x1a0] sm:$0xff] }
 0x325   : > { %v5648_v45 = vpop.f32.mrf.mxu2  ;;  %v5942_v46 = vpop.f32.mrf.mxu3 }
 0x326   : > { %6668 = vst.msk [vmem:[%s8287_s20 + $0xf0] sm:$0xff] %vm6637_vm1, %v6569_v44  ;;  %v6237_v47 = vmax.f32 %v6236_v43, %v5648_v45  ;;  %v3527_v43 = vld [vmem:[%s8132_s10 + $0x4b0] sm:$0xff] }
 0x328   : > { %v6238_v50 = vmax.f32 %v6237_v47, %v5942_v46 }
 0x329   : > { %v5063_v51 = vpop.f32.mrf.mxu0  ;;  %v5357_v52 = vpop.f32.mrf.mxu1 }
 0x32a   : > { %v6472_v55 = vadd.f32 %v8597_v14, %v6238_v50  ;;  %7058 = vmatmul.msk.f32.gmra.mxu2 %vm3773_vm0, %v3621_v48  ;;  %v6239_v56 = vmax.f32 %v5063_v51, %v5357_v52  ;;  %7156 = vmatmul.msk.f32.gmra.mxu3 %vm3773_vm0, %v3719_v49  ;;  %v3626_v50 = vld [vmem:[%s8132_s10 + $0x7c8] sm:$0xff]  ;;  %v3724_v51 = vld [vmem:[%s8132_s10 + $0xad8] sm:$0xff] }
 0x32c   : > { %v6570_v57 = vmax.f32 %v6472_v55, 0.0  ;;  %6862 = vmatmul.msk.f32.gmra.mxu0 %vm3773_vm0, %v3425_v53  ;;  %6960 = vmatmul.msk.f32.gmra.mxu1 %vm3773_vm0, %v3523_v54  ;;  %v3430_v55 = vld [vmem:[%s8132_s10 + $0x1a8] sm:$0xff] }
 0x32d   : > { %v5651_v58 = vpop.f32.mrf.mxu2  ;;  %v5945_v59 = vpop.f32.mrf.mxu3 }
 0x32e   : > { %6669 = vst.msk [vmem:[%s8287_s20 + $0xf8] sm:$0xff] %vm6637_vm1, %v6570_v57  ;;  %v6240_v60 = vmax.f32 %v6239_v56, %v5651_v58  ;;  %v3528_v56 = vld [vmem:[%s8132_s10 + $0x4b8] sm:$0xff] }
 0x330   : > { %v6241_v63 = vmax.f32 %v6240_v60, %v5945_v59 }
 0x331   : > { %v5066_v0 = vpop.f32.mrf.mxu0  ;;  %v5360_v1 = vpop.f32.mrf.mxu1 }
 0x332   : > { %v6473_v4 = vadd.f32 %v8597_v14, %v6241_v63  ;;  %7059 = vmatmul.msk.f32.gmra.mxu2 %vm3773_vm0, %v3622_v61  ;;  %v6242_v5 = vmax.f32 %v5066_v0, %v5360_v1  ;;  %7157 = vmatmul.msk.f32.gmra.mxu3 %vm3773_vm0, %v3720_v62  ;;  %v3627_v63 = vld [vmem:[%s8132_s10 + $0x7d0] sm:$0xff]  ;;  %v3725_v0 = vld [vmem:[%s8132_s10 + $0xae0] sm:$0xff] }
 0x334   : > { %v6571_v6 = vmax.f32 %v6473_v4, 0.0  ;;  %6863 = vmatmul.msk.f32.gmra.mxu0 %vm3773_vm0, %v3426_v2  ;;  %6961 = vmatmul.msk.f32.gmra.mxu1 %vm3773_vm0, %v3524_v3  ;;  %v3431_v4 = vld [vmem:[%s8132_s10 + $0x1b0] sm:$0xff] }
 0x335   : > { %v5654_v7 = vpop.f32.mrf.mxu2  ;;  %v5948_v8 = vpop.f32.mrf.mxu3 }
 0x336   : > { %6670 = vst.msk [vmem:[%s8287_s20 + $0x100] sm:$0xff] %vm6637_vm1, %v6571_v6  ;;  %v6243_v9 = vmax.f32 %v6242_v5, %v5654_v7  ;;  %v3529_v5 = vld [vmem:[%s8132_s10 + $0x4c0] sm:$0xff] }
 0x338   : > { %v6244_v11 = vmax.f32 %v6243_v9, %v5948_v8 }
 0x339   : > { %v5069_v12 = vpop.f32.mrf.mxu0  ;;  %v5363_v13 = vpop.f32.mrf.mxu1 }
 0x33a   : > { %v6474_v17 = vadd.f32 %v8597_v14, %v6244_v11  ;;  %7060 = vmatmul.msk.f32.gmra.mxu2 %vm3773_vm0, %v3623_v22  ;;  %v6245_v18 = vmax.f32 %v5069_v12, %v5363_v13  ;;  %7158 = vmatmul.msk.f32.gmra.mxu3 %vm3773_vm0, %v3721_v10  ;;  %v3628_v11 = vld [vmem:[%s8132_s10 + $0x7d8] sm:$0xff]  ;;  %v3726_v12 = vld [vmem:[%s8132_s10 + $0xae8] sm:$0xff] }
 0x33c   : > { %v6572_v19 = vmax.f32 %v6474_v17, 0.0  ;;  %6864 = vmatmul.msk.f32.gmra.mxu0 %vm3773_vm0, %v3427_v15  ;;  %6962 = vmatmul.msk.f32.gmra.mxu1 %vm3773_vm0, %v3525_v16  ;;  %v3432_v17 = vld [vmem:[%s8132_s10 + $0x1b8] sm:$0xff] }
 0x33d   : > { %v5657_v20 = vpop.f32.mrf.mxu2  ;;  %v5951_v21 = vpop.f32.mrf.mxu3 }
 0x33e   : > { %6671 = vst.msk [vmem:[%s8287_s20 + $0x108] sm:$0xff] %vm6637_vm1, %v6572_v19  ;;  %v6246_v23 = vmax.f32 %v6245_v18, %v5657_v20  ;;  %v3530_v18 = vld [vmem:[%s8132_s10 + $0x4c8] sm:$0xff] }
 0x340   : > { %v6247_v26 = vmax.f32 %v6246_v23, %v5951_v21 }
 0x341   : > { %v5072_v27 = vpop.f32.mrf.mxu0  ;;  %v5366_v28 = vpop.f32.mrf.mxu1 }
 0x342   : > { %v6475_v31 = vadd.f32 %v8597_v14, %v6247_v26  ;;  %7061 = vmatmul.msk.f32.gmra.mxu2 %vm3773_vm0, %v3624_v24  ;;  %v6248_v32 = vmax.f32 %v5072_v27, %v5366_v28  ;;  %7159 = vmatmul.msk.f32.gmra.mxu3 %vm3773_vm0, %v3722_v25  ;;  %v3629_v26 = vld [vmem:[%s8132_s10 + $0x7e0] sm:$0xff]  ;;  %v3727_v27 = vld [vmem:[%s8132_s10 + $0xaf0] sm:$0xff] }
 0x344   : > { %v6573_v33 = vmax.f32 %v6475_v31, 0.0  ;;  %6865 = vmatmul.msk.f32.gmra.mxu0 %vm3773_vm0, %v3428_v29  ;;  %6963 = vmatmul.msk.f32.gmra.mxu1 %vm3773_vm0, %v3526_v30  ;;  %v3433_v31 = vld [vmem:[%s8132_s10 + $0x1c0] sm:$0xff] }
 0x345   : > { %v5660_v34 = vpop.f32.mrf.mxu2  ;;  %v5954_v35 = vpop.f32.mrf.mxu3 }
 0x346   : > { %6672 = vst.msk [vmem:[%s8287_s20 + $0x110] sm:$0xff] %vm6637_vm1, %v6573_v33  ;;  %v6249_v36 = vmax.f32 %v6248_v32, %v5660_v34  ;;  %v3531_v32 = vld [vmem:[%s8132_s10 + $0x4d0] sm:$0xff] }
 0x348   : > { %v6250_v39 = vmax.f32 %v6249_v36, %v5954_v35 }
 0x349   : > { %v5075_v40 = vpop.f32.mrf.mxu0  ;;  %v5369_v41 = vpop.f32.mrf.mxu1 }
 0x34a   : > { %v6476_v44 = vadd.f32 %v8597_v14, %v6250_v39  ;;  %7062 = vmatmul.msk.f32.gmra.mxu2 %vm3773_vm0, %v3625_v37  ;;  %v6251_v45 = vmax.f32 %v5075_v40, %v5369_v41  ;;  %7160 = vmatmul.msk.f32.gmra.mxu3 %vm3773_vm0, %v3723_v38  ;;  %v3630_v39 = vld [vmem:[%s8132_s10 + $0x7e8] sm:$0xff]  ;;  %v3728_v40 = vld [vmem:[%s8132_s10 + $0xaf8] sm:$0xff] }
 0x34c   : > { %v6574_v46 = vmax.f32 %v6476_v44, 0.0  ;;  %6866 = vmatmul.msk.f32.gmra.mxu0 %vm3773_vm0, %v3429_v42  ;;  %6964 = vmatmul.msk.f32.gmra.mxu1 %vm3773_vm0, %v3527_v43  ;;  %v3434_v44 = vld [vmem:[%s8132_s10 + $0x1c8] sm:$0xff] }
 0x34d   : > { %v5663_v47 = vpop.f32.mrf.mxu2  ;;  %v5957_v48 = vpop.f32.mrf.mxu3 }
 0x34e   : > { %6673 = vst.msk [vmem:[%s8287_s20 + $0x118] sm:$0xff] %vm6637_vm1, %v6574_v46  ;;  %v6252_v49 = vmax.f32 %v6251_v45, %v5663_v47  ;;  %v3532_v45 = vld [vmem:[%s8132_s10 + $0x4d8] sm:$0xff] }
 0x350   : > { %v6253_v52 = vmax.f32 %v6252_v49, %v5957_v48 }
 0x351   : > { %v5078_v53 = vpop.f32.mrf.mxu0  ;;  %v5372_v54 = vpop.f32.mrf.mxu1 }
 0x352   : > { %v6477_v57 = vadd.f32 %v8597_v14, %v6253_v52  ;;  %7063 = vmatmul.msk.f32.gmra.mxu2 %vm3773_vm0, %v3626_v50  ;;  %v6254_v58 = vmax.f32 %v5078_v53, %v5372_v54  ;;  %7161 = vmatmul.msk.f32.gmra.mxu3 %vm3773_vm0, %v3724_v51  ;;  %v3631_v52 = vld [vmem:[%s8132_s10 + $0x7f0] sm:$0xff]  ;;  %v3729_v53 = vld [vmem:[%s8132_s10 + $0xb00] sm:$0xff] }
 0x354   : > { %v6575_v59 = vmax.f32 %v6477_v57, 0.0  ;;  %6867 = vmatmul.msk.f32.gmra.mxu0 %vm3773_vm0, %v3430_v55  ;;  %6965 = vmatmul.msk.f32.gmra.mxu1 %vm3773_vm0, %v3528_v56  ;;  %v3435_v57 = vld [vmem:[%s8132_s10 + $0x1d0] sm:$0xff] }
 0x355   : > { %v5666_v60 = vpop.f32.mrf.mxu2  ;;  %v5960_v61 = vpop.f32.mrf.mxu3 }
 0x356   : > { %6674 = vst.msk [vmem:[%s8287_s20 + $0x120] sm:$0xff] %vm6637_vm1, %v6575_v59  ;;  %v6255_v62 = vmax.f32 %v6254_v58, %v5666_v60  ;;  %v3533_v58 = vld [vmem:[%s8132_s10 + $0x4e0] sm:$0xff] }
 0x358   : > { %v6256_v1 = vmax.f32 %v6255_v62, %v5960_v61 }
 0x359   : > { %v5081_v2 = vpop.f32.mrf.mxu0  ;;  %v5375_v3 = vpop.f32.mrf.mxu1 }
 0x35a   : > { %v6478_v6 = vadd.f32 %v8597_v14, %v6256_v1  ;;  %7064 = vmatmul.msk.f32.gmra.mxu2 %vm3773_vm0, %v3627_v63  ;;  %v6257_v7 = vmax.f32 %v5081_v2, %v5375_v3  ;;  %7162 = vmatmul.msk.f32.gmra.mxu3 %vm3773_vm0, %v3725_v0  ;;  %v3632_v1 = vld [vmem:[%s8132_s10 + $0x7f8] sm:$0xff]  ;;  %v3730_v2 = vld [vmem:[%s8132_s10 + $0xb08] sm:$0xff] }
 0x35c   : > { %v6576_v8 = vmax.f32 %v6478_v6, 0.0  ;;  %6868 = vmatmul.msk.f32.gmra.mxu0 %vm3773_vm0, %v3431_v4  ;;  %6966 = vmatmul.msk.f32.gmra.mxu1 %vm3773_vm0, %v3529_v5  ;;  %v3436_v6 = vld [vmem:[%s8132_s10 + $0x1d8] sm:$0xff] }
 0x35d   : > { %v5669_v9 = vpop.f32.mrf.mxu2  ;;  %v5963_v22 = vpop.f32.mrf.mxu3 }
 0x35e   : > { %6675 = vst.msk [vmem:[%s8287_s20 + $0x128] sm:$0xff] %vm6637_vm1, %v6576_v8  ;;  %v6258_v10 = vmax.f32 %v6257_v7, %v5669_v9  ;;  %v3534_v7 = vld [vmem:[%s8132_s10 + $0x4e8] sm:$0xff] }
 0x360   : > { %v6259_v13 = vmax.f32 %v6258_v10, %v5963_v22 }
 0x361   : > { %v5084_v15 = vpop.f32.mrf.mxu0  ;;  %v5378_v16 = vpop.f32.mrf.mxu1 }
 0x362   : > { %v6479_v19 = vadd.f32 %v8597_v14, %v6259_v13  ;;  %7065 = vmatmul.msk.f32.gmra.mxu2 %vm3773_vm0, %v3628_v11  ;;  %v6260_v20 = vmax.f32 %v5084_v15, %v5378_v16  ;;  %7163 = vmatmul.msk.f32.gmra.mxu3 %vm3773_vm0, %v3726_v12  ;;  %v3633_v13 = vld [vmem:[%s8132_s10 + $0x800] sm:$0xff]  ;;  %v3731_v15 = vld [vmem:[%s8132_s10 + $0xb10] sm:$0xff] }
 0x364   : > { %v6577_v21 = vmax.f32 %v6479_v19, 0.0  ;;  %6869 = vmatmul.msk.f32.gmra.mxu0 %vm3773_vm0, %v3432_v17  ;;  %6967 = vmatmul.msk.f32.gmra.mxu1 %vm3773_vm0, %v3530_v18  ;;  %v3437_v19 = vld [vmem:[%s8132_s10 + $0x1e0] sm:$0xff] }
 0x365   : > { %v5672_v23 = vpop.f32.mrf.mxu2  ;;  %v5966_v24 = vpop.f32.mrf.mxu3 }
 0x366   : > { %6676 = vst.msk [vmem:[%s8287_s20 + $0x130] sm:$0xff] %vm6637_vm1, %v6577_v21  ;;  %v6261_v25 = vmax.f32 %v6260_v20, %v5672_v23  ;;  %v3535_v20 = vld [vmem:[%s8132_s10 + $0x4f0] sm:$0xff] }
 0x368   : > { %v6262_v28 = vmax.f32 %v6261_v25, %v5966_v24 }
 0x369   : > { %v5087_v29 = vpop.f32.mrf.mxu0  ;;  %v5381_v30 = vpop.f32.mrf.mxu1 }
 0x36a   : > { %v6480_v33 = vadd.f32 %v8597_v14, %v6262_v28  ;;  %7066 = vmatmul.msk.f32.gmra.mxu2 %vm3773_vm0, %v3629_v26  ;;  %v6263_v34 = vmax.f32 %v5087_v29, %v5381_v30  ;;  %7164 = vmatmul.msk.f32.gmra.mxu3 %vm3773_vm0, %v3727_v27  ;;  %v3634_v28 = vld [vmem:[%s8132_s10 + $0x808] sm:$0xff]  ;;  %v3732_v29 = vld [vmem:[%s8132_s10 + $0xb18] sm:$0xff] }
 0x36c   : > { %v6578_v35 = vmax.f32 %v6480_v33, 0.0  ;;  %6870 = vmatmul.msk.f32.gmra.mxu0 %vm3773_vm0, %v3433_v31  ;;  %6968 = vmatmul.msk.f32.gmra.mxu1 %vm3773_vm0, %v3531_v32  ;;  %v3438_v33 = vld [vmem:[%s8132_s10 + $0x1e8] sm:$0xff] }
 0x36d   : > { %v5675_v36 = vpop.f32.mrf.mxu2  ;;  %v5969_v37 = vpop.f32.mrf.mxu3 }
 0x36e   : > { %6677 = vst.msk [vmem:[%s8287_s20 + $0x138] sm:$0xff] %vm6637_vm1, %v6578_v35  ;;  %v6264_v38 = vmax.f32 %v6263_v34, %v5675_v36  ;;  %v3536_v34 = vld [vmem:[%s8132_s10 + $0x4f8] sm:$0xff] }
 0x370   : > { %v6265_v41 = vmax.f32 %v6264_v38, %v5969_v37 }
 0x371   : > { %v5090_v42 = vpop.f32.mrf.mxu0  ;;  %v5384_v43 = vpop.f32.mrf.mxu1 }
 0x372   : > { %v6481_v46 = vadd.f32 %v8597_v14, %v6265_v41  ;;  %7067 = vmatmul.msk.f32.gmra.mxu2 %vm3773_vm0, %v3630_v39  ;;  %v6266_v47 = vmax.f32 %v5090_v42, %v5384_v43  ;;  %7165 = vmatmul.msk.f32.gmra.mxu3 %vm3773_vm0, %v3728_v40  ;;  %v3635_v41 = vld [vmem:[%s8132_s10 + $0x810] sm:$0xff]  ;;  %v3733_v42 = vld [vmem:[%s8132_s10 + $0xb20] sm:$0xff] }
 0x374   : > { %v6579_v48 = vmax.f32 %v6481_v46, 0.0  ;;  %6871 = vmatmul.msk.f32.gmra.mxu0 %vm3773_vm0, %v3434_v44  ;;  %6969 = vmatmul.msk.f32.gmra.mxu1 %vm3773_vm0, %v3532_v45  ;;  %v3439_v46 = vld [vmem:[%s8132_s10 + $0x1f0] sm:$0xff] }
 0x375   : > { %v5678_v49 = vpop.f32.mrf.mxu2  ;;  %v5972_v50 = vpop.f32.mrf.mxu3 }
 0x376   : > { %6678 = vst.msk [vmem:[%s8287_s20 + $0x140] sm:$0xff] %vm6637_vm1, %v6579_v48  ;;  %v6267_v51 = vmax.f32 %v6266_v47, %v5678_v49  ;;  %v3537_v47 = vld [vmem:[%s8132_s10 + $0x500] sm:$0xff] }
 0x378   : > { %v6268_v54 = vmax.f32 %v6267_v51, %v5972_v50 }
 0x379   : > { %v5093_v55 = vpop.f32.mrf.mxu0  ;;  %v5387_v56 = vpop.f32.mrf.mxu1 }
 0x37a   : > { %v6482_v59 = vadd.f32 %v8597_v14, %v6268_v54  ;;  %7068 = vmatmul.msk.f32.gmra.mxu2 %vm3773_vm0, %v3631_v52  ;;  %v6269_v60 = vmax.f32 %v5093_v55, %v5387_v56  ;;  %7166 = vmatmul.msk.f32.gmra.mxu3 %vm3773_vm0, %v3729_v53  ;;  %v3636_v54 = vld [vmem:[%s8132_s10 + $0x818] sm:$0xff]  ;;  %v3734_v55 = vld [vmem:[%s8132_s10 + $0xb28] sm:$0xff] }
 0x37c   : > { %v6580_v61 = vmax.f32 %v6482_v59, 0.0  ;;  %6872 = vmatmul.msk.f32.gmra.mxu0 %vm3773_vm0, %v3435_v57  ;;  %6970 = vmatmul.msk.f32.gmra.mxu1 %vm3773_vm0, %v3533_v58  ;;  %v3440_v59 = vld [vmem:[%s8132_s10 + $0x1f8] sm:$0xff] }
 0x37d   : > { %v5681_v62 = vpop.f32.mrf.mxu2  ;;  %v5975_v63 = vpop.f32.mrf.mxu3 }
 0x37e   : > { %6679 = vst.msk [vmem:[%s8287_s20 + $0x148] sm:$0xff] %vm6637_vm1, %v6580_v61  ;;  %v6270_v0 = vmax.f32 %v6269_v60, %v5681_v62  ;;  %v3538_v60 = vld [vmem:[%s8132_s10 + $0x508] sm:$0xff] }
 0x380   : > { %v6271_v3 = vmax.f32 %v6270_v0, %v5975_v63 }
 0x381   : > { %v5096_v4 = vpop.f32.mrf.mxu0  ;;  %v5390_v5 = vpop.f32.mrf.mxu1 }
 0x382   : > { %v6483_v8 = vadd.f32 %v8597_v14, %v6271_v3  ;;  %7069 = vmatmul.msk.f32.gmra.mxu2 %vm3773_vm0, %v3632_v1  ;;  %v6272_v9 = vmax.f32 %v5096_v4, %v5390_v5  ;;  %7167 = vmatmul.msk.f32.gmra.mxu3 %vm3773_vm0, %v3730_v2  ;;  %v3637_v3 = vld [vmem:[%s8132_s10 + $0x820] sm:$0xff]  ;;  %v3735_v4 = vld [vmem:[%s8132_s10 + $0xb30] sm:$0xff] }
 0x384   : > { %v6581_v22 = vmax.f32 %v6483_v8, 0.0  ;;  %6873 = vmatmul.msk.f32.gmra.mxu0 %vm3773_vm0, %v3436_v6  ;;  %6971 = vmatmul.msk.f32.gmra.mxu1 %vm3773_vm0, %v3534_v7  ;;  %v3441_v8 = vld [vmem:[%s8132_s10 + $0x200] sm:$0xff] }
 0x385   : > { %v5684_v10 = vpop.f32.mrf.mxu2  ;;  %v5978_v11 = vpop.f32.mrf.mxu3 }
 0x386   : > { %6680 = vst.msk [vmem:[%s8287_s20 + $0x150] sm:$0xff] %vm6637_vm1, %v6581_v22  ;;  %v6273_v12 = vmax.f32 %v6272_v9, %v5684_v10  ;;  %v3539_v9 = vld [vmem:[%s8132_s10 + $0x510] sm:$0xff] }
 0x388   : > { %v6274_v16 = vmax.f32 %v6273_v12, %v5978_v11 }
 0x389   : > { %v5099_v17 = vpop.f32.mrf.mxu0  ;;  %v5393_v18 = vpop.f32.mrf.mxu1 }
 0x38a   : > { %v6484_v21 = vadd.f32 %v8597_v14, %v6274_v16  ;;  %7070 = vmatmul.msk.f32.gmra.mxu2 %vm3773_vm0, %v3633_v13  ;;  %v6275_v23 = vmax.f32 %v5099_v17, %v5393_v18  ;;  %7168 = vmatmul.msk.f32.gmra.mxu3 %vm3773_vm0, %v3731_v15  ;;  %v3638_v16 = vld [vmem:[%s8132_s10 + $0x828] sm:$0xff]  ;;  %v3736_v17 = vld [vmem:[%s8132_s10 + $0xb38] sm:$0xff] }
 0x38c   : > { %v6582_v24 = vmax.f32 %v6484_v21, 0.0  ;;  %6874 = vmatmul.msk.f32.gmra.mxu0 %vm3773_vm0, %v3437_v19  ;;  %6972 = vmatmul.msk.f32.gmra.mxu1 %vm3773_vm0, %v3535_v20  ;;  %v3442_v21 = vld [vmem:[%s8132_s10 + $0x208] sm:$0xff] }
 0x38d   : > { %v5687_v25 = vpop.f32.mrf.mxu2  ;;  %v5981_v26 = vpop.f32.mrf.mxu3 }
 0x38e   : > { %6681 = vst.msk [vmem:[%s8287_s20 + $0x158] sm:$0xff] %vm6637_vm1, %v6582_v24  ;;  %v6276_v27 = vmax.f32 %v6275_v23, %v5687_v25  ;;  %v3540_v23 = vld [vmem:[%s8132_s10 + $0x518] sm:$0xff] }
 0x390   : > { %v6277_v30 = vmax.f32 %v6276_v27, %v5981_v26 }
 0x391   : > { %v5102_v31 = vpop.f32.mrf.mxu0  ;;  %v5396_v32 = vpop.f32.mrf.mxu1 }
 0x392   : > { %v6485_v35 = vadd.f32 %v8597_v14, %v6277_v30  ;;  %7071 = vmatmul.msk.f32.gmra.mxu2 %vm3773_vm0, %v3634_v28  ;;  %v6278_v36 = vmax.f32 %v5102_v31, %v5396_v32  ;;  %7169 = vmatmul.msk.f32.gmra.mxu3 %vm3773_vm0, %v3732_v29  ;;  %v3639_v30 = vld [vmem:[%s8132_s10 + $0x830] sm:$0xff]  ;;  %v3737_v31 = vld [vmem:[%s8132_s10 + $0xb40] sm:$0xff] }
 0x394   : > { %v6583_v37 = vmax.f32 %v6485_v35, 0.0  ;;  %6875 = vmatmul.msk.f32.gmra.mxu0 %vm3773_vm0, %v3438_v33  ;;  %6973 = vmatmul.msk.f32.gmra.mxu1 %vm3773_vm0, %v3536_v34  ;;  %v3443_v35 = vld [vmem:[%s8132_s10 + $0x210] sm:$0xff] }
 0x395   : > { %v5690_v38 = vpop.f32.mrf.mxu2  ;;  %v5984_v39 = vpop.f32.mrf.mxu3 }
 0x396   : > { %6682 = vst.msk [vmem:[%s8287_s20 + $0x160] sm:$0xff] %vm6637_vm1, %v6583_v37  ;;  %v6279_v40 = vmax.f32 %v6278_v36, %v5690_v38  ;;  %v3541_v36 = vld [vmem:[%s8132_s10 + $0x520] sm:$0xff] }
 0x398   : > { %v6280_v43 = vmax.f32 %v6279_v40, %v5984_v39 }
 0x399   : > { %v5105_v44 = vpop.f32.mrf.mxu0  ;;  %v5399_v45 = vpop.f32.mrf.mxu1 }
 0x39a   : > { %v6486_v48 = vadd.f32 %v8597_v14, %v6280_v43  ;;  %7072 = vmatmul.msk.f32.gmra.mxu2 %vm3773_vm0, %v3635_v41  ;;  %v6281_v49 = vmax.f32 %v5105_v44, %v5399_v45  ;;  %7170 = vmatmul.msk.f32.gmra.mxu3 %vm3773_vm0, %v3733_v42  ;;  %v3640_v43 = vld [vmem:[%s8132_s10 + $0x838] sm:$0xff]  ;;  %v3738_v44 = vld [vmem:[%s8132_s10 + $0xb48] sm:$0xff] }
 0x39c   : > { %v6584_v50 = vmax.f32 %v6486_v48, 0.0  ;;  %6876 = vmatmul.msk.f32.gmra.mxu0 %vm3773_vm0, %v3439_v46  ;;  %6974 = vmatmul.msk.f32.gmra.mxu1 %vm3773_vm0, %v3537_v47  ;;  %v3444_v48 = vld [vmem:[%s8132_s10 + $0x218] sm:$0xff] }
 0x39d   : > { %v5693_v51 = vpop.f32.mrf.mxu2  ;;  %v5987_v52 = vpop.f32.mrf.mxu3 }
 0x39e   : > { %6683 = vst.msk [vmem:[%s8287_s20 + $0x168] sm:$0xff] %vm6637_vm1, %v6584_v50  ;;  %v6282_v53 = vmax.f32 %v6281_v49, %v5693_v51  ;;  %v3542_v49 = vld [vmem:[%s8132_s10 + $0x528] sm:$0xff] }
 0x3a0   : > { %v6283_v56 = vmax.f32 %v6282_v53, %v5987_v52 }
 0x3a1   : > { %v5108_v57 = vpop.f32.mrf.mxu0  ;;  %v5402_v58 = vpop.f32.mrf.mxu1 }
 0x3a2   : > { %v6487_v61 = vadd.f32 %v8597_v14, %v6283_v56  ;;  %7073 = vmatmul.msk.f32.gmra.mxu2 %vm3773_vm0, %v3636_v54  ;;  %v6284_v62 = vmax.f32 %v5108_v57, %v5402_v58  ;;  %7171 = vmatmul.msk.f32.gmra.mxu3 %vm3773_vm0, %v3734_v55  ;;  %v3641_v56 = vld [vmem:[%s8132_s10 + $0x840] sm:$0xff]  ;;  %v3739_v57 = vld [vmem:[%s8132_s10 + $0xb50] sm:$0xff] }
 0x3a4   : > { %v6585_v63 = vmax.f32 %v6487_v61, 0.0  ;;  %6877 = vmatmul.msk.f32.gmra.mxu0 %vm3773_vm0, %v3440_v59  ;;  %6975 = vmatmul.msk.f32.gmra.mxu1 %vm3773_vm0, %v3538_v60  ;;  %v3445_v61 = vld [vmem:[%s8132_s10 + $0x220] sm:$0xff] }
 0x3a5   : > { %v5696_v0 = vpop.f32.mrf.mxu2  ;;  %v5990_v1 = vpop.f32.mrf.mxu3 }
 0x3a6   : > { %6684 = vst.msk [vmem:[%s8287_s20 + $0x170] sm:$0xff] %vm6637_vm1, %v6585_v63  ;;  %v6285_v2 = vmax.f32 %v6284_v62, %v5696_v0  ;;  %v3543_v62 = vld [vmem:[%s8132_s10 + $0x530] sm:$0xff] }
 0x3a8   : > { %v6286_v5 = vmax.f32 %v6285_v2, %v5990_v1 }
 0x3a9   : > { %v5111_v6 = vpop.f32.mrf.mxu0  ;;  %v5405_v7 = vpop.f32.mrf.mxu1 }
 0x3aa   : > { %v6488_v22 = vadd.f32 %v8597_v14, %v6286_v5  ;;  %7074 = vmatmul.msk.f32.gmra.mxu2 %vm3773_vm0, %v3637_v3  ;;  %v6287_v10 = vmax.f32 %v5111_v6, %v5405_v7  ;;  %7172 = vmatmul.msk.f32.gmra.mxu3 %vm3773_vm0, %v3735_v4  ;;  %v3642_v5 = vld [vmem:[%s8132_s10 + $0x848] sm:$0xff]  ;;  %v3740_v6 = vld [vmem:[%s8132_s10 + $0xb58] sm:$0xff] }
 0x3ac   : > { %v6586_v11 = vmax.f32 %v6488_v22, 0.0  ;;  %6878 = vmatmul.msk.f32.gmra.mxu0 %vm3773_vm0, %v3441_v8  ;;  %6976 = vmatmul.msk.f32.gmra.mxu1 %vm3773_vm0, %v3539_v9  ;;  %v3446_v22 = vld [vmem:[%s8132_s10 + $0x228] sm:$0xff] }
 0x3ad   : > { %v5699_v12 = vpop.f32.mrf.mxu2  ;;  %v5993_v13 = vpop.f32.mrf.mxu3 }
 0x3ae   : > { %6685 = vst.msk [vmem:[%s8287_s20 + $0x178] sm:$0xff] %vm6637_vm1, %v6586_v11  ;;  %v6288_v15 = vmax.f32 %v6287_v10, %v5699_v12  ;;  %v3544_v10 = vld [vmem:[%s8132_s10 + $0x538] sm:$0xff] }
 0x3b0   : > { %v6289_v18 = vmax.f32 %v6288_v15, %v5993_v13 }
 0x3b1   : > { %v5114_v19 = vpop.f32.mrf.mxu0  ;;  %v5408_v20 = vpop.f32.mrf.mxu1 }
 0x3b2   : > { %v6489_v24 = vadd.f32 %v8597_v14, %v6289_v18  ;;  %7075 = vmatmul.msk.f32.gmra.mxu2 %vm3773_vm0, %v3638_v16  ;;  %v6290_v25 = vmax.f32 %v5114_v19, %v5408_v20  ;;  %7173 = vmatmul.msk.f32.gmra.mxu3 %vm3773_vm0, %v3736_v17  ;;  %v3643_v18 = vld [vmem:[%s8132_s10 + $0x850] sm:$0xff]  ;;  %v3741_v19 = vld [vmem:[%s8132_s10 + $0xb60] sm:$0xff] }
 0x3b4   : > { %v6587_v26 = vmax.f32 %v6489_v24, 0.0  ;;  %6879 = vmatmul.msk.f32.gmra.mxu0 %vm3773_vm0, %v3442_v21  ;;  %6977 = vmatmul.msk.f32.gmra.mxu1 %vm3773_vm0, %v3540_v23  ;;  %v3447_v24 = vld [vmem:[%s8132_s10 + $0x230] sm:$0xff] }
 0x3b5   : > { %v5702_v27 = vpop.f32.mrf.mxu2  ;;  %v5996_v28 = vpop.f32.mrf.mxu3 }
 0x3b6   : > { %6686 = vst.msk [vmem:[%s8287_s20 + $0x180] sm:$0xff] %vm6637_vm1, %v6587_v26  ;;  %v6291_v29 = vmax.f32 %v6290_v25, %v5702_v27  ;;  %v3545_v25 = vld [vmem:[%s8132_s10 + $0x540] sm:$0xff] }
 0x3b8   : > { %v6292_v32 = vmax.f32 %v6291_v29, %v5996_v28 }
 0x3b9   : > { %v5117_v33 = vpop.f32.mrf.mxu0  ;;  %v5411_v34 = vpop.f32.mrf.mxu1 }
 0x3ba   : > { %v6490_v37 = vadd.f32 %v8597_v14, %v6292_v32  ;;  %7076 = vmatmul.msk.f32.gmra.mxu2 %vm3773_vm0, %v3639_v30  ;;  %v6293_v38 = vmax.f32 %v5117_v33, %v5411_v34  ;;  %7174 = vmatmul.msk.f32.gmra.mxu3 %vm3773_vm0, %v3737_v31  ;;  %v3644_v32 = vld [vmem:[%s8132_s10 + $0x858] sm:$0xff]  ;;  %v3742_v33 = vld [vmem:[%s8132_s10 + $0xb68] sm:$0xff] }
 0x3bc   : > { %v6588_v39 = vmax.f32 %v6490_v37, 0.0  ;;  %6880 = vmatmul.msk.f32.gmra.mxu0 %vm3773_vm0, %v3443_v35  ;;  %6978 = vmatmul.msk.f32.gmra.mxu1 %vm3773_vm0, %v3541_v36  ;;  %v3448_v37 = vld [vmem:[%s8132_s10 + $0x238] sm:$0xff] }
 0x3bd   : > { %v5705_v40 = vpop.f32.mrf.mxu2  ;;  %v5999_v41 = vpop.f32.mrf.mxu3 }
 0x3be   : > { %6687 = vst.msk [vmem:[%s8287_s20 + $0x188] sm:$0xff] %vm6637_vm1, %v6588_v39  ;;  %v6294_v42 = vmax.f32 %v6293_v38, %v5705_v40  ;;  %v3546_v38 = vld [vmem:[%s8132_s10 + $0x548] sm:$0xff] }
 0x3c0   : > { %v6295_v45 = vmax.f32 %v6294_v42, %v5999_v41 }
 0x3c1   : > { %v5120_v46 = vpop.f32.mrf.mxu0  ;;  %v5414_v47 = vpop.f32.mrf.mxu1 }
 0x3c2   : > { %v6491_v50 = vadd.f32 %v8597_v14, %v6295_v45  ;;  %7077 = vmatmul.msk.f32.gmra.mxu2 %vm3773_vm0, %v3640_v43  ;;  %v6296_v51 = vmax.f32 %v5120_v46, %v5414_v47  ;;  %7175 = vmatmul.msk.f32.gmra.mxu3 %vm3773_vm0, %v3738_v44  ;;  %v3645_v45 = vld [vmem:[%s8132_s10 + $0x860] sm:$0xff]  ;;  %v3743_v46 = vld [vmem:[%s8132_s10 + $0xb70] sm:$0xff] }
 0x3c4   : > { %v6589_v52 = vmax.f32 %v6491_v50, 0.0  ;;  %6881 = vmatmul.msk.f32.gmra.mxu0 %vm3773_vm0, %v3444_v48  ;;  %6979 = vmatmul.msk.f32.gmra.mxu1 %vm3773_vm0, %v3542_v49  ;;  %v3449_v50 = vld [vmem:[%s8132_s10 + $0x240] sm:$0xff] }
 0x3c5   : > { %v5708_v53 = vpop.f32.mrf.mxu2  ;;  %v6002_v54 = vpop.f32.mrf.mxu3 }
 0x3c6   : > { %6688 = vst.msk [vmem:[%s8287_s20 + $0x190] sm:$0xff] %vm6637_vm1, %v6589_v52  ;;  %v6297_v55 = vmax.f32 %v6296_v51, %v5708_v53  ;;  %v3547_v51 = vld [vmem:[%s8132_s10 + $0x550] sm:$0xff] }
 0x3c8   : > { %v6298_v58 = vmax.f32 %v6297_v55, %v6002_v54 }
 0x3c9   : > { %v5123_v59 = vpop.f32.mrf.mxu0  ;;  %v5417_v60 = vpop.f32.mrf.mxu1 }
 0x3ca   : > { %v6492_v63 = vadd.f32 %v8597_v14, %v6298_v58  ;;  %7078 = vmatmul.msk.f32.gmra.mxu2 %vm3773_vm0, %v3641_v56  ;;  %v6299_v0 = vmax.f32 %v5123_v59, %v5417_v60  ;;  %7176 = vmatmul.msk.f32.gmra.mxu3 %vm3773_vm0, %v3739_v57  ;;  %v3646_v58 = vld [vmem:[%s8132_s10 + $0x868] sm:$0xff]  ;;  %v3744_v59 = vld [vmem:[%s8132_s10 + $0xb78] sm:$0xff] }
 0x3cc   : > { %v6590_v1 = vmax.f32 %v6492_v63, 0.0  ;;  %6882 = vmatmul.msk.f32.gmra.mxu0 %vm3773_vm0, %v3445_v61  ;;  %6980 = vmatmul.msk.f32.gmra.mxu1 %vm3773_vm0, %v3543_v62  ;;  %v3450_v63 = vld [vmem:[%s8132_s10 + $0x248] sm:$0xff] }
 0x3cd   : > { %v5711_v2 = vpop.f32.mrf.mxu2  ;;  %v6005_v3 = vpop.f32.mrf.mxu3 }
 0x3ce   : > { %6689 = vst.msk [vmem:[%s8287_s20 + $0x198] sm:$0xff] %vm6637_vm1, %v6590_v1  ;;  %v6300_v4 = vmax.f32 %v6299_v0, %v5711_v2  ;;  %v3548_v0 = vld [vmem:[%s8132_s10 + $0x558] sm:$0xff] }
 0x3d0   : > { %v6301_v7 = vmax.f32 %v6300_v4, %v6005_v3 }
 0x3d1   : > { %v5126_v8 = vpop.f32.mrf.mxu0  ;;  %v5420_v9 = vpop.f32.mrf.mxu1 }
 0x3d2   : > { %v6493_v11 = vadd.f32 %v8597_v14, %v6301_v7  ;;  %7079 = vmatmul.msk.f32.gmra.mxu2 %vm3773_vm0, %v3642_v5  ;;  %v6302_v12 = vmax.f32 %v5126_v8, %v5420_v9  ;;  %7177 = vmatmul.msk.f32.gmra.mxu3 %vm3773_vm0, %v3740_v6  ;;  %v3647_v7 = vld [vmem:[%s8132_s10 + $0x870] sm:$0xff]  ;;  %v3745_v8 = vld [vmem:[%s8132_s10 + $0xb80] sm:$0xff] }
 0x3d4   : > { %v6591_v13 = vmax.f32 %v6493_v11, 0.0  ;;  %6883 = vmatmul.msk.f32.gmra.mxu0 %vm3773_vm0, %v3446_v22  ;;  %6981 = vmatmul.msk.f32.gmra.mxu1 %vm3773_vm0, %v3544_v10  ;;  %v3451_v10 = vld [vmem:[%s8132_s10 + $0x250] sm:$0xff]  ;;  %v3549_v11 = vld [vmem:[%s8132_s10 + $0x560] sm:$0xff] }
 0x3d5   : > { %v5714_v15 = vpop.f32.mrf.mxu2  ;;  %v6008_v16 = vpop.f32.mrf.mxu3 }
 0x3d6   : > { %6690 = vst.msk [vmem:[%s8287_s20 + $0x1a0] sm:$0xff] %vm6637_vm1, %v6591_v13  ;;  %v6303_v17 = vmax.f32 %v6302_v12, %v5714_v15  ;;  %v8921_v12 = vld [vmem:[%s9251_s2] ss:$0 sm:$0xff] }
 0x3d8   : > { %v6304_v20 = vmax.f32 %v6303_v17, %v6008_v16 }
 0x3d9   : > { %v5129_v21 = vpop.f32.mrf.mxu0  ;;  %v5423_v23 = vpop.f32.mrf.mxu1 }
 0x3da   : > { %v6494_v26 = vadd.f32 %v8597_v14, %v6304_v20  ;;  %7080 = vmatmul.msk.f32.gmra.mxu2 %vm3773_vm0, %v3643_v18  ;;  %v6305_v27 = vmax.f32 %v5129_v21, %v5423_v23  ;;  %7178 = vmatmul.msk.f32.gmra.mxu3 %vm3773_vm0, %v3741_v19  ;;  %v3648_v20 = vld [vmem:[%s8132_s10 + $0x878] sm:$0xff]  ;;  %v3746_v21 = vld [vmem:[%s8132_s10 + $0xb88] sm:$0xff] }
 0x3dc   : > { %v6592_v28 = vmax.f32 %v6494_v26, 0.0  ;;  %6884 = vmatmul.msk.f32.gmra.mxu0 %vm3773_vm0, %v3447_v24  ;;  %6982 = vmatmul.msk.f32.gmra.mxu1 %vm3773_vm0, %v3545_v25  ;;  %v3452_v26 = vld [vmem:[%s8132_s10 + $0x258] sm:$0xff] }
 0x3dd   : > { %v5717_v29 = vpop.f32.mrf.mxu2  ;;  %v6011_v30 = vpop.f32.mrf.mxu3 }
 0x3de   : > { %6691 = vst.msk [vmem:[%s8287_s20 + $0x1a8] sm:$0xff] %vm6637_vm1, %v6592_v28  ;;  %v6306_v31 = vmax.f32 %v6305_v27, %v5717_v29  ;;  %v3550_v27 = vld [vmem:[%s8132_s10 + $0x568] sm:$0xff] }
 0x3e0   : > { %v6307_v34 = vmax.f32 %v6306_v31, %v6011_v30 }
 0x3e1   : > { %v5132_v35 = vpop.f32.mrf.mxu0  ;;  %v5426_v36 = vpop.f32.mrf.mxu1 }
 0x3e2   : > { %v6495_v39 = vadd.f32 %v8597_v14, %v6307_v34  ;;  %7081 = vmatmul.msk.f32.gmra.mxu2 %vm3773_vm0, %v3644_v32  ;;  %v6308_v40 = vmax.f32 %v5132_v35, %v5426_v36  ;;  %7179 = vmatmul.msk.f32.gmra.mxu3 %vm3773_vm0, %v3742_v33  ;;  %v3649_v34 = vld [vmem:[%s8132_s10 + $0x880] sm:$0xff]  ;;  %v3747_v35 = vld [vmem:[%s8132_s10 + $0xb90] sm:$0xff] }
 0x3e4   : > { %v6593_v41 = vmax.f32 %v6495_v39, 0.0  ;;  %6885 = vmatmul.msk.f32.gmra.mxu0 %vm3773_vm0, %v3448_v37  ;;  %6983 = vmatmul.msk.f32.gmra.mxu1 %vm3773_vm0, %v3546_v38  ;;  %v3453_v39 = vld [vmem:[%s8132_s10 + $0x260] sm:$0xff] }
 0x3e5   : > { %v5720_v42 = vpop.f32.mrf.mxu2  ;;  %v6014_v43 = vpop.f32.mrf.mxu3 }
 0x3e6   : > { %6692 = vst.msk [vmem:[%s8287_s20 + $0x1b0] sm:$0xff] %vm6637_vm1, %v6593_v41  ;;  %v6309_v44 = vmax.f32 %v6308_v40, %v5720_v42  ;;  %v3551_v40 = vld [vmem:[%s8132_s10 + $0x570] sm:$0xff] }
 0x3e8   : > { %v6310_v47 = vmax.f32 %v6309_v44, %v6014_v43 }
 0x3e9   : > { %v5135_v48 = vpop.f32.mrf.mxu0  ;;  %v5429_v49 = vpop.f32.mrf.mxu1 }
 0x3ea   : > { %v6496_v52 = vadd.f32 %v8597_v14, %v6310_v47  ;;  %7082 = vmatmul.msk.f32.gmra.mxu2 %vm3773_vm0, %v3645_v45  ;;  %v6311_v53 = vmax.f32 %v5135_v48, %v5429_v49  ;;  %7180 = vmatmul.msk.f32.gmra.mxu3 %vm3773_vm0, %v3743_v46  ;;  %v3650_v47 = vld [vmem:[%s8132_s10 + $0x888] sm:$0xff]  ;;  %v3748_v48 = vld [vmem:[%s8132_s10 + $0xb98] sm:$0xff] }
 0x3ec   : > { %v6594_v54 = vmax.f32 %v6496_v52, 0.0  ;;  %6886 = vmatmul.msk.f32.gmra.mxu0 %vm3773_vm0, %v3449_v50  ;;  %6984 = vmatmul.msk.f32.gmra.mxu1 %vm3773_vm0, %v3547_v51  ;;  %v3454_v52 = vld [vmem:[%s8132_s10 + $0x268] sm:$0xff] }
 0x3ed   : > { %v5723_v55 = vpop.f32.mrf.mxu2  ;;  %v6017_v56 = vpop.f32.mrf.mxu3 }
 0x3ee   : > { %6693 = vst.msk [vmem:[%s8287_s20 + $0x1b8] sm:$0xff] %vm6637_vm1, %v6594_v54  ;;  %v6312_v57 = vmax.f32 %v6311_v53, %v5723_v55  ;;  %v3552_v53 = vld [vmem:[%s8132_s10 + $0x578] sm:$0xff] }
 0x3f0   : > { %v6313_v60 = vmax.f32 %v6312_v57, %v6017_v56 }
 0x3f1   : > { %v5138_v61 = vpop.f32.mrf.mxu0  ;;  %v5432_v62 = vpop.f32.mrf.mxu1 }
 0x3f2   : > { %v6497_v1 = vadd.f32 %v8597_v14, %v6313_v60  ;;  %7083 = vmatmul.msk.f32.gmra.mxu2 %vm3773_vm0, %v3646_v58  ;;  %v6314_v2 = vmax.f32 %v5138_v61, %v5432_v62  ;;  %7181 = vmatmul.msk.f32.gmra.mxu3 %vm3773_vm0, %v3744_v59  ;;  %v3651_v60 = vld [vmem:[%s8132_s10 + $0x890] sm:$0xff]  ;;  %v3749_v61 = vld [vmem:[%s8132_s10 + $0xba0] sm:$0xff] }
 0x3f4   : > { %v6595_v3 = vmax.f32 %v6497_v1, 0.0  ;;  %6887 = vmatmul.msk.f32.gmra.mxu0 %vm3773_vm0, %v3450_v63  ;;  %6985 = vmatmul.msk.f32.gmra.mxu1 %vm3773_vm0, %v3548_v0  ;;  %v3455_v1 = vld [vmem:[%s8132_s10 + $0x270] sm:$0xff] }
 0x3f5   : > { %v5726_v4 = vpop.f32.mrf.mxu2  ;;  %v6020_v5 = vpop.f32.mrf.mxu3 }
 0x3f6   : > { %6694 = vst.msk [vmem:[%s8287_s20 + $0x1c0] sm:$0xff] %vm6637_vm1, %v6595_v3  ;;  %v6315_v6 = vmax.f32 %v6314_v2, %v5726_v4  ;;  %v3553_v2 = vld [vmem:[%s8132_s10 + $0x580] sm:$0xff] }
 0x3f8   : > { %v6316_v14 = vmax.f32 %v6315_v6, %v6020_v5 }
 0x3f9   : > { %v5141_v9 = vpop.f32.mrf.mxu0  ;;  %v5435_v22 = vpop.f32.mrf.mxu1 }
 0x3fa   : > { %v6498_v13 = vadd.f32 %v8921_v12, %v6316_v14  ;;  %7084 = vmatmul.msk.f32.gmra.mxu2 %vm3773_vm0, %v3647_v7  ;;  %v6317_v15 = vmax.f32 %v5141_v9, %v5435_v22  ;;  %7182 = vmatmul.msk.f32.gmra.mxu3 %vm3773_vm0, %v3745_v8  ;;  %v3652_v14 = vld [vmem:[%s8132_s10 + $0x898] sm:$0xff]  ;;  %v3750_v9 = vld [vmem:[%s8132_s10 + $0xba8] sm:$0xff] }
 0x3fc   : > { %v6596_v16 = vmax.f32 %v6498_v13, 0.0  ;;  %6888 = vmatmul.msk.f32.gmra.mxu0 %vm3773_vm0, %v3451_v10  ;;  %6986 = vmatmul.msk.f32.gmra.mxu1 %vm3773_vm0, %v3549_v11  ;;  %v3456_v13 = vld [vmem:[%s8132_s10 + $0x278] sm:$0xff] }
 0x3fd   : > { %v5729_v17 = vpop.f32.mrf.mxu2  ;;  %v6023_v18 = vpop.f32.mrf.mxu3 }
 0x3fe   : > { %6695 = vst.msk [vmem:[%s8287_s20 + $0x1c8] sm:$0xff] %vm6637_vm1, %v6596_v16  ;;  %v6318_v19 = vmax.f32 %v6317_v15, %v5729_v17  ;;  %v3554_v15 = vld [vmem:[%s8132_s10 + $0x588] sm:$0xff] }
 0x400   : > { %v6319_v23 = vmax.f32 %v6318_v19, %v6023_v18 }
 0x401   : > { %v5144_v24 = vpop.f32.mrf.mxu0  ;;  %v5438_v25 = vpop.f32.mrf.mxu1 }
 0x402   : > { %v6499_v28 = vadd.f32 %v8921_v12, %v6319_v23  ;;  %7085 = vmatmul.msk.f32.gmra.mxu2 %vm3773_vm0, %v3648_v20  ;;  %v6320_v29 = vmax.f32 %v5144_v24, %v5438_v25  ;;  %7183 = vmatmul.msk.f32.gmra.mxu3 %vm3773_vm0, %v3746_v21  ;;  %v3653_v23 = vld [vmem:[%s8132_s10 + $0x8a0] sm:$0xff]  ;;  %v3751_v24 = vld [vmem:[%s8132_s10 + $0xbb0] sm:$0xff] }
 0x404   : > { %v6597_v30 = vmax.f32 %v6499_v28, 0.0  ;;  %6889 = vmatmul.msk.f32.gmra.mxu0 %vm3773_vm0, %v3452_v26  ;;  %6987 = vmatmul.msk.f32.gmra.mxu1 %vm3773_vm0, %v3550_v27  ;;  %v3457_v28 = vld [vmem:[%s8132_s10 + $0x280] sm:$0xff] }
 0x405   : > { %v5732_v31 = vpop.f32.mrf.mxu2  ;;  %v6026_v32 = vpop.f32.mrf.mxu3 }
 0x406   : > { %6696 = vst.msk [vmem:[%s8287_s20 + $0x1d0] sm:$0xff] %vm6637_vm1, %v6597_v30  ;;  %v6321_v33 = vmax.f32 %v6320_v29, %v5732_v31  ;;  %v3555_v29 = vld [vmem:[%s8132_s10 + $0x590] sm:$0xff] }
 0x408   : > { %v6322_v36 = vmax.f32 %v6321_v33, %v6026_v32 }
 0x409   : > { %v5147_v37 = vpop.f32.mrf.mxu0  ;;  %v5441_v38 = vpop.f32.mrf.mxu1 }
 0x40a   : > { %v6500_v41 = vadd.f32 %v8921_v12, %v6322_v36  ;;  %7086 = vmatmul.msk.f32.gmra.mxu2 %vm3773_vm0, %v3649_v34  ;;  %v6323_v42 = vmax.f32 %v5147_v37, %v5441_v38  ;;  %7184 = vmatmul.msk.f32.gmra.mxu3 %vm3773_vm0, %v3747_v35  ;;  %v3654_v36 = vld [vmem:[%s8132_s10 + $0x8a8] sm:$0xff]  ;;  %v3752_v37 = vld [vmem:[%s8132_s10 + $0xbb8] sm:$0xff] }
 0x40c   : > { %v6598_v43 = vmax.f32 %v6500_v41, 0.0  ;;  %6890 = vmatmul.msk.f32.gmra.mxu0 %vm3773_vm0, %v3453_v39  ;;  %6988 = vmatmul.msk.f32.gmra.mxu1 %vm3773_vm0, %v3551_v40  ;;  %v3458_v41 = vld [vmem:[%s8132_s10 + $0x288] sm:$0xff] }
 0x40d   : > { %v5735_v44 = vpop.f32.mrf.mxu2  ;;  %v6029_v45 = vpop.f32.mrf.mxu3 }
 0x40e   : > { %6697 = vst.msk [vmem:[%s8287_s20 + $0x1d8] sm:$0xff] %vm6637_vm1, %v6598_v43  ;;  %v6324_v46 = vmax.f32 %v6323_v42, %v5735_v44  ;;  %v3556_v42 = vld [vmem:[%s8132_s10 + $0x598] sm:$0xff] }
 0x410   : > { %v6325_v49 = vmax.f32 %v6324_v46, %v6029_v45 }
 0x411   : > { %v5150_v50 = vpop.f32.mrf.mxu0  ;;  %v5444_v51 = vpop.f32.mrf.mxu1 }
 0x412   : > { %v6501_v54 = vadd.f32 %v8921_v12, %v6325_v49  ;;  %7087 = vmatmul.msk.f32.gmra.mxu2 %vm3773_vm0, %v3650_v47  ;;  %v6326_v55 = vmax.f32 %v5150_v50, %v5444_v51  ;;  %7185 = vmatmul.msk.f32.gmra.mxu3 %vm3773_vm0, %v3748_v48  ;;  %v3655_v49 = vld [vmem:[%s8132_s10 + $0x8b0] sm:$0xff]  ;;  %v3753_v50 = vld [vmem:[%s8132_s10 + $0xbc0] sm:$0xff] }
 0x414   : > { %v6599_v56 = vmax.f32 %v6501_v54, 0.0  ;;  %6891 = vmatmul.msk.f32.gmra.mxu0 %vm3773_vm0, %v3454_v52  ;;  %6989 = vmatmul.msk.f32.gmra.mxu1 %vm3773_vm0, %v3552_v53  ;;  %v3459_v54 = vld [vmem:[%s8132_s10 + $0x290] sm:$0xff] }
 0x415   : > { %v5738_v57 = vpop.f32.mrf.mxu2  ;;  %v6032_v58 = vpop.f32.mrf.mxu3 }
 0x416   : > { %6698 = vst.msk [vmem:[%s8287_s20 + $0x1e0] sm:$0xff] %vm6637_vm1, %v6599_v56  ;;  %v6327_v59 = vmax.f32 %v6326_v55, %v5738_v57  ;;  %v3557_v55 = vld [vmem:[%s8132_s10 + $0x5a0] sm:$0xff] }
 0x418   : > { %v6328_v62 = vmax.f32 %v6327_v59, %v6032_v58 }
 0x419   : > { %v5153_v63 = vpop.f32.mrf.mxu0  ;;  %v5447_v0 = vpop.f32.mrf.mxu1 }
 0x41a   : > { %v6502_v3 = vadd.f32 %v8921_v12, %v6328_v62  ;;  %7088 = vmatmul.msk.f32.gmra.mxu2 %vm3773_vm0, %v3651_v60  ;;  %v6329_v4 = vmax.f32 %v5153_v63, %v5447_v0  ;;  %7186 = vmatmul.msk.f32.gmra.mxu3 %vm3773_vm0, %v3749_v61  ;;  %v3656_v62 = vld [vmem:[%s8132_s10 + $0x8b8] sm:$0xff]  ;;  %v3754_v63 = vld [vmem:[%s8132_s10 + $0xbc8] sm:$0xff] }
 0x41c   : > { %v6600_v5 = vmax.f32 %v6502_v3, 0.0  ;;  %6892 = vmatmul.msk.f32.gmra.mxu0 %vm3773_vm0, %v3455_v1  ;;  %6990 = vmatmul.msk.f32.gmra.mxu1 %vm3773_vm0, %v3553_v2  ;;  %v3460_v3 = vld [vmem:[%s8132_s10 + $0x298] sm:$0xff] }
 0x41d   : > { %v5741_v6 = vpop.f32.mrf.mxu2  ;;  %v6035_v7 = vpop.f32.mrf.mxu3 }
 0x41e   : > { %6699 = vst.msk [vmem:[%s8287_s20 + $0x1e8] sm:$0xff] %vm6637_vm1, %v6600_v5  ;;  %v6330_v8 = vmax.f32 %v6329_v4, %v5741_v6  ;;  %v3558_v4 = vld [vmem:[%s8132_s10 + $0x5a8] sm:$0xff] }
 0x420   : > { %v6331_v22 = vmax.f32 %v6330_v8, %v6035_v7 }
 0x421   : > { %v5156_v10 = vpop.f32.mrf.mxu0  ;;  %v5450_v11 = vpop.f32.mrf.mxu1 }
 0x422   : > { %v6503_v16 = vadd.f32 %v8921_v12, %v6331_v22  ;;  %7089 = vmatmul.msk.f32.gmra.mxu2 %vm3773_vm0, %v3652_v14  ;;  %v6332_v17 = vmax.f32 %v5156_v10, %v5450_v11  ;;  %7187 = vmatmul.msk.f32.gmra.mxu3 %vm3773_vm0, %v3750_v9  ;;  %v3657_v22 = vld [vmem:[%s8132_s10 + $0x8c0] sm:$0xff]  ;;  %v3755_v10 = vld [vmem:[%s8132_s10 + $0xbd0] sm:$0xff] }
 0x424   : > { %v6601_v18 = vmax.f32 %v6503_v16, 0.0  ;;  %6893 = vmatmul.msk.f32.gmra.mxu0 %vm3773_vm0, %v3456_v13  ;;  %6991 = vmatmul.msk.f32.gmra.mxu1 %vm3773_vm0, %v3554_v15  ;;  %v3461_v16 = vld [vmem:[%s8132_s10 + $0x2a0] sm:$0xff] }
 0x425   : > { %v5744_v19 = vpop.f32.mrf.mxu2  ;;  %v6038_v20 = vpop.f32.mrf.mxu3 }
 0x426   : > { %6700 = vst.msk [vmem:[%s8287_s20 + $0x1f0] sm:$0xff] %vm6637_vm1, %v6601_v18  ;;  %v6333_v21 = vmax.f32 %v6332_v17, %v5744_v19  ;;  %v3559_v17 = vld [vmem:[%s8132_s10 + $0x5b0] sm:$0xff] }
 0x428   : > { %v6334_v25 = vmax.f32 %v6333_v21, %v6038_v20 }
 0x429   : > { %v5159_v26 = vpop.f32.mrf.mxu0  ;;  %v5453_v27 = vpop.f32.mrf.mxu1 }
 0x42a   : > { %v6504_v30 = vadd.f32 %v8921_v12, %v6334_v25  ;;  %7090 = vmatmul.msk.f32.gmra.mxu2 %vm3773_vm0, %v3653_v23  ;;  %v6335_v31 = vmax.f32 %v5159_v26, %v5453_v27  ;;  %7188 = vmatmul.msk.f32.gmra.mxu3 %vm3773_vm0, %v3751_v24  ;;  %v3658_v25 = vld [vmem:[%s8132_s10 + $0x8c8] sm:$0xff]  ;;  %v3756_v26 = vld [vmem:[%s8132_s10 + $0xbd8] sm:$0xff] }
 0x42c   : > { %v6602_v32 = vmax.f32 %v6504_v30, 0.0  ;;  %6894 = vmatmul.msk.f32.gmra.mxu0 %vm3773_vm0, %v3457_v28  ;;  %6992 = vmatmul.msk.f32.gmra.mxu1 %vm3773_vm0, %v3555_v29  ;;  %v3462_v30 = vld [vmem:[%s8132_s10 + $0x2a8] sm:$0xff] }
 0x42d   : > { %v5747_v33 = vpop.f32.mrf.mxu2  ;;  %v6041_v34 = vpop.f32.mrf.mxu3 }
 0x42e   : > { %6701 = vst.msk [vmem:[%s8287_s20 + $0x1f8] sm:$0xff] %vm6637_vm1, %v6602_v32  ;;  %v6336_v35 = vmax.f32 %v6335_v31, %v5747_v33  ;;  %v3560_v31 = vld [vmem:[%s8132_s10 + $0x5b8] sm:$0xff] }
 0x430   : > { %v6337_v38 = vmax.f32 %v6336_v35, %v6041_v34 }
 0x431   : > { %v5162_v39 = vpop.f32.mrf.mxu0  ;;  %v5456_v40 = vpop.f32.mrf.mxu1 }
 0x432   : > { %v6505_v43 = vadd.f32 %v8921_v12, %v6337_v38  ;;  %7091 = vmatmul.msk.f32.gmra.mxu2 %vm3773_vm0, %v3654_v36  ;;  %v6338_v44 = vmax.f32 %v5162_v39, %v5456_v40  ;;  %7189 = vmatmul.msk.f32.gmra.mxu3 %vm3773_vm0, %v3752_v37  ;;  %v3659_v38 = vld [vmem:[%s8132_s10 + $0x8d0] sm:$0xff]  ;;  %v3757_v39 = vld [vmem:[%s8132_s10 + $0xbe0] sm:$0xff] }
 0x434   : > { %v6603_v45 = vmax.f32 %v6505_v43, 0.0  ;;  %6895 = vmatmul.msk.f32.gmra.mxu0 %vm3773_vm0, %v3458_v41  ;;  %6993 = vmatmul.msk.f32.gmra.mxu1 %vm3773_vm0, %v3556_v42  ;;  %v3463_v43 = vld [vmem:[%s8132_s10 + $0x2b0] sm:$0xff] }
 0x435   : > { %v5750_v46 = vpop.f32.mrf.mxu2  ;;  %v6044_v47 = vpop.f32.mrf.mxu3 }
 0x436   : > { %6702 = vst.msk [vmem:[%s8287_s20 + $0x200] sm:$0xff] %vm6637_vm1, %v6603_v45  ;;  %v6339_v48 = vmax.f32 %v6338_v44, %v5750_v46  ;;  %v3561_v44 = vld [vmem:[%s8132_s10 + $0x5c0] sm:$0xff] }
 0x438   : > { %v6340_v51 = vmax.f32 %v6339_v48, %v6044_v47 }
 0x439   : > { %v5165_v52 = vpop.f32.mrf.mxu0  ;;  %v5459_v53 = vpop.f32.mrf.mxu1 }
 0x43a   : > { %v6506_v56 = vadd.f32 %v8921_v12, %v6340_v51  ;;  %7092 = vmatmul.msk.f32.gmra.mxu2 %vm3773_vm0, %v3655_v49  ;;  %v6341_v57 = vmax.f32 %v5165_v52, %v5459_v53  ;;  %7190 = vmatmul.msk.f32.gmra.mxu3 %vm3773_vm0, %v3753_v50  ;;  %v3660_v51 = vld [vmem:[%s8132_s10 + $0x8d8] sm:$0xff]  ;;  %v3758_v52 = vld [vmem:[%s8132_s10 + $0xbe8] sm:$0xff] }
 0x43c   : > { %v6604_v58 = vmax.f32 %v6506_v56, 0.0  ;;  %6896 = vmatmul.msk.f32.gmra.mxu0 %vm3773_vm0, %v3459_v54  ;;  %6994 = vmatmul.msk.f32.gmra.mxu1 %vm3773_vm0, %v3557_v55  ;;  %v3464_v56 = vld [vmem:[%s8132_s10 + $0x2b8] sm:$0xff] }
 0x43d   : > { %v5753_v59 = vpop.f32.mrf.mxu2  ;;  %v6047_v60 = vpop.f32.mrf.mxu3 }
 0x43e   : > { %6703 = vst.msk [vmem:[%s8287_s20 + $0x208] sm:$0xff] %vm6637_vm1, %v6604_v58  ;;  %v6342_v61 = vmax.f32 %v6341_v57, %v5753_v59  ;;  %v3562_v57 = vld [vmem:[%s8132_s10 + $0x5c8] sm:$0xff] }
 0x440   : > { %v6343_v0 = vmax.f32 %v6342_v61, %v6047_v60 }
 0x441   : > { %v5168_v1 = vpop.f32.mrf.mxu0  ;;  %v5462_v2 = vpop.f32.mrf.mxu1 }
 0x442   : > { %v6507_v5 = vadd.f32 %v8921_v12, %v6343_v0  ;;  %7093 = vmatmul.msk.f32.gmra.mxu2 %vm3773_vm0, %v3656_v62  ;;  %v6344_v6 = vmax.f32 %v5168_v1, %v5462_v2  ;;  %7191 = vmatmul.msk.f32.gmra.mxu3 %vm3773_vm0, %v3754_v63  ;;  %v3661_v0 = vld [vmem:[%s8132_s10 + $0x8e0] sm:$0xff]  ;;  %v3759_v1 = vld [vmem:[%s8132_s10 + $0xbf0] sm:$0xff] }
 0x444   : > { %v6605_v7 = vmax.f32 %v6507_v5, 0.0  ;;  %6897 = vmatmul.msk.f32.gmra.mxu0 %vm3773_vm0, %v3460_v3  ;;  %6995 = vmatmul.msk.f32.gmra.mxu1 %vm3773_vm0, %v3558_v4  ;;  %v3465_v5 = vld [vmem:[%s8132_s10 + $0x2c0] sm:$0xff] }
 0x445   : > { %v5756_v8 = vpop.f32.mrf.mxu2  ;;  %v6050_v14 = vpop.f32.mrf.mxu3 }
 0x446   : > { %6704 = vst.msk [vmem:[%s8287_s20 + $0x210] sm:$0xff] %vm6637_vm1, %v6605_v7  ;;  %v6345_v9 = vmax.f32 %v6344_v6, %v5756_v8  ;;  %v3563_v6 = vld [vmem:[%s8132_s10 + $0x5d0] sm:$0xff] }
 0x448   : > { %v6346_v11 = vmax.f32 %v6345_v9, %v6050_v14 }
 0x449   : > { %v5171_v13 = vpop.f32.mrf.mxu0  ;;  %v5465_v15 = vpop.f32.mrf.mxu1 }
 0x44a   : > { %v6508_v18 = vadd.f32 %v8921_v12, %v6346_v11  ;;  %7094 = vmatmul.msk.f32.gmra.mxu2 %vm3773_vm0, %v3657_v22  ;;  %v6347_v19 = vmax.f32 %v5171_v13, %v5465_v15  ;;  %7192 = vmatmul.msk.f32.gmra.mxu3 %vm3773_vm0, %v3755_v10  ;;  %v3662_v11 = vld [vmem:[%s8132_s10 + $0x8e8] sm:$0xff]  ;;  %v3760_v13 = vld [vmem:[%s8132_s10 + $0xbf8] sm:$0xff] }
 0x44c   : > { %v6606_v20 = vmax.f32 %v6508_v18, 0.0  ;;  %6898 = vmatmul.msk.f32.gmra.mxu0 %vm3773_vm0, %v3461_v16  ;;  %6996 = vmatmul.msk.f32.gmra.mxu1 %vm3773_vm0, %v3559_v17  ;;  %v3466_v18 = vld [vmem:[%s8132_s10 + $0x2c8] sm:$0xff] }
 0x44d   : > { %v5759_v21 = vpop.f32.mrf.mxu2  ;;  %v6053_v23 = vpop.f32.mrf.mxu3 }
 0x44e   : > { %6705 = vst.msk [vmem:[%s8287_s20 + $0x218] sm:$0xff] %vm6637_vm1, %v6606_v20  ;;  %v6348_v24 = vmax.f32 %v6347_v19, %v5759_v21  ;;  %v3564_v19 = vld [vmem:[%s8132_s10 + $0x5d8] sm:$0xff] }
 0x450   : > { %v6349_v27 = vmax.f32 %v6348_v24, %v6053_v23 }
 0x451   : > { %v5174_v28 = vpop.f32.mrf.mxu0  ;;  %v5468_v29 = vpop.f32.mrf.mxu1 }
 0x452   : > { %v6509_v32 = vadd.f32 %v8921_v12, %v6349_v27  ;;  %7095 = vmatmul.msk.f32.gmra.mxu2 %vm3773_vm0, %v3658_v25  ;;  %v6350_v33 = vmax.f32 %v5174_v28, %v5468_v29  ;;  %7193 = vmatmul.msk.f32.gmra.mxu3 %vm3773_vm0, %v3756_v26  ;;  %v3663_v27 = vld [vmem:[%s8132_s10 + $0x8f0] sm:$0xff]  ;;  %v3761_v28 = vld [vmem:[%s8132_s10 + $0xc00] sm:$0xff] }
 0x454   : > { %v6607_v34 = vmax.f32 %v6509_v32, 0.0  ;;  %6899 = vmatmul.msk.f32.gmra.mxu0 %vm3773_vm0, %v3462_v30  ;;  %6997 = vmatmul.msk.f32.gmra.mxu1 %vm3773_vm0, %v3560_v31  ;;  %v3467_v32 = vld [vmem:[%s8132_s10 + $0x2d0] sm:$0xff] }
 0x455   : > { %v5762_v35 = vpop.f32.mrf.mxu2  ;;  %v6056_v36 = vpop.f32.mrf.mxu3 }
 0x456   : > { %6706 = vst.msk [vmem:[%s8287_s20 + $0x220] sm:$0xff] %vm6637_vm1, %v6607_v34  ;;  %v6351_v37 = vmax.f32 %v6350_v33, %v5762_v35  ;;  %v3565_v33 = vld [vmem:[%s8132_s10 + $0x5e0] sm:$0xff] }
 0x458   : > { %v6352_v40 = vmax.f32 %v6351_v37, %v6056_v36 }
 0x459   : > { %v5177_v41 = vpop.f32.mrf.mxu0  ;;  %v5471_v42 = vpop.f32.mrf.mxu1 }
 0x45a   : > { %v6510_v45 = vadd.f32 %v8921_v12, %v6352_v40  ;;  %7096 = vmatmul.msk.f32.gmra.mxu2 %vm3773_vm0, %v3659_v38  ;;  %v6353_v46 = vmax.f32 %v5177_v41, %v5471_v42  ;;  %7194 = vmatmul.msk.f32.gmra.mxu3 %vm3773_vm0, %v3757_v39  ;;  %v3664_v40 = vld [vmem:[%s8132_s10 + $0x8f8] sm:$0xff]  ;;  %v3762_v41 = vld [vmem:[%s8132_s10 + $0xc08] sm:$0xff] }
 0x45c   : > { %v6608_v47 = vmax.f32 %v6510_v45, 0.0  ;;  %6900 = vmatmul.msk.f32.gmra.mxu0 %vm3773_vm0, %v3463_v43  ;;  %6998 = vmatmul.msk.f32.gmra.mxu1 %vm3773_vm0, %v3561_v44  ;;  %v3468_v45 = vld [vmem:[%s8132_s10 + $0x2d8] sm:$0xff] }
 0x45d   : > { %v5765_v48 = vpop.f32.mrf.mxu2  ;;  %v6059_v49 = vpop.f32.mrf.mxu3 }
 0x45e   : > { %6707 = vst.msk [vmem:[%s8287_s20 + $0x228] sm:$0xff] %vm6637_vm1, %v6608_v47  ;;  %v6354_v50 = vmax.f32 %v6353_v46, %v5765_v48  ;;  %v3566_v46 = vld [vmem:[%s8132_s10 + $0x5e8] sm:$0xff] }
 0x460   : > { %v6355_v53 = vmax.f32 %v6354_v50, %v6059_v49 }
 0x461   : > { %v5180_v54 = vpop.f32.mrf.mxu0  ;;  %v5474_v55 = vpop.f32.mrf.mxu1 }
 0x462   : > { %v6511_v58 = vadd.f32 %v8921_v12, %v6355_v53  ;;  %7097 = vmatmul.msk.f32.gmra.mxu2 %vm3773_vm0, %v3660_v51  ;;  %v6356_v59 = vmax.f32 %v5180_v54, %v5474_v55  ;;  %7195 = vmatmul.msk.f32.gmra.mxu3 %vm3773_vm0, %v3758_v52  ;;  %v3665_v53 = vld [vmem:[%s8132_s10 + $0x900] sm:$0xff]  ;;  %v3763_v54 = vld [vmem:[%s8132_s10 + $0xc10] sm:$0xff] }
 0x464   : > { %v6609_v60 = vmax.f32 %v6511_v58, 0.0  ;;  %6901 = vmatmul.msk.f32.gmra.mxu0 %vm3773_vm0, %v3464_v56  ;;  %6999 = vmatmul.msk.f32.gmra.mxu1 %vm3773_vm0, %v3562_v57  ;;  %v3469_v58 = vld [vmem:[%s8132_s10 + $0x2e0] sm:$0xff] }
 0x465   : > { %v5768_v61 = vpop.f32.mrf.mxu2  ;;  %v6062_v62 = vpop.f32.mrf.mxu3 }
 0x466   : > { %6708 = vst.msk [vmem:[%s8287_s20 + $0x230] sm:$0xff] %vm6637_vm1, %v6609_v60  ;;  %v6357_v63 = vmax.f32 %v6356_v59, %v5768_v61  ;;  %v3567_v59 = vld [vmem:[%s8132_s10 + $0x5f0] sm:$0xff] }
 0x468   : > { %v6358_v2 = vmax.f32 %v6357_v63, %v6062_v62 }
 0x469   : > { %v5183_v3 = vpop.f32.mrf.mxu0  ;;  %v5477_v4 = vpop.f32.mrf.mxu1 }
 0x46a   : > { %v6512_v7 = vadd.f32 %v8921_v12, %v6358_v2  ;;  %7098 = vmatmul.msk.f32.gmra.mxu2 %vm3773_vm0, %v3661_v0  ;;  %v6359_v8 = vmax.f32 %v5183_v3, %v5477_v4  ;;  %7196 = vmatmul.msk.f32.gmra.mxu3 %vm3773_vm0, %v3759_v1  ;;  %v3666_v2 = vld [vmem:[%s8132_s10 + $0x908] sm:$0xff]  ;;  %v3764_v3 = vld [vmem:[%s8132_s10 + $0xc18] sm:$0xff] }
 0x46c   : > { %v6610_v14 = vmax.f32 %v6512_v7, 0.0  ;;  %6902 = vmatmul.msk.f32.gmra.mxu0 %vm3773_vm0, %v3465_v5  ;;  %7000 = vmatmul.msk.f32.gmra.mxu1 %vm3773_vm0, %v3563_v6  ;;  %v3470_v7 = vld [vmem:[%s8132_s10 + $0x2e8] sm:$0xff] }
 0x46d   : > { %v5771_v9 = vpop.f32.mrf.mxu2  ;;  %v6065_v22 = vpop.f32.mrf.mxu3 }
 0x46e   : > { %6709 = vst.msk [vmem:[%s8287_s20 + $0x238] sm:$0xff] %vm6637_vm1, %v6610_v14  ;;  %v6360_v10 = vmax.f32 %v6359_v8, %v5771_v9  ;;  %v3568_v8 = vld [vmem:[%s8132_s10 + $0x5f8] sm:$0xff] }
 0x470   : > { %v6361_v15 = vmax.f32 %v6360_v10, %v6065_v22 }
 0x471   : > { %v5186_v16 = vpop.f32.mrf.mxu0  ;;  %v5480_v17 = vpop.f32.mrf.mxu1 }
 0x472   : > { %v6513_v20 = vadd.f32 %v8921_v12, %v6361_v15  ;;  %7099 = vmatmul.msk.f32.gmra.mxu2 %vm3773_vm0, %v3662_v11  ;;  %v6362_v21 = vmax.f32 %v5186_v16, %v5480_v17  ;;  %7197 = vmatmul.msk.f32.gmra.mxu3 %vm3773_vm0, %v3760_v13  ;;  %v3667_v15 = vld [vmem:[%s8132_s10 + $0x910] sm:$0xff]  ;;  %v3765_v16 = vld [vmem:[%s8132_s10 + $0xc20] sm:$0xff] }
 0x474   : > { %v6611_v23 = vmax.f32 %v6513_v20, 0.0  ;;  %6903 = vmatmul.msk.f32.gmra.mxu0 %vm3773_vm0, %v3466_v18  ;;  %7001 = vmatmul.msk.f32.gmra.mxu1 %vm3773_vm0, %v3564_v19  ;;  %v3471_v20 = vld [vmem:[%s8132_s10 + $0x2f0] sm:$0xff] }
 0x475   : > { %v5774_v24 = vpop.f32.mrf.mxu2  ;;  %v6068_v25 = vpop.f32.mrf.mxu3 }
 0x476   : > { %6710 = vst.msk [vmem:[%s8287_s20 + $0x240] sm:$0xff] %vm6637_vm1, %v6611_v23  ;;  %v6363_v26 = vmax.f32 %v6362_v21, %v5774_v24  ;;  %v3569_v21 = vld [vmem:[%s8132_s10 + $0x600] sm:$0xff] }
 0x478   : > { %v6364_v29 = vmax.f32 %v6363_v26, %v6068_v25 }
 0x479   : > { %v5189_v30 = vpop.f32.mrf.mxu0  ;;  %v5483_v31 = vpop.f32.mrf.mxu1 }
 0x47a   : > { %v6514_v34 = vadd.f32 %v8921_v12, %v6364_v29  ;;  %7100 = vmatmul.msk.f32.gmra.mxu2 %vm3773_vm0, %v3663_v27  ;;  %v6365_v35 = vmax.f32 %v5189_v30, %v5483_v31  ;;  %7198 = vmatmul.msk.f32.gmra.mxu3 %vm3773_vm0, %v3761_v28  ;;  %v3668_v29 = vld [vmem:[%s8132_s10 + $0x918] sm:$0xff]  ;;  %v3766_v30 = vld [vmem:[%s8132_s10 + $0xc28] sm:$0xff] }
 0x47c   : > { %v6612_v36 = vmax.f32 %v6514_v34, 0.0  ;;  %6904 = vmatmul.msk.f32.gmra.mxu0 %vm3773_vm0, %v3467_v32  ;;  %7002 = vmatmul.msk.f32.gmra.mxu1 %vm3773_vm0, %v3565_v33  ;;  %v3472_v34 = vld [vmem:[%s8132_s10 + $0x2f8] sm:$0xff] }
 0x47d   : > { %v5777_v37 = vpop.f32.mrf.mxu2  ;;  %v6071_v38 = vpop.f32.mrf.mxu3 }
 0x47e   : > { %6711 = vst.msk [vmem:[%s8287_s20 + $0x248] sm:$0xff] %vm6637_vm1, %v6612_v36  ;;  %v6366_v39 = vmax.f32 %v6365_v35, %v5777_v37  ;;  %v3570_v35 = vld [vmem:[%s8132_s10 + $0x608] sm:$0xff] }
 0x480   : > { %v6367_v42 = vmax.f32 %v6366_v39, %v6071_v38 }
 0x481   : > { %v5192_v43 = vpop.f32.mrf.mxu0  ;;  %v5486_v44 = vpop.f32.mrf.mxu1 }
 0x482   : > { %v6515_v47 = vadd.f32 %v8921_v12, %v6367_v42  ;;  %7101 = vmatmul.msk.f32.gmra.mxu2 %vm3773_vm0, %v3664_v40  ;;  %v6368_v48 = vmax.f32 %v5192_v43, %v5486_v44  ;;  %7199 = vmatmul.msk.f32.gmra.mxu3 %vm3773_vm0, %v3762_v41  ;;  %v3669_v42 = vld [vmem:[%s8132_s10 + $0x920] sm:$0xff]  ;;  %v3767_v43 = vld [vmem:[%s8132_s10 + $0xc30] sm:$0xff] }
 0x484   : > { %v6613_v49 = vmax.f32 %v6515_v47, 0.0  ;;  %6905 = vmatmul.msk.f32.gmra.mxu0 %vm3773_vm0, %v3468_v45  ;;  %7003 = vmatmul.msk.f32.gmra.mxu1 %vm3773_vm0, %v3566_v46  ;;  %v3473_v47 = vld [vmem:[%s8132_s10 + $0x300] sm:$0xff] }
 0x485   : > { %v5780_v50 = vpop.f32.mrf.mxu2  ;;  %v6074_v51 = vpop.f32.mrf.mxu3 }
 0x486   : > { %6712 = vst.msk [vmem:[%s8287_s20 + $0x250] sm:$0xff] %vm6637_vm1, %v6613_v49  ;;  %v6369_v52 = vmax.f32 %v6368_v48, %v5780_v50  ;;  %v3571_v48 = vld [vmem:[%s8132_s10 + $0x610] sm:$0xff] }
 0x488   : > { %v6370_v55 = vmax.f32 %v6369_v52, %v6074_v51 }
 0x489   : > { %v5195_v56 = vpop.f32.mrf.mxu0  ;;  %v5489_v57 = vpop.f32.mrf.mxu1 }
 0x48a   : > { %v6516_v60 = vadd.f32 %v8921_v12, %v6370_v55  ;;  %7102 = vmatmul.msk.f32.gmra.mxu2 %vm3773_vm0, %v3665_v53  ;;  %v6371_v61 = vmax.f32 %v5195_v56, %v5489_v57  ;;  %7200 = vmatmul.msk.f32.gmra.mxu3 %vm3773_vm0, %v3763_v54  ;;  %v3670_v55 = vld [vmem:[%s8132_s10 + $0x928] sm:$0xff]  ;;  %v3768_v56 = vld [vmem:[%s8132_s10 + $0xc38] sm:$0xff] }
 0x48c   : > { %v6614_v62 = vmax.f32 %v6516_v60, 0.0  ;;  %6906 = vmatmul.msk.f32.gmra.mxu0 %vm3773_vm0, %v3469_v58  ;;  %7004 = vmatmul.msk.f32.gmra.mxu1 %vm3773_vm0, %v3567_v59  ;;  %v3474_v60 = vld [vmem:[%s8132_s10 + $0x308] sm:$0xff] }
 0x48d   : > { %v5783_v63 = vpop.f32.mrf.mxu2  ;;  %v6077_v0 = vpop.f32.mrf.mxu3 }
 0x48e   : > { %6713 = vst.msk [vmem:[%s8287_s20 + $0x258] sm:$0xff] %vm6637_vm1, %v6614_v62  ;;  %v6372_v1 = vmax.f32 %v6371_v61, %v5783_v63  ;;  %v3572_v61 = vld [vmem:[%s8132_s10 + $0x618] sm:$0xff] }
 0x490   : > { %v6373_v4 = vmax.f32 %v6372_v1, %v6077_v0 }
 0x491   : > { %v5198_v5 = vpop.f32.mrf.mxu0  ;;  %v5492_v6 = vpop.f32.mrf.mxu1 }
 0x492   : > { %v6517_v14 = vadd.f32 %v8921_v12, %v6373_v4  ;;  %7103 = vmatmul.msk.f32.gmra.mxu2 %vm3773_vm0, %v3666_v2  ;;  %v6374_v9 = vmax.f32 %v5198_v5, %v5492_v6  ;;  %7201 = vmatmul.msk.f32.gmra.mxu3 %vm3773_vm0, %v3764_v3 }
 0x494   : > { %v6615_v22 = vmax.f32 %v6517_v14, 0.0  ;;  %6907 = vmatmul.msk.f32.gmra.mxu0 %vm3773_vm0, %v3470_v7  ;;  %7005 = vmatmul.msk.f32.gmra.mxu1 %vm3773_vm0, %v3568_v8 }
 0x495   : > { %v5786_v10 = vpop.f32.mrf.mxu2  ;;  %v6080_v11 = vpop.f32.mrf.mxu3 }
 0x496   : > { %6714 = vst.msk [vmem:[%s8287_s20 + $0x260] sm:$0xff] %vm6637_vm1, %v6615_v22  ;;  %v6375_v13 = vmax.f32 %v6374_v9, %v5786_v10 }
 0x498   : > { %v6376_v17 = vmax.f32 %v6375_v13, %v6080_v11 }
 0x499   : > { %v5201_v18 = vpop.f32.mrf.mxu0  ;;  %v5495_v19 = vpop.f32.mrf.mxu1 }
 0x49a   : > { %v6518_v23 = vadd.f32 %v8921_v12, %v6376_v17  ;;  %7104 = vmatmul.msk.f32.gmra.mxu2 %vm3773_vm0, %v3667_v15  ;;  %v6377_v24 = vmax.f32 %v5201_v18, %v5495_v19  ;;  %7202 = vmatmul.msk.f32.gmra.mxu3 %vm3773_vm0, %v3765_v16 }
 0x49c   : > { %v6616_v25 = vmax.f32 %v6518_v23, 0.0  ;;  %6908 = vmatmul.msk.f32.gmra.mxu0 %vm3773_vm0, %v3471_v20  ;;  %7006 = vmatmul.msk.f32.gmra.mxu1 %vm3773_vm0, %v3569_v21 }
 0x49d   : > { %v5789_v26 = vpop.f32.mrf.mxu2  ;;  %v6083_v27 = vpop.f32.mrf.mxu3 }
 0x49e   : > { %6715 = vst.msk [vmem:[%s8287_s20 + $0x268] sm:$0xff] %vm6637_vm1, %v6616_v25  ;;  %v6378_v28 = vmax.f32 %v6377_v24, %v5789_v26 }
 0x4a0   : > { %v6379_v31 = vmax.f32 %v6378_v28, %v6083_v27 }
 0x4a1   : > { %v5204_v32 = vpop.f32.mrf.mxu0  ;;  %v5498_v33 = vpop.f32.mrf.mxu1 }
 0x4a2   : > { %v6519_v36 = vadd.f32 %v8921_v12, %v6379_v31  ;;  %7105 = vmatmul.msk.f32.gmra.mxu2 %vm3773_vm0, %v3668_v29  ;;  %v6380_v37 = vmax.f32 %v5204_v32, %v5498_v33  ;;  %7203 = vmatmul.msk.f32.gmra.mxu3 %vm3773_vm0, %v3766_v30 }
 0x4a4   : > { %v6617_v38 = vmax.f32 %v6519_v36, 0.0  ;;  %6909 = vmatmul.msk.f32.gmra.mxu0 %vm3773_vm0, %v3472_v34  ;;  %7007 = vmatmul.msk.f32.gmra.mxu1 %vm3773_vm0, %v3570_v35 }
 0x4a5   : > { %v5792_v39 = vpop.f32.mrf.mxu2  ;;  %v6086_v40 = vpop.f32.mrf.mxu3 }
 0x4a6   : > { %6716 = vst.msk [vmem:[%s8287_s20 + $0x270] sm:$0xff] %vm6637_vm1, %v6617_v38  ;;  %v6381_v41 = vmax.f32 %v6380_v37, %v5792_v39 }
 0x4a8   : > { %v6382_v44 = vmax.f32 %v6381_v41, %v6086_v40 }
 0x4a9   : > { %v5207_v45 = vpop.f32.mrf.mxu0  ;;  %v5501_v46 = vpop.f32.mrf.mxu1 }
 0x4aa   : > { %v6520_v49 = vadd.f32 %v8921_v12, %v6382_v44  ;;  %7106 = vmatmul.msk.f32.gmra.mxu2 %vm3773_vm0, %v3669_v42  ;;  %v6383_v50 = vmax.f32 %v5207_v45, %v5501_v46  ;;  %7204 = vmatmul.msk.f32.gmra.mxu3 %vm3773_vm0, %v3767_v43 }
 0x4ac   : > { %v6618_v51 = vmax.f32 %v6520_v49, 0.0  ;;  %6910 = vmatmul.msk.f32.gmra.mxu0 %vm3773_vm0, %v3473_v47  ;;  %7008 = vmatmul.msk.f32.gmra.mxu1 %vm3773_vm0, %v3571_v48 }
 0x4ad   : > { %v5795_v52 = vpop.f32.mrf.mxu2  ;;  %v6089_v53 = vpop.f32.mrf.mxu3 }
 0x4ae   : > { %6717 = vst.msk [vmem:[%s8287_s20 + $0x278] sm:$0xff] %vm6637_vm1, %v6618_v51  ;;  %v6384_v54 = vmax.f32 %v6383_v50, %v5795_v52 }
 0x4b0   : > { %v6385_v57 = vmax.f32 %v6384_v54, %v6089_v53 }
 0x4b1   : > { %v5210_v58 = vpop.f32.mrf.mxu0  ;;  %v5504_v59 = vpop.f32.mrf.mxu1 }
 0x4b2   : > { %v6521_v62 = vadd.f32 %v8921_v12, %v6385_v57  ;;  %7107 = vmatmul.msk.f32.gmra.mxu2 %vm3773_vm0, %v3670_v55  ;;  %v6386_v63 = vmax.f32 %v5210_v58, %v5504_v59  ;;  %7205 = vmatmul.msk.f32.gmra.mxu3 %vm3773_vm0, %v3768_v56 }
 0x4b4   : > { %v6619_v0 = vmax.f32 %v6521_v62, 0.0  ;;  %6911 = vmatmul.msk.f32.gmra.mxu0 %vm3773_vm0, %v3474_v60  ;;  %7009 = vmatmul.msk.f32.gmra.mxu1 %vm3773_vm0, %v3572_v61 }
 0x4b5   : > { %v5798_v1 = vpop.f32.mrf.mxu2  ;;  %v6092_v2 = vpop.f32.mrf.mxu3 }
 0x4b6   : > { %6718 = vst.msk [vmem:[%s8287_s20 + $0x280] sm:$0xff] %vm6637_vm1, %v6619_v0  ;;  %v6387_v3 = vmax.f32 %v6386_v63, %v5798_v1 }
 0x4b8   : > { %v6388_v4 = vmax.f32 %v6387_v3, %v6092_v2 }
 0x4b9   : > { %v5213_v5 = vpop.f32.mrf.mxu0  ;;  %v5507_v6 = vpop.f32.mrf.mxu1 }
 0x4ba   : > { %v6522_v7 = vadd.f32 %v8921_v12, %v6388_v4  ;;  %v6389_v8 = vmax.f32 %v5213_v5, %v5507_v6 }
 0x4bc   : > { %v6620_v14 = vmax.f32 %v6522_v7, 0.0 }
 0x4bd   : > { %v5801_v9 = vpop.f32.mrf.mxu2  ;;  %v6095_v22 = vpop.f32.mrf.mxu3 }
 0x4be   : > { %6719 = vst.msk [vmem:[%s8287_s20 + $0x288] sm:$0xff] %vm6637_vm1, %v6620_v14  ;;  %v6390_v10 = vmax.f32 %v6389_v8, %v5801_v9 }
 0x4c0   : > { %v6391_v11 = vmax.f32 %v6390_v10, %v6095_v22 }
 0x4c1   : > { %v5216_v13 = vpop.f32.mrf.mxu0  ;;  %v5510_v15 = vpop.f32.mrf.mxu1 }
 0x4c2   : > { %v6523_v16 = vadd.f32 %v8921_v12, %v6391_v11  ;;  %v6392_v17 = vmax.f32 %v5216_v13, %v5510_v15 }
 0x4c4   : > { %v6621_v18 = vmax.f32 %v6523_v16, 0.0 }
 0x4c5   : > { %v5804_v19 = vpop.f32.mrf.mxu2  ;;  %v6098_v20 = vpop.f32.mrf.mxu3 }
 0x4c6   : > { %6720 = vst.msk [vmem:[%s8287_s20 + $0x290] sm:$0xff] %vm6637_vm1, %v6621_v18  ;;  %v6393_v21 = vmax.f32 %v6392_v17, %v5804_v19 }
 0x4c8   : > { %v6394_v23 = vmax.f32 %v6393_v21, %v6098_v20 }
 0x4c9   : > { %v5219_v24 = vpop.f32.mrf.mxu0  ;;  %v5513_v25 = vpop.f32.mrf.mxu1 }
 0x4ca   : > { %v6524_v26 = vadd.f32 %v8921_v12, %v6394_v23  ;;  %v6395_v27 = vmax.f32 %v5219_v24, %v5513_v25 }
 0x4cc   : > { %v6622_v28 = vmax.f32 %v6524_v26, 0.0  ;;  %v9213_v26 = vld [vmem:[%s9251_s2] ss:$0 sm:$0xff] }
 0x4cd   : > { %v5807_v29 = vpop.f32.mrf.mxu2  ;;  %v6101_v30 = vpop.f32.mrf.mxu3 }
 0x4ce   : > { %6721 = vst.msk [vmem:[%s8287_s20 + $0x298] sm:$0xff] %vm6637_vm1, %v6622_v28  ;;  %v6396_v31 = vmax.f32 %v6395_v27, %v5807_v29 }
 0x4d0   : > { %v6397_v32 = vmax.f32 %v6396_v31, %v6101_v30 }
 0x4d1   : > { %v5222_v33 = vpop.f32.mrf.mxu0  ;;  %v5516_v34 = vpop.f32.mrf.mxu1 }
 0x4d2   : > { %v6525_v35 = vadd.f32 %v8921_v12, %v6397_v32  ;;  %v6398_v36 = vmax.f32 %v5222_v33, %v5516_v34 }
 0x4d4   : > { %v6623_v37 = vmax.f32 %v6525_v35, 0.0 }
 0x4d5   : > { %v5810_v38 = vpop.f32.mrf.mxu2  ;;  %v6104_v39 = vpop.f32.mrf.mxu3 }
 0x4d6   : > { %6722 = vst.msk [vmem:[%s8287_s20 + $0x2a0] sm:$0xff] %vm6637_vm1, %v6623_v37  ;;  %v6399_v40 = vmax.f32 %v6398_v36, %v5810_v38 }
 0x4d8   : > { %v6400_v41 = vmax.f32 %v6399_v40, %v6104_v39 }
 0x4d9   : > { %v5225_v42 = vpop.f32.mrf.mxu0  ;;  %v5519_v43 = vpop.f32.mrf.mxu1 }
 0x4da   : > { %v6526_v44 = vadd.f32 %v8921_v12, %v6400_v41  ;;  %v6401_v45 = vmax.f32 %v5225_v42, %v5519_v43 }
 0x4dc   : > { %v6624_v46 = vmax.f32 %v6526_v44, 0.0 }
 0x4dd   : > { %v5813_v47 = vpop.f32.mrf.mxu2  ;;  %v6107_v48 = vpop.f32.mrf.mxu3 }
 0x4de   : > { %6723 = vst.msk [vmem:[%s8287_s20 + $0x2a8] sm:$0xff] %vm6637_vm1, %v6624_v46  ;;  %v6402_v49 = vmax.f32 %v6401_v45, %v5813_v47 }
 0x4e0   : > { %v6403_v50 = vmax.f32 %v6402_v49, %v6107_v48 }
 0x4e1   : > { %v5228_v51 = vpop.f32.mrf.mxu0  ;;  %v5522_v52 = vpop.f32.mrf.mxu1 }
 0x4e2   : > { %v6527_v53 = vadd.f32 %v8921_v12, %v6403_v50  ;;  %v6404_v54 = vmax.f32 %v5228_v51, %v5522_v52 }
 0x4e4   : > { %v6625_v55 = vmax.f32 %v6527_v53, 0.0 }
 0x4e5   : > { %v5816_v56 = vpop.f32.mrf.mxu2  ;;  %v6110_v57 = vpop.f32.mrf.mxu3 }
 0x4e6   : > { %6724 = vst.msk [vmem:[%s8287_s20 + $0x2b0] sm:$0xff] %vm6637_vm1, %v6625_v55  ;;  %v6405_v58 = vmax.f32 %v6404_v54, %v5816_v56 }
 0x4e8   : > { %v6406_v59 = vmax.f32 %v6405_v58, %v6110_v57 }
 0x4e9   : > { %v5231_v60 = vpop.f32.mrf.mxu0  ;;  %v5525_v61 = vpop.f32.mrf.mxu1 }
 0x4ea   : > { %v6528_v62 = vadd.f32 %v8921_v12, %v6406_v59  ;;  %v6407_v63 = vmax.f32 %v5231_v60, %v5525_v61 }
 0x4ec   : > { %v6626_v0 = vmax.f32 %v6528_v62, 0.0 }
 0x4ed   : > { %v5819_v1 = vpop.f32.mrf.mxu2  ;;  %v6113_v2 = vpop.f32.mrf.mxu3 }
 0x4ee   : > { %6725 = vst.msk [vmem:[%s8287_s20 + $0x2b8] sm:$0xff] %vm6637_vm1, %v6626_v0  ;;  %v6408_v3 = vmax.f32 %v6407_v63, %v5819_v1 }
 0x4f0   : > { %v6409_v4 = vmax.f32 %v6408_v3, %v6113_v2 }
 0x4f1   : > { %v5234_v5 = vpop.f32.mrf.mxu0  ;;  %v5528_v6 = vpop.f32.mrf.mxu1 }
 0x4f2   : > { %v6529_v7 = vadd.f32 %v8921_v12, %v6409_v4  ;;  %v6410_v8 = vmax.f32 %v5234_v5, %v5528_v6 }
 0x4f4   : > { %v6627_v14 = vmax.f32 %v6529_v7, 0.0 }
 0x4f5   : > { %v5822_v9 = vpop.f32.mrf.mxu2  ;;  %v6116_v22 = vpop.f32.mrf.mxu3 }
 0x4f6   : > { %6726 = vst.msk [vmem:[%s8287_s20 + $0x2c0] sm:$0xff] %vm6637_vm1, %v6627_v14  ;;  %v6411_v10 = vmax.f32 %v6410_v8, %v5822_v9 }
 0x4f8   : > { %v6412_v11 = vmax.f32 %v6411_v10, %v6116_v22 }
 0x4f9   : > { %v5237_v13 = vpop.f32.mrf.mxu0  ;;  %v5531_v15 = vpop.f32.mrf.mxu1 }
 0x4fa   : > { %v6530_v16 = vadd.f32 %v8921_v12, %v6412_v11  ;;  %v6413_v17 = vmax.f32 %v5237_v13, %v5531_v15 }
 0x4fc   : > { %v6628_v18 = vmax.f32 %v6530_v16, 0.0 }
 0x4fd   : > { %v5825_v19 = vpop.f32.mrf.mxu2  ;;  %v6119_v20 = vpop.f32.mrf.mxu3 }
 0x4fe   : > { %6727 = vst.msk [vmem:[%s8287_s20 + $0x2c8] sm:$0xff] %vm6637_vm1, %v6628_v18  ;;  %v6414_v21 = vmax.f32 %v6413_v17, %v5825_v19 }
 0x500   : > { %v6415_v23 = vmax.f32 %v6414_v21, %v6119_v20 }
 0x501   : > { %v5240_v24 = vpop.f32.mrf.mxu0  ;;  %v5534_v25 = vpop.f32.mrf.mxu1 }
 0x502   : > { %v6531_v27 = vadd.f32 %v9213_v26, %v6415_v23  ;;  %v6416_v12 = vmax.f32 %v5240_v24, %v5534_v25 }
 0x504   : > { %v6629_v28 = vmax.f32 %v6531_v27, 0.0 }
 0x505   : > { %v5828_v29 = vpop.f32.mrf.mxu2  ;;  %v6122_v30 = vpop.f32.mrf.mxu3 }
 0x506   : > { %6728 = vst.msk [vmem:[%s8287_s20 + $0x2d0] sm:$0xff] %vm6637_vm1, %v6629_v28  ;;  %v6417_v31 = vmax.f32 %v6416_v12, %v5828_v29 }
 0x508   : > { %v6418_v32 = vmax.f32 %v6417_v31, %v6122_v30 }
 0x509   : > { %v5243_v33 = vpop.f32.mrf.mxu0  ;;  %v5537_v34 = vpop.f32.mrf.mxu1 }
 0x50a   : > { %v6532_v35 = vadd.f32 %v9213_v26, %v6418_v32  ;;  %v6419_v36 = vmax.f32 %v5243_v33, %v5537_v34 }
 0x50c   : > { %v6630_v37 = vmax.f32 %v6532_v35, 0.0 }
 0x50d   : > { %v5831_v38 = vpop.f32.mrf.mxu2  ;;  %v6125_v39 = vpop.f32.mrf.mxu3 }
 0x50e   : > { %6729 = vst.msk [vmem:[%s8287_s20 + $0x2d8] sm:$0xff] %vm6637_vm1, %v6630_v37  ;;  %v6420_v40 = vmax.f32 %v6419_v36, %v5831_v38 }
 0x510   : > { %v6421_v41 = vmax.f32 %v6420_v40, %v6125_v39 }
 0x511   : > { %v5246_v42 = vpop.f32.mrf.mxu0  ;;  %v5540_v43 = vpop.f32.mrf.mxu1 }
 0x512   : > { %v6533_v44 = vadd.f32 %v9213_v26, %v6421_v41  ;;  %v6422_v45 = vmax.f32 %v5246_v42, %v5540_v43 }
 0x514   : > { %v6631_v46 = vmax.f32 %v6533_v44, 0.0 }
 0x515   : > { %v5834_v47 = vpop.f32.mrf.mxu2  ;;  %v6128_v48 = vpop.f32.mrf.mxu3 }
 0x516   : > { %6730 = vst.msk [vmem:[%s8287_s20 + $0x2e0] sm:$0xff] %vm6637_vm1, %v6631_v46  ;;  %v6423_v49 = vmax.f32 %v6422_v45, %v5834_v47 }
 0x518   : > { %v6424_v50 = vmax.f32 %v6423_v49, %v6128_v48 }
 0x519   : > { %v5249_v51 = vpop.f32.mrf.mxu0  ;;  %v5543_v52 = vpop.f32.mrf.mxu1 }
 0x51a   : > { %v6534_v53 = vadd.f32 %v9213_v26, %v6424_v50  ;;  %v6425_v54 = vmax.f32 %v5249_v51, %v5543_v52 }
 0x51c   : > { %v6632_v55 = vmax.f32 %v6534_v53, 0.0 }
 0x51d   : > { %v5837_v56 = vpop.f32.mrf.mxu2  ;;  %v6131_v57 = vpop.f32.mrf.mxu3 }
 0x51e   : > { %6731 = vst.msk [vmem:[%s8287_s20 + $0x2e8] sm:$0xff] %vm6637_vm1, %v6632_v55  ;;  %v6426_v58 = vmax.f32 %v6425_v54, %v5837_v56 }
 0x520   : > { %v6427_v59 = vmax.f32 %v6426_v58, %v6131_v57 }
 0x521   : > { %v5252_v60 = vpop.f32.mrf.mxu0  ;;  %v5546_v61 = vpop.f32.mrf.mxu1 }
 0x522   : > { %v6535_v62 = vadd.f32 %v9213_v26, %v6427_v59  ;;  %v6428_v63 = vmax.f32 %v5252_v60, %v5546_v61 }
 0x524   : > { %v6633_v0 = vmax.f32 %v6535_v62, 0.0 }
 0x525   : > { %v5840_v1 = vpop.f32.mrf.mxu2  ;;  %v6134_v2 = vpop.f32.mrf.mxu3 }
 0x526   : > { %6732 = vst.msk [vmem:[%s8287_s20 + $0x2f0] sm:$0xff] %vm6637_vm1, %v6633_v0  ;;  %v6429_v3 = vmax.f32 %v6428_v63, %v5840_v1 }
 0x528   : > { %v6430_v4 = vmax.f32 %v6429_v3, %v6134_v2 }
 0x529   : > { %v5255_v5 = vpop.f32.mrf.mxu0  ;;  %v5549_v6 = vpop.f32.mrf.mxu1 }
 0x52a   : > { %v6536_v7 = vadd.f32 %v9213_v26, %v6430_v4  ;;  %v6431_v8 = vmax.f32 %v5255_v5, %v5549_v6 }
 0x52c   : > { %v6634_v14 = vmax.f32 %v6536_v7, 0.0 }
 0x52d   : > { %v5843_v9 = vpop.f32.mrf.mxu2  ;;  %v6137_v22 = vpop.f32.mrf.mxu3 }
 0x52e   : > { %6733 = vst.msk [vmem:[%s8287_s20 + $0x2f8] sm:$0xff] %vm6637_vm1, %v6634_v14  ;;  %v6432_v10 = vmax.f32 %v6431_v8, %v5843_v9 }
 0x530   : > { %v6433_v11 = vmax.f32 %v6432_v10, %v6137_v22 }
 0x531   : > { %v5258_v13 = vpop.f32.mrf.mxu0  ;;  %v5552_v15 = vpop.f32.mrf.mxu1 }
 0x532   : > { %v6537_v16 = vadd.f32 %v9213_v26, %v6433_v11  ;;  %v6434_v17 = vmax.f32 %v5258_v13, %v5552_v15 }
 0x534   : > { %v6635_v18 = vmax.f32 %v6537_v16, 0.0 }
 0x535   : > { %v5846_v19 = vpop.f32.mrf.mxu2  ;;  %v6140_v20 = vpop.f32.mrf.mxu3 }
 0x536   : > { %6734 = vst.msk [vmem:[%s8287_s20 + $0x300] sm:$0xff] %vm6637_vm1, %v6635_v18  ;;  %v6435_v21 = vmax.f32 %v6434_v17, %v5846_v19 }
 0x538   : > { %v6436_v23 = vmax.f32 %v6435_v21, %v6140_v20 }
 0x53a   : > { %v6538_v24 = vadd.f32 %v9213_v26, %v6436_v23 }
 0x53c   : > { %v6636_v25 = vmax.f32 %v6538_v24, 0.0 }
 0x53e   : > { %6735 = vst.msk [vmem:[%s8287_s20 + $0x308] sm:$0xff] %vm6637_vm1, %v6636_v25 }
 0x53f PF: > { %p10_p9 = scmp.ge.s32.totalorder %s7312_s16, 4   ;;  %s9253_s12 = smov %s7269_s13 }
 0x540   : > { %s9254_s13 = smov %s7321_s19  ;;  %s9255_s14 = smov %s7312_s16 }
 0x541   :  { %12 = sbr.rel (!%p10_p9) target bundleno = 2 (0x2), region = 125 }

// kernel: net_forward.4
= control target key start
LH: loop header
LB: loop body
LE: loop exit
PB: predicated region body
PF: predicated region fallthrough
CT: control target
= control target key end

     0   :  { %s778_s12 = smov 0   ;;  %s780_s13 = smov 0   ;;  %s1078_s0 = inlined_call_operand.vmem [shape: f32[4,200,200], index: 0, kind: input, shape index: {}]   ;;  %s1079_s1 = inlined_call_operand.vmem [shape: f32[200,128], index: 1, kind: input, shape index: {}]   ;;  %s1080_s2 = inlined_call_operand.vmem [shape: f32[1,128], index: 2, kind: input, shape index: {}]   ;;  %s1081_s3 = inlined_call_operand.vmem [shape: f32[200,16], index: 3, kind: output, shape index: {}]  }
   0x1   :  { %s782_s14 = smov 0  }
   0x2 LB: > { %s649_s15 = sadd.s32 4294967295, %s756_s14   ;;  %s795_s16 = sadd.s32 1, %s756_s14   ;;  %s756_s14 = sphi %s782_s14, %s1084_s14   ;;  %s752_s13 = sphi %s780_s13, %s1083_s13   ;;  %s748_s12 = sphi %s778_s12, %s1082_s12  }
   0x3   : > { %s17_s17 = ssub.s32 %s756_s14, %s795_s16  ;;  %s20_s18 = sadd.s32 1, %s752_s13 }
   0x4   : > { %p18_p0 = scmp.eq.s32.totalorder %s17_s17, 0  ;;  %p27_p1 = scmp.ne.s32.totalorder %s752_s13, %s748_s12 }
   0x5   : > { %p28_p2 = scmp.eq.s32.totalorder %s756_s14, 0  ;;  %p652_p4 = scmp.ge.s32.totalorder %s756_s14, 5 }
   0x6   : > { %s804_s19 = scalar_select %p18_p0, %s752_s13, %s20_s18  }
   0x7   : > { %p29_p3 = por %p28_p2, %p27_p1  ;;  %127 = sbr.rel (%p652_p4) target bundleno = 57 (0x39), region = 24 }
   0xc   : > { %130 = sbr.rel (!%p29_p3) target bundleno = 57 (0x39), region = 28  ;;  %s132_s20 = sand.u32 (%p29_p3), 1, %s752_s13  }
   0xd   : > { %s681_s21 = smul.u32 (%p29_p3), 80, %s756_s14 }
   0xe   : > { %s707_s22 = smul.u32 (%p29_p3), 320, %s132_s20 }
   0xf   : > { %s812_s25 = scalar_lea.vmem (%p29_p3), %s1078_s0, %s681_s21 }
  0x10   : > { %v151_v0 = vld [vmem:[%s812_s25] sm:$0xff] (%p29_p3)  ;;  %v153_v1 = vld [vmem:[%s812_s25 + $0x8] sm:$0xff] (%p29_p3)  ;;  %v155_v2 = vld [vmem:[%s812_s25 + $0x10] sm:$0xff] (%p29_p3)  ;;  %s817_s26 = scalar_lea.vmem (%p29_p3), [#allocation2], %s707_s22 }
  0x11   : > { %152 = vst [vmem:[%s817_s26] sm:$0xff] %v151_v0  ;;  %v157_v3 = vld [vmem:[%s812_s25 + $0x18] sm:$0xff]  ;;  %v159_v4 = vld [vmem:[%s812_s25 + $0x20] sm:$0xff]  ;;  %v161_v5 = vld [vmem:[%s812_s25 + $0x28] sm:$0xff] }
  0x12   : > { %154 = vst [vmem:[%s817_s26 + $0x8] sm:$0xff] %v153_v1  ;;  %v163_v6 = vld [vmem:[%s812_s25 + $0x30] sm:$0xff]  ;;  %v165_v7 = vld [vmem:[%s812_s25 + $0x38] sm:$0xff]  ;;  %v167_v8 = vld [vmem:[%s812_s25 + $0x40] sm:$0xff] }
  0x13   : > { %156 = vst [vmem:[%s817_s26 + $0x10] sm:$0xff] %v155_v2  ;;  %v169_v9 = vld [vmem:[%s812_s25 + $0x48] sm:$0xff]  ;;  %v171_v10 = vld [vmem:[%s812_s25 + $0x190] sm:$0xff]  ;;  %v173_v11 = vld [vmem:[%s812_s25 + $0x198] sm:$0xff] }
  0x14   : > { %158 = vst [vmem:[%s817_s26 + $0x18] sm:$0xff] %v157_v3  ;;  %v175_v12 = vld [vmem:[%s812_s25 + $0x1a0] sm:$0xff]  ;;  %v177_v13 = vld [vmem:[%s812_s25 + $0x1a8] sm:$0xff]  ;;  %v179_v14 = vld [vmem:[%s812_s25 + $0x1b0] sm:$0xff] }
  0x15   : > { %160 = vst [vmem:[%s817_s26 + $0x20] sm:$0xff] %v159_v4  ;;  %v181_v15 = vld [vmem:[%s812_s25 + $0x1b8] sm:$0xff]  ;;  %v183_v16 = vld [vmem:[%s812_s25 + $0x1c0] sm:$0xff]  ;;  %v185_v17 = vld [vmem:[%s812_s25 + $0x1c8] sm:$0xff] }
  0x16   : > { %162 = vst [vmem:[%s817_s26 + $0x28] sm:$0xff] %v161_v5  ;;  %v187_v18 = vld [vmem:[%s812_s25 + $0x1d0] sm:$0xff]  ;;  %v189_v19 = vld [vmem:[%s812_s25 + $0x1d8] sm:$0xff]  ;;  %v191_v20 = vld [vmem:[%s812_s25 + $0x320] sm:$0xff] }
  0x17   : > { %164 = vst [vmem:[%s817_s26 + $0x30] sm:$0xff] %v163_v6  ;;  %v193_v21 = vld [vmem:[%s812_s25 + $0x328] sm:$0xff]  ;;  %v195_v22 = vld [vmem:[%s812_s25 + $0x330] sm:$0xff]  ;;  %v197_v23 = vld [vmem:[%s812_s25 + $0x338] sm:$0xff] }
  0x18   : > { %166 = vst [vmem:[%s817_s26 + $0x38] sm:$0xff] %v165_v7  ;;  %v199_v24 = vld [vmem:[%s812_s25 + $0x340] sm:$0xff]  ;;  %v201_v25 = vld [vmem:[%s812_s25 + $0x348] sm:$0xff]  ;;  %v203_v26 = vld [vmem:[%s812_s25 + $0x350] sm:$0xff] }
  0x19   : > { %168 = vst [vmem:[%s817_s26 + $0x40] sm:$0xff] %v167_v8  ;;  %v205_v27 = vld [vmem:[%s812_s25 + $0x358] sm:$0xff]  ;;  %v207_v28 = vld [vmem:[%s812_s25 + $0x360] sm:$0xff]  ;;  %v209_v29 = vld [vmem:[%s812_s25 + $0x368] sm:$0xff] }
  0x1a   : > { %170 = vst [vmem:[%s817_s26 + $0x48] sm:$0xff] %v169_v9  ;;  %v211_v30 = vld [vmem:[%s812_s25 + $0x4b0] sm:$0xff]  ;;  %v213_v31 = vld [vmem:[%s812_s25 + $0x4b8] sm:$0xff]  ;;  %v215_v32 = vld [vmem:[%s812_s25 + $0x4c0] sm:$0xff] }
  0x1b   : > { %172 = vst [vmem:[%s817_s26 + $0x50] sm:$0xff] %v171_v10  ;;  %v217_v33 = vld [vmem:[%s812_s25 + $0x4c8] sm:$0xff]  ;;  %v219_v34 = vld [vmem:[%s812_s25 + $0x4d0] sm:$0xff]  ;;  %v221_v35 = vld [vmem:[%s812_s25 + $0x4d8] sm:$0xff] }
  0x1c   : > { %174 = vst [vmem:[%s817_s26 + $0x58] sm:$0xff] %v173_v11  ;;  %v223_v36 = vld [vmem:[%s812_s25 + $0x4e0] sm:$0xff]  ;;  %v225_v37 = vld [vmem:[%s812_s25 + $0x4e8] sm:$0xff]  ;;  %v227_v38 = vld [vmem:[%s812_s25 + $0x4f0] sm:$0xff] }
  0x1d   : > { %176 = vst [vmem:[%s817_s26 + $0x60] sm:$0xff] %v175_v12  ;;  %v229_v39 = vld [vmem:[%s812_s25 + $0x4f8] sm:$0xff] }
  0x1e   : > { %178 = vst [vmem:[%s817_s26 + $0x68] sm:$0xff] %v177_v13 }
  0x1f   : > { %180 = vst [vmem:[%s817_s26 + $0x70] sm:$0xff] %v179_v14 }
  0x20   : > { %182 = vst [vmem:[%s817_s26 + $0x78] sm:$0xff] %v181_v15 }
  0x21   : > { %184 = vst [vmem:[%s817_s26 + $0x80] sm:$0xff] %v183_v16 }
  0x22   : > { %186 = vst [vmem:[%s817_s26 + $0x88] sm:$0xff] %v185_v17 }
  0x23   : > { %188 = vst [vmem:[%s817_s26 + $0x90] sm:$0xff] %v187_v18 }
  0x24   : > { %190 = vst [vmem:[%s817_s26 + $0x98] sm:$0xff] %v189_v19 }
  0x25   : > { %192 = vst [vmem:[%s817_s26 + $0xa0] sm:$0xff] %v191_v20 }
  0x26   : > { %194 = vst [vmem:[%s817_s26 + $0xa8] sm:$0xff] %v193_v21 }
  0x27   : > { %196 = vst [vmem:[%s817_s26 + $0xb0] sm:$0xff] %v195_v22 }
  0x28   : > { %198 = vst [vmem:[%s817_s26 + $0xb8] sm:$0xff] %v197_v23 }
  0x29   : > { %200 = vst [vmem:[%s817_s26 + $0xc0] sm:$0xff] %v199_v24 }
  0x2a   : > { %202 = vst [vmem:[%s817_s26 + $0xc8] sm:$0xff] %v201_v25 }
  0x2b   : > { %204 = vst [vmem:[%s817_s26 + $0xd0] sm:$0xff] %v203_v26 }
  0x2c   : > { %206 = vst [vmem:[%s817_s26 + $0xd8] sm:$0xff] %v205_v27 }
  0x2d   : > { %208 = vst [vmem:[%s817_s26 + $0xe0] sm:$0xff] %v207_v28 }
  0x2e   : > { %210 = vst [vmem:[%s817_s26 + $0xe8] sm:$0xff] %v209_v29 }
  0x2f   : > { %212 = vst [vmem:[%s817_s26 + $0xf0] sm:$0xff] %v211_v30 }
  0x30   : > { %214 = vst [vmem:[%s817_s26 + $0xf8] sm:$0xff] %v213_v31 }
  0x31   : > { %216 = vst [vmem:[%s817_s26 + $0x100] sm:$0xff] %v215_v32 }
  0x32   : > { %218 = vst [vmem:[%s817_s26 + $0x108] sm:$0xff] %v217_v33 }
  0x33   : > { %220 = vst [vmem:[%s817_s26 + $0x110] sm:$0xff] %v219_v34 }
  0x34   : > { %222 = vst [vmem:[%s817_s26 + $0x118] sm:$0xff] %v221_v35 }
  0x35   : > { %224 = vst [vmem:[%s817_s26 + $0x120] sm:$0xff] %v223_v36 }
  0x36   : > { %226 = vst [vmem:[%s817_s26 + $0x128] sm:$0xff] %v225_v37 }
  0x37   : > { %228 = vst [vmem:[%s817_s26 + $0x130] sm:$0xff] %v227_v38 }
  0x38   : > { %230 = vst [vmem:[%s817_s26 + $0x138] sm:$0xff] %v229_v39 }
  0x39 PF: > { %p655_p5 = scmp.ge.s32.totalorder %s756_s14, 1  ;;  %p235_p6 = scmp.lt.s32.totalorder %s756_s14, 6 }
  0x3b   : > { %p236_p7 = pnand %p655_p5, %p235_p6 }
  0x3c   : > { %s242_s24 = sand.u32 (!%p236_p7), 1, %s748_s12   ;;  %s266_s9 = smul.u32 (!%p236_p7), 5, %s649_s15 }
  0x3d   : > { %239 = sbr.rel (%p236_p7) target bundleno = 320 (0x140), region = 51 }
  0x3e   : > { %s708_s12 = smul.u32 (!%p236_p7), 320, %s242_s24  ;;  %p267_p8 = scmp.lt.s32.totalorder (!%p236_p7), %s266_s9, 24 }
  0x40   : > { %s953_s22 = scalar_lea.vmem (!%p236_p7), [#allocation2], %s708_s12 }
  0x42   : > { %v327_v40 = vld [vmem:[%s1079_s1 + $0x78] sm:$0xff]  ;;  %v336_v41 = vld [vmem:[%s1079_s1 + $0xc0] sm:$0xff]  ;;  %v326_v42 = vld [vmem:[%s1079_s1 + $0x70] sm:$0xff]  ;;  %vm337_vm0 = vcmask 588800   ;;  %s1086_s9 = smov (!%p267_p8, %s266_s9), 24  ;;  %vm581_vm1 = vcmask 130048  }
  0x43   : > { %398 = vmatpush.msra.mxu0 %v327_v40  ;;  %682 = vmatpush.msra.mxu2 %v327_v40  ;;  %v335_v43 = vld [vmem:[%s1079_s1 + $0xb8] sm:$0xff]  ;;  %v325_v44 = vld [vmem:[%s1079_s1 + $0x68] sm:$0xff]  ;;  %v334_v45 = vld [vmem:[%s1079_s1 + $0xb0] sm:$0xff]  ;;  %s656_s10 = sshll.u32 %s1086_s9, 3 }
  0x44   : > { %482 = vmatpush.msra.mxu1 %v336_v41  ;;  %698 = vmatpush.msra.mxu3 %v336_v41  ;;  %v324_v46 = vld [vmem:[%s1079_s1 + $0x60] sm:$0xff]  ;;  %v333_v47 = vld [vmem:[%s1079_s1 + $0xa8] sm:$0xff]  ;;  %v323_v48 = vld [vmem:[%s1079_s1 + $0x58] sm:$0xff]  ;;  %s1052_s18 = scalar_lea.vmem %s1081_s3, %s656_s10 }
  0x45   : > { %399 = vmatpush.msra.mxu0 %v326_v42  ;;  %683 = vmatpush.msra.mxu2 %v326_v42  ;;  %v332_v49 = vld [vmem:[%s1079_s1 + $0xa0] sm:$0xff]  ;;  %v322_v50 = vld [vmem:[%s1079_s1 + $0x50] sm:$0xff]  ;;  %v331_v51 = vld [vmem:[%s1079_s1 + $0x98] sm:$0xff] }
  0x46   : > { %483 = vmatpush.msra.mxu1 %v335_v43  ;;  %699 = vmatpush.msra.mxu3 %v335_v43  ;;  %v321_v52 = vld [vmem:[%s1079_s1 + $0x48] sm:$0xff]  ;;  %v330_v53 = vld [vmem:[%s1079_s1 + $0x90] sm:$0xff]  ;;  %v320_v54 = vld [vmem:[%s1079_s1 + $0x40] sm:$0xff] }
  0x47   : > { %400 = vmatpush.msra.mxu0 %v325_v44  ;;  %684 = vmatpush.msra.mxu2 %v325_v44  ;;  %v329_v55 = vld [vmem:[%s1079_s1 + $0x88] sm:$0xff]  ;;  %v319_v56 = vld [vmem:[%s1079_s1 + $0x38] sm:$0xff]  ;;  %v328_v57 = vld [vmem:[%s1079_s1 + $0x80] sm:$0xff] }
  0x48   : > { %484 = vmatpush.msra.mxu1 %v334_v45  ;;  %700 = vmatpush.msra.mxu3 %v334_v45  ;;  %v273_v58 = vld [vmem:[%s953_s22 + $0x8] sm:$0xff]  ;;  %v318_v59 = vld [vmem:[%s1079_s1 + $0x30] sm:$0xff]  ;;  %v295_v60 = vld [vmem:[%s953_s22 + $0xb8] sm:$0xff] }
  0x49   : > { %401 = vmatpush.msra.mxu0 %v324_v46  ;;  %685 = vmatpush.msra.mxu2 %v324_v46  ;;  %v317_v61 = vld [vmem:[%s1079_s1 + $0x28] sm:$0xff]  ;;  %v316_v62 = vld [vmem:[%s1079_s1 + $0x20] sm:$0xff]  ;;  %v315_v63 = vld [vmem:[%s1079_s1 + $0x18] sm:$0xff] }
  0x4a   : > { %485 = vmatpush.msra.mxu1 %v333_v47  ;;  %701 = vmatpush.msra.mxu3 %v333_v47  ;;  %v275_v0 = vld [vmem:[%s953_s22 + $0x18] sm:$0xff]  ;;  %v314_v1 = vld [vmem:[%s1079_s1 + $0x10] sm:$0xff]  ;;  %v297_v2 = vld [vmem:[%s953_s22 + $0xc8] sm:$0xff] }
  0x4b   : > { %402 = vmatpush.msra.mxu0 %v323_v48  ;;  %686 = vmatpush.msra.mxu2 %v323_v48  ;;  %v313_v3 = vld [vmem:[%s1079_s1 + $0x8] sm:$0xff]  ;;  %v312_v4 = vld [vmem:[%s1079_s1] sm:$0xff]  ;;  %v290_v6 = vld [vmem:[%s953_s22 + $0x90] sm:$0xff] }
  0x4c   : > { %486 = vmatpush.msra.mxu1 %v332_v49  ;;  %702 = vmatpush.msra.mxu3 %v332_v49  ;;  %v272_v5 = vld [vmem:[%s953_s22] sm:$0xff]  ;;  %v277_v7 = vld [vmem:[%s953_s22 + $0x28] sm:$0xff]  ;;  %v299_v8 = vld [vmem:[%s953_s22 + $0xd8] sm:$0xff] }
  0x4d   : > { %403 = vmatpush.msra.mxu0 %v322_v50  ;;  %687 = vmatpush.msra.mxu2 %v322_v50  ;;  %v274_v9 = vld [vmem:[%s953_s22 + $0x10] sm:$0xff]  ;;  %v292_v10 = vld [vmem:[%s953_s22 + $0xa0] sm:$0xff]  ;;  %v279_v11 = vld [vmem:[%s953_s22 + $0x38] sm:$0xff] }
  0x4e   : > { %487 = vmatpush.msra.mxu1 %v331_v51  ;;  %703 = vmatpush.msra.mxu3 %v331_v51  ;;  %v301_v12 = vld [vmem:[%s953_s22 + $0xe8] sm:$0xff]  ;;  %v276_v13 = vld [vmem:[%s953_s22 + $0x20] sm:$0xff]  ;;  %v294_v14 = vld [vmem:[%s953_s22 + $0xb0] sm:$0xff] }
  0x4f   : > { %404 = vmatpush.msra.mxu0 %v321_v52  ;;  %688 = vmatpush.msra.mxu2 %v321_v52  ;;  %v281_v15 = vld [vmem:[%s953_s22 + $0x48] sm:$0xff]  ;;  %v303_v16 = vld [vmem:[%s953_s22 + $0xf8] sm:$0xff]  ;;  %v278_v17 = vld [vmem:[%s953_s22 + $0x30] sm:$0xff] }
  0x50   : > { %488 = vmatpush.msra.mxu1 %v330_v53  ;;  %704 = vmatpush.msra.mxu3 %v330_v53  ;;  %v296_v18 = vld [vmem:[%s953_s22 + $0xc0] sm:$0xff]  ;;  %v283_v19 = vld [vmem:[%s953_s22 + $0x58] sm:$0xff]  ;;  %v305_v20 = vld [vmem:[%s953_s22 + $0x108] sm:$0xff] }
  0x51   : > { %405 = vmatpush.msra.mxu0 %v320_v54  ;;  %689 = vmatpush.msra.mxu2 %v320_v54  ;;  %v280_v21 = vld [vmem:[%s953_s22 + $0x40] sm:$0xff]  ;;  %v298_v22 = vld [vmem:[%s953_s22 + $0xd0] sm:$0xff]  ;;  %v285_v23 = vld [vmem:[%s953_s22 + $0x68] sm:$0xff] }
  0x52   : > { %489 = vmatpush.msra.mxu1 %v329_v55  ;;  %705 = vmatpush.msra.mxu3 %v329_v55  ;;  %v307_v24 = vld [vmem:[%s953_s22 + $0x118] sm:$0xff]  ;;  %v282_v25 = vld [vmem:[%s953_s22 + $0x50] sm:$0xff]  ;;  %v300_v26 = vld [vmem:[%s953_s22 + $0xe0] sm:$0xff] }
  0x53   : > { %406 = vmatpush.msra.mxu0 %v319_v56  ;;  %690 = vmatpush.msra.mxu2 %v319_v56  ;;  %v287_v27 = vld [vmem:[%s953_s22 + $0x78] sm:$0xff]  ;;  %v309_v28 = vld [vmem:[%s953_s22 + $0x128] sm:$0xff]  ;;  %v284_v29 = vld [vmem:[%s953_s22 + $0x60] sm:$0xff] }
  0x54   : > { %490 = vmatpush.msra.mxu1 %v328_v57  ;;  %706 = vmatpush.msra.mxu3 %v328_v57  ;;  %v302_v30 = vld [vmem:[%s953_s22 + $0xf0] sm:$0xff]  ;;  %v289_v31 = vld [vmem:[%s953_s22 + $0x88] sm:$0xff]  ;;  %v311_v32 = vld [vmem:[%s953_s22 + $0x138] sm:$0xff] }
  0x55   : > { %657 = vmatmul.msk.f32.vlgmr.msra.gmra.mxu1 %vm337_vm0, %v273_v58  ;;  %407 = vmatpush.msra.mxu0 %v318_v59  ;;  %v286_v33 = vld [vmem:[%s953_s22 + $0x70] sm:$0xff]  ;;  %v304_v34 = vld [vmem:[%s953_s22 + $0x100] sm:$0xff]  ;;  %v291_v35 = vld [vmem:[%s953_s22 + $0x98] sm:$0xff] }
  0x56   : > { %691 = vmatpush.msra.mxu2 %v318_v59  ;;  %668 = vmatmul.msk.f32.vlgmr.msra.gmra.mxu3 %vm337_vm0, %v295_v60  ;;  %v288_v36 = vld [vmem:[%s953_s22 + $0x80] sm:$0xff]  ;;  %v306_v37 = vld [vmem:[%s953_s22 + $0x110] sm:$0xff]  ;;  %v293_v38 = vld [vmem:[%s953_s22 + $0xa8] sm:$0xff] }
  0x57   : > { %408 = vmatpush.msra.mxu0 %v317_v61  ;;  %v308_v39 = vld [vmem:[%s953_s22 + $0x120] sm:$0xff]  ;;  %v310_v40 = vld [vmem:[%s953_s22 + $0x130] sm:$0xff] }
  0x58   : > { %692 = vmatpush.msra.mxu2 %v317_v61 }
  0x59   : > { %409 = vmatpush.msra.mxu0 %v316_v62 }
  0x5a   : > { %693 = vmatpush.msra.mxu2 %v316_v62 }
  0x5b   : > { %410 = vmatpush.msra.mxu0 %v315_v63 }
  0x5c   : > { %694 = vmatpush.msra.mxu2 %v315_v63 }
  0x5d   : > { %658 = vmatmul.msk.f32.gmra.mxu1 %vm337_vm0, %v275_v0  ;;  %411 = vmatpush.msra.mxu0 %v314_v1 }
  0x5e   : > { %695 = vmatpush.msra.mxu2 %v314_v1  ;;  %669 = vmatmul.msk.f32.gmra.mxu3 %vm337_vm0, %v297_v2 }
  0x5f   : > { %412 = vmatpush.msra.mxu0 %v313_v3 }
  0x60   : > { %696 = vmatpush.msra.mxu2 %v313_v3 }
  0x61   : > { %413 = vmatpush.msra.mxu0 %v312_v4 }
  0x62   : > { %697 = vmatpush.msra.mxu2 %v312_v4  ;;  %414 = vmatmul.f32.vlgmr.msra.gmra.mxu0 %v272_v5 }
  0x63   : > { %441 = vmatmul.f32.vlgmr.msra.gmra.mxu2 %v290_v6 }
  0x65   : > { %659 = vmatmul.msk.f32.gmra.mxu1 %vm337_vm0, %v277_v7 }
  0x66   : > { %670 = vmatmul.msk.f32.gmra.mxu3 %vm337_vm0, %v299_v8 }
  0x6a   : > { %417 = vmatmul.f32.gmra.mxu0 %v274_v9 }
  0x6b   : > { %444 = vmatmul.f32.gmra.mxu2 %v292_v10 }
  0x6d   : > { %660 = vmatmul.msk.f32.gmra.mxu1 %vm337_vm0, %v279_v11 }
  0x6e   : > { %671 = vmatmul.msk.f32.gmra.mxu3 %vm337_vm0, %v301_v12 }
  0x72   : > { %420 = vmatmul.f32.gmra.mxu0 %v276_v13 }
  0x73   : > { %447 = vmatmul.f32.gmra.mxu2 %v294_v14 }
  0x75   : > { %661 = vmatmul.msk.f32.gmra.mxu1 %vm337_vm0, %v281_v15 }
  0x76   : > { %672 = vmatmul.msk.f32.gmra.mxu3 %vm337_vm0, %v303_v16 }
  0x7a   : > { %423 = vmatmul.f32.gmra.mxu0 %v278_v17 }
  0x7b   : > { %450 = vmatmul.f32.gmra.mxu2 %v296_v18 }
  0x7d   : > { %662 = vmatmul.msk.f32.gmra.mxu1 %vm337_vm0, %v283_v19 }
  0x7e   : > { %673 = vmatmul.msk.f32.gmra.mxu3 %vm337_vm0, %v305_v20  ;;  %v733_v20 = vld [vmem:[%s1080_s2] ss:$0 sm:$0xff] }
  0x82   : > { %426 = vmatmul.f32.gmra.mxu0 %v280_v21 }
  0x83   : > { %453 = vmatmul.f32.gmra.mxu2 %v298_v22 }
  0x85   : > { %663 = vmatmul.msk.f32.gmra.mxu1 %vm337_vm0, %v285_v23 }
  0x86   : > { %674 = vmatmul.msk.f32.gmra.mxu3 %vm337_vm0, %v307_v24 }
  0x8a   : > { %429 = vmatmul.f32.gmra.mxu0 %v282_v25 }
  0x8b   : > { %456 = vmatmul.f32.gmra.mxu2 %v300_v26 }
  0x8d   : > { %664 = vmatmul.msk.f32.gmra.mxu1 %vm337_vm0, %v287_v27 }
  0x8e   : > { %675 = vmatmul.msk.f32.gmra.mxu3 %vm337_vm0, %v309_v28 }
  0x92   : > { %432 = vmatmul.f32.gmra.mxu0 %v284_v29 }
  0x93   : > { %459 = vmatmul.f32.gmra.mxu2 %v302_v30 }
  0x95   : > { %665 = vmatmul.msk.f32.gmra.mxu1 %vm337_vm0, %v289_v31 }
  0x96   : > { %676 = vmatmul.msk.f32.gmra.mxu3 %vm337_vm0, %v311_v32 }
  0x9a   : > { %435 = vmatmul.f32.gmra.mxu0 %v286_v33 }
  0x9b   : > { %462 = vmatmul.f32.gmra.mxu2 %v304_v34 }
  0x9d   : > { %666 = vmatmul.msk.f32.gmra.mxu1 %vm337_vm0, %v291_v35 }
  0xa2   : > { %438 = vmatmul.f32.gmra.mxu0 %v288_v36 }
  0xa3   : > { %465 = vmatmul.f32.gmra.mxu2 %v306_v37 }
  0xa5   : > { %667 = vmatmul.msk.f32.gmra.mxu1 %vm337_vm0, %v293_v38 }
  0xab   : > { %468 = vmatmul.f32.gmra.mxu2 %v308_v39 }
  0xb3   : > { %471 = vmatmul.f32.gmra.mxu2 %v310_v40 }
  0xd2   : > { %v492_v41 = vpop.f32.mrf.mxu1 }
  0xd9   : > { %v525_v45 = vpop.f32.mrf.mxu3 }
  0xda   : > { %v495_v42 = vpop.f32.mrf.mxu1 }
  0xdf   : > { %v415_v43 = vpop.f32.mrf.mxu0 }
  0xe0   : > { %v493_v22 = vadd.f32 %v492_v41, %v415_v43 }
  0xe1   : > { %v528_v50 = vpop.f32.mrf.mxu3 }
  0xe2   : > { %v498_v44 = vpop.f32.mrf.mxu1 }
  0xe6   : > { %v442_v46 = vpop.f32.mrf.mxu2 }
  0xe7   : > { %v418_v47 = vpop.f32.mrf.mxu0 }
  0xe8   : > { %v496_v7 = vadd.f32 %v495_v42, %v418_v47 }
  0xe9   : > { %v1038_v55 = vpop.f32.mrf.mxu3 }
  0xea   : > { %v1036_v48 = vpop.f32.mrf.mxu1 }
  0xee   : > { %v445_v49 = vpop.f32.mrf.mxu2 }
  0xef   : > { %v421_v51 = vpop.f32.mrf.mxu0 }
  0xf0   : > { %v499_v23 = vadd.f32 %v498_v44, %v421_v51 }
  0xf1   : > { %v1040_v60 = vpop.f32.mrf.mxu3 }
  0xf2   : > { %v504_v52 = vpop.f32.mrf.mxu1 }
  0xf6   : > { %v448_v53 = vpop.f32.mrf.mxu2 }
  0xf7   : > { %v424_v54 = vpop.f32.mrf.mxu0  ;;  %v526_v13 = vadd.f32 %v525_v45, %v448_v53 }
  0xf8   : > { %v502_v40 = vadd.f32 %v1036_v48, %v424_v54 }
  0xf9   : > { %v537_v0 = vpop.f32.mrf.mxu3 }
  0xfa   : > { %v507_v56 = vpop.f32.mrf.mxu1 }
  0xfe   : > { %v451_v57 = vpop.f32.mrf.mxu2 }
  0xff   : > { %v427_v58 = vpop.f32.mrf.mxu0  ;;  %v529_v31 = vadd.f32 %v528_v50, %v451_v57 }
 0x100   : > { %v505_v10 = vadd.f32 %v504_v52, %v427_v58 }
 0x101   : > { %v540_v5 = vpop.f32.mrf.mxu3 }
 0x102   : > { %v510_v59 = vpop.f32.mrf.mxu1 }
 0x106   : > { %v454_v61 = vpop.f32.mrf.mxu2 }
 0x107   : > { %v430_v62 = vpop.f32.mrf.mxu0  ;;  %v532_v47 = vadd.f32 %v1038_v55, %v454_v61 }
 0x108   : > { %v508_v16 = vadd.f32 %v507_v56, %v430_v62 }
 0x109   : > { %v543_v21 = vpop.f32.mrf.mxu3 }
 0x10a   : > { %v513_v63 = vpop.f32.mrf.mxu1  ;;  %v552_v26 = vmax.f32 %v493_v22, %v508_v16 }
 0x10e   : > { %v1042_v1 = vpop.f32.mrf.mxu2 }
 0x10f   : > { %v433_v2 = vpop.f32.mrf.mxu0  ;;  %v535_v56 = vadd.f32 %v1040_v60, %v1042_v1 }
 0x110   : > { %v511_v6 = vadd.f32 %v510_v59, %v433_v2 }
 0x111   : > { %v546_v43 = vpop.f32.mrf.mxu3 }
 0x112   : > { %v516_v3 = vpop.f32.mrf.mxu1  ;;  %v555_v11 = vmax.f32 %v496_v7, %v511_v6 }
 0x114   : > { %v556_v19 = vmax.f32 %v555_v11, %v526_v13 }
 0x116   : > { %v460_v4 = vpop.f32.mrf.mxu2 }
 0x117   : > { %v436_v8 = vpop.f32.mrf.mxu0  ;;  %v538_v32 = vadd.f32 %v537_v0, %v460_v4 }
 0x118   : > { %v514_v17 = vadd.f32 %v513_v63, %v436_v8 }
 0x119   : > { %v549_v54 = vpop.f32.mrf.mxu3 }
 0x11a   : > { %v519_v9 = vpop.f32.mrf.mxu1  ;;  %v558_v27 = vmax.f32 %v499_v23, %v514_v17 }
 0x11b   : > { %v520_v12 = vadd.f32 %v519_v9, %v442_v46 }
 0x11c   : > { %v559_v39 = vmax.f32 %v558_v27, %v529_v31 }
 0x11d   : > { %v564_v14 = vmax.f32 %v505_v10, %v520_v12 }
 0x11e   : > { %v463_v15 = vpop.f32.mrf.mxu2 }
 0x11f   : > { %v541_v18 = vadd.f32 %v540_v5, %v463_v15  ;;  %v439_v30 = vpop.f32.mrf.mxu0  ;;  %v565_v59 = vmax.f32 %v564_v14, %v535_v56 }
 0x120   : > { %v517_v36 = vadd.f32 %v516_v3, %v439_v30 }
 0x121   : > { %v557_v24 = vmax.f32 %v556_v19, %v541_v18 }
 0x122   : > { %v522_v25 = vpop.f32.mrf.mxu1  ;;  %v561_v44 = vmax.f32 %v502_v40, %v517_v36 }
 0x123   : > { %v572_v28 = vadd.f32 %v733_v20, %v557_v24  ;;  %v523_v29 = vadd.f32 %v522_v25, %v445_v49 }
 0x124   : > { %v562_v52 = vmax.f32 %v561_v44, %v532_v47 }
 0x125   : > { %v577_v33 = vmax.f32 %v572_v28, 0.0  ;;  %v553_v34 = vmax.f32 %v552_v26, %v523_v29 }
 0x126   : > { %v466_v35 = vpop.f32.mrf.mxu2 }
 0x127   : > { %583 = vst.msk [vmem:[%s1052_s18 + $0x8] sm:$0xff] %vm581_vm1, %v577_v33  ;;  %v554_v37 = vmax.f32 %v553_v34, %v538_v32  ;;  %v544_v38 = vadd.f32 %v543_v21, %v466_v35 }
 0x129   : > { %v571_v41 = vadd.f32 %v733_v20, %v554_v37  ;;  %v560_v42 = vmax.f32 %v559_v39, %v544_v38 }
 0x12b   : > { %v576_v45 = vmax.f32 %v571_v41, 0.0  ;;  %v573_v46 = vadd.f32 %v733_v20, %v560_v42 }
 0x12d   : > { %582 = vst.msk [vmem:[%s1052_s18] sm:$0xff] %vm581_vm1, %v576_v45  ;;  %v578_v49 = vmax.f32 %v573_v46, 0.0 }
 0x12e   : > { %v469_v50 = vpop.f32.mrf.mxu2 }
 0x12f   : > { %584 = vst.msk [vmem:[%s1052_s18 + $0x10] sm:$0xff] %vm581_vm1, %v578_v49  ;;  %v547_v51 = vadd.f32 %v546_v43, %v469_v50 }
 0x131   : > { %v563_v53 = vmax.f32 %v562_v52, %v547_v51 }
 0x133   : > { %v574_v48 = vadd.f32 %v733_v20, %v563_v53 }
 0x135   : > { %v579_v57 = vmax.f32 %v574_v48, 0.0 }
 0x136   : > { %v472_v58 = vpop.f32.mrf.mxu2 }
 0x137   : > { %585 = vst.msk [vmem:[%s1052_s18 + $0x18] sm:$0xff] %vm581_vm1, %v579_v57  ;;  %v550_v55 = vadd.f32 %v549_v54, %v472_v58 }
 0x139   : > { %v566_v61 = vmax.f32 %v565_v59, %v550_v55 }
 0x13b   : > { %v575_v62 = vadd.f32 %v733_v20, %v566_v61 }
 0x13d   : > { %v580_v63 = vmax.f32 %v575_v62, 0.0 }
 0x13f   : > { %586 = vst.msk [vmem:[%s1052_s18 + $0x20] sm:$0xff] %vm581_vm1, %v580_v63 }
 0x140 PF: > { %p10_p9 = scmp.ge.s32.totalorder %s795_s16, 7   ;;  %s1082_s12 = smov %s752_s13 }
 0x141   : > { %s1083_s13 = smov %s804_s19  ;;  %s1084_s14 = smov %s795_s16 }
 0x142   :  { %12 = sbr.rel (!%p10_p9) target bundleno = 2 (0x2), region = 90 }

// kernel: net_forward.5
= control target key start
LH: loop header
LB: loop body
LE: loop exit
PB: predicated region body
PF: predicated region fallthrough
CT: control target
= control target key end

     0   :  { %vm84_vm0 = vcmask 130048   ;;  %s569_s1 = inlined_call_operand.vmem [shape: f32[400,128], index: 1, kind: input, shape index: {}]   ;;  %s570_s0 = inlined_call_operand.vmem [shape: f32[8,400], index: 0, kind: input, shape index: {}]   ;;  %s571_s3 = inlined_call_operand.vmem [shape: f32[128,128], index: 3, kind: input, shape index: {}]   ;;  %s572_s2 = inlined_call_operand.vmem [shape: f32[1,128], index: 2, kind: input, shape index: {}]   ;;  %s573_s4 = inlined_call_operand.vmem [shape: f32[1,128], index: 4, kind: input, shape index: {}]   ;;  %s574_s5 = inlined_call_operand.vmem [shape: f32[128,128], index: 5, kind: input, shape index: {}]   ;;  %s575_s6 = inlined_call_operand.vmem [shape: f32[1,128], index: 6, kind: input, shape index: {}]   ;;  %s576_s7 = inlined_call_operand.vmem [shape: f32[8,16], index: 7, kind: output, shape index: {}]  }
   0x1   :  { %v77_v0 = vld [vmem:[%s569_s1 + $0x178] sm:$0xff]  ;;  %v76_v2 = vld [vmem:[%s569_s1 + $0x170] sm:$0xff]  ;;  %v75_v5 = vld [vmem:[%s569_s1 + $0x168] sm:$0xff] }
   0x2   :  { %v45_v1 = vld [vmem:[%s569_s1 + $0x78] sm:$0xff]  ;;  %128 = vmatpush.msra.mxu2 %v77_v0  ;;  %v44_v3 = vld [vmem:[%s569_s1 + $0x70] sm:$0xff]  ;;  %v43_v6 = vld [vmem:[%s569_s1 + $0x68] sm:$0xff] }
   0x3   :  { %88 = vmatpush.msra.mxu0 %v45_v1  ;;  %v61_v4 = vld [vmem:[%s569_s1 + $0xf8] sm:$0xff]  ;;  %v60_v7 = vld [vmem:[%s569_s1 + $0xf0] sm:$0xff]  ;;  %v59_v8 = vld [vmem:[%s569_s1 + $0xe8] sm:$0xff] }
   0x4   :  { %108 = vmatpush.msra.mxu1 %v61_v4  ;;  %129 = vmatpush.msra.mxu2 %v76_v2  ;;  %v74_v9 = vld [vmem:[%s569_s1 + $0x160] sm:$0xff]  ;;  %v73_v12 = vld [vmem:[%s569_s1 + $0x158] sm:$0xff]  ;;  %v72_v15 = vld [vmem:[%s569_s1 + $0x150] sm:$0xff] }
   0x5   :  { %89 = vmatpush.msra.mxu0 %v44_v3  ;;  %v42_v10 = vld [vmem:[%s569_s1 + $0x60] sm:$0xff]  ;;  %v41_v13 = vld [vmem:[%s569_s1 + $0x58] sm:$0xff]  ;;  %v40_v16 = vld [vmem:[%s569_s1 + $0x50] sm:$0xff] }
   0x6   :  { %109 = vmatpush.msra.mxu1 %v60_v7  ;;  %130 = vmatpush.msra.mxu2 %v75_v5  ;;  %v58_v11 = vld [vmem:[%s569_s1 + $0xe0] sm:$0xff]  ;;  %v57_v14 = vld [vmem:[%s569_s1 + $0xd8] sm:$0xff]  ;;  %v56_v17 = vld [vmem:[%s569_s1 + $0xd0] sm:$0xff] }
   0x7   :  { %90 = vmatpush.msra.mxu0 %v43_v6  ;;  %v71_v18 = vld [vmem:[%s569_s1 + $0x148] sm:$0xff]  ;;  %v70_v21 = vld [vmem:[%s569_s1 + $0x140] sm:$0xff]  ;;  %v69_v24 = vld [vmem:[%s569_s1 + $0x138] sm:$0xff] }
   0x8   :  { %110 = vmatpush.msra.mxu1 %v59_v8  ;;  %131 = vmatpush.msra.mxu2 %v74_v9  ;;  %v39_v19 = vld [vmem:[%s569_s1 + $0x48] sm:$0xff]  ;;  %v38_v22 = vld [vmem:[%s569_s1 + $0x40] sm:$0xff]  ;;  %v37_v25 = vld [vmem:[%s569_s1 + $0x38] sm:$0xff] }
   0x9   :  { %91 = vmatpush.msra.mxu0 %v42_v10  ;;  %v55_v20 = vld [vmem:[%s569_s1 + $0xc8] sm:$0xff]  ;;  %v54_v23 = vld [vmem:[%s569_s1 + $0xc0] sm:$0xff]  ;;  %v53_v26 = vld [vmem:[%s569_s1 + $0xb8] sm:$0xff] }
   0xa   :  { %111 = vmatpush.msra.mxu1 %v58_v11  ;;  %132 = vmatpush.msra.mxu2 %v73_v12  ;;  %v79_v27 = vld [vmem:[%s569_s1 + $0x188] sm:$0xff]  ;;  %v68_v28 = vld [vmem:[%s569_s1 + $0x130] sm:$0xff]  ;;  %v78_v30 = vld [vmem:[%s569_s1 + $0x180] sm:$0xff] }
   0xb   :  { %92 = vmatpush.msra.mxu0 %v41_v13  ;;  %v36_v29 = vld [vmem:[%s569_s1 + $0x30] sm:$0xff]  ;;  %162 = vmatpush.msra.mxu3 %v79_v27  ;;  %v29_v32 = vld [vmem:[%s570_s0 + $0x18] sm:$0xff]  ;;  %v67_v33 = vld [vmem:[%s569_s1 + $0x128] sm:$0xff] }
   0xc   :  { %112 = vmatpush.msra.mxu1 %v57_v14  ;;  %133 = vmatpush.msra.mxu2 %v72_v15  ;;  %v52_v31 = vld [vmem:[%s569_s1 + $0xb0] sm:$0xff]  ;;  %v35_v34 = vld [vmem:[%s569_s1 + $0x28] sm:$0xff]  ;;  %v183_v36 = vld [vmem:[%s571_s3 + $0x78] sm:$0xff] }
   0xd   :  { %93 = vmatpush.msra.mxu0 %v40_v16  ;;  %163 = vmatpush.msra.mxu3 %v78_v30  ;;  %v51_v35 = vld [vmem:[%s569_s1 + $0xa8] sm:$0xff]  ;;  %v66_v37 = vld [vmem:[%s569_s1 + $0x120] sm:$0xff]  ;;  %v182_v40 = vld [vmem:[%s571_s3 + $0x70] sm:$0xff] }
   0xe   :  { %113 = vmatpush.msra.mxu1 %v56_v17  ;;  %134 = vmatpush.msra.mxu2 %v71_v18  ;;  %v34_v38 = vld [vmem:[%s569_s1 + $0x20] sm:$0xff]  ;;  %v65_v41 = vld [vmem:[%s569_s1 + $0x118] sm:$0xff]  ;;  %v181_v44 = vld [vmem:[%s571_s3 + $0x68] sm:$0xff] }
   0xf   :  { %94 = vmatpush.msra.mxu0 %v39_v19  ;;  %253 = vmatmul.msk.f32.vlgmr.msra.gmra.mxu3 %vm84_vm0, %v29_v32  ;;  %v50_v39 = vld [vmem:[%s569_s1 + $0xa0] sm:$0xff]  ;;  %v33_v42 = vld [vmem:[%s569_s1 + $0x18] sm:$0xff]  ;;  %v64_v45 = vld [vmem:[%s569_s1 + $0x110] sm:$0xff] }
  0x10   :  { %114 = vmatpush.msra.mxu1 %v55_v20  ;;  %135 = vmatpush.msra.mxu2 %v70_v21  ;;  %v49_v43 = vld [vmem:[%s569_s1 + $0x98] sm:$0xff]  ;;  %v32_v46 = vld [vmem:[%s569_s1 + $0x10] sm:$0xff]  ;;  %v180_v48 = vld [vmem:[%s571_s3 + $0x60] sm:$0xff] }
  0x11   :  { %95 = vmatpush.msra.mxu0 %v38_v22  ;;  %188 = vmatpush.msrb.mxu3 %v183_v36  ;;  %v48_v47 = vld [vmem:[%s569_s1 + $0x90] sm:$0xff]  ;;  %v63_v49 = vld [vmem:[%s569_s1 + $0x108] sm:$0xff]  ;;  %v179_v52 = vld [vmem:[%s571_s3 + $0x58] sm:$0xff] }
  0x12   :  { %115 = vmatpush.msra.mxu1 %v54_v23  ;;  %136 = vmatpush.msra.mxu2 %v69_v24  ;;  %v31_v50 = vld [vmem:[%s569_s1 + $0x8] sm:$0xff]  ;;  %v62_v53 = vld [vmem:[%s569_s1 + $0x100] sm:$0xff]  ;;  %v28_v55 = vld [vmem:[%s570_s0 + $0x10] sm:$0xff] }
  0x13   :  { %96 = vmatpush.msra.mxu0 %v37_v25  ;;  %189 = vmatpush.msrb.mxu3 %v182_v40  ;;  %v47_v51 = vld [vmem:[%s569_s1 + $0x88] sm:$0xff]  ;;  %v30_v54 = vld [vmem:[%s569_s1] sm:$0xff]  ;;  %v178_v58 = vld [vmem:[%s571_s3 + $0x50] sm:$0xff] }
  0x14   :  { %116 = vmatpush.msra.mxu1 %v53_v26  ;;  %137 = vmatpush.msra.mxu2 %v68_v28  ;;  %v26_v56 = vld [vmem:[%s570_s0] sm:$0xff]  ;;  %v27_v59 = vld [vmem:[%s570_s0 + $0x8] sm:$0xff]  ;;  %v175_v62 = vld [vmem:[%s571_s3 + $0x38] sm:$0xff] }
  0x15   :  { %97 = vmatpush.msra.mxu0 %v36_v29  ;;  %190 = vmatpush.msrb.mxu3 %v181_v44  ;;  %v46_v57 = vld [vmem:[%s569_s1 + $0x80] sm:$0xff]  ;;  %v177_v60 = vld [vmem:[%s571_s3 + $0x48] sm:$0xff]  ;;  %v174_v63 = vld [vmem:[%s571_s3 + $0x30] sm:$0xff] }
  0x16   :  { %117 = vmatpush.msra.mxu1 %v52_v31  ;;  %138 = vmatpush.msra.mxu2 %v67_v33  ;;  %v176_v61 = vld [vmem:[%s571_s3 + $0x40] sm:$0xff]  ;;  %v173_v0 = vld [vmem:[%s571_s3 + $0x28] sm:$0xff]  ;;  %v171_v2 = vld [vmem:[%s571_s3 + $0x18] sm:$0xff] }
  0x17   :  { %98 = vmatpush.msra.mxu0 %v35_v34  ;;  %191 = vmatpush.msrb.mxu3 %v180_v48  ;;  %v172_v1 = vld [vmem:[%s571_s3 + $0x20] sm:$0xff]  ;;  %v170_v3 = vld [vmem:[%s571_s3 + $0x10] sm:$0xff]  ;;  %v169_v4 = vld [vmem:[%s571_s3 + $0x8] sm:$0xff] }
  0x18   :  { %118 = vmatpush.msra.mxu1 %v51_v35  ;;  %139 = vmatpush.msra.mxu2 %v66_v37  ;;  %v168_v5 = vld [vmem:[%s571_s3] sm:$0xff]  ;;  %v223_v6 = vld [vmem:[%s574_s5 + $0x78] sm:$0xff]  ;;  %v222_v7 = vld [vmem:[%s574_s5 + $0x70] sm:$0xff] }
  0x19   :  { %99 = vmatpush.msra.mxu0 %v34_v38  ;;  %192 = vmatpush.msrb.mxu3 %v179_v52  ;;  %v221_v8 = vld [vmem:[%s574_s5 + $0x68] sm:$0xff]  ;;  %v220_v9 = vld [vmem:[%s574_s5 + $0x60] sm:$0xff]  ;;  %v219_v10 = vld [vmem:[%s574_s5 + $0x58] sm:$0xff] }
  0x1a   :  { %119 = vmatpush.msra.mxu1 %v50_v39  ;;  %140 = vmatpush.msra.mxu2 %v65_v41  ;;  %v218_v11 = vld [vmem:[%s574_s5 + $0x50] sm:$0xff]  ;;  %v217_v12 = vld [vmem:[%s574_s5 + $0x48] sm:$0xff]  ;;  %v216_v13 = vld [vmem:[%s574_s5 + $0x40] sm:$0xff] }
  0x1b   :  { %100 = vmatpush.msra.mxu0 %v33_v42  ;;  %193 = vmatpush.msrb.mxu3 %v178_v58  ;;  %v215_v14 = vld [vmem:[%s574_s5 + $0x38] sm:$0xff]  ;;  %v214_v15 = vld [vmem:[%s574_s5 + $0x30] sm:$0xff]  ;;  %v254_v16 = vld [vmem:[%s572_s2] ss:$0 sm:$0xff] }
  0x1c   :  { %120 = vmatpush.msra.mxu1 %v49_v43  ;;  %141 = vmatpush.msra.mxu2 %v64_v45  ;;  %v213_v17 = vld [vmem:[%s574_s5 + $0x28] sm:$0xff]  ;;  %v212_v18 = vld [vmem:[%s574_s5 + $0x20] sm:$0xff]  ;;  %v211_v21 = vld [vmem:[%s574_s5 + $0x18] sm:$0xff] }
  0x1d   :  { %101 = vmatpush.msra.mxu0 %v32_v46  ;;  %194 = vmatpush.msrb.mxu3 %v177_v60  ;;  %v210_v24 = vld [vmem:[%s574_s5 + $0x10] sm:$0xff]  ;;  %v209_v29 = vld [vmem:[%s574_s5 + $0x8] sm:$0xff]  ;;  %v208_v30 = vld [vmem:[%s574_s5] sm:$0xff] }
  0x1e   :  { %121 = vmatpush.msra.mxu1 %v48_v47  ;;  %142 = vmatpush.msra.mxu2 %v63_v49  ;;  %v255_v31 = vld [vmem:[%s573_s4] ss:$0 sm:$0xff] }
  0x1f   :  { %102 = vmatpush.msra.mxu0 %v31_v50  ;;  %195 = vmatpush.msrb.mxu3 %v176_v61  ;;  %v256_v34 = vld [vmem:[%s575_s6] ss:$0 sm:$0xff] }
  0x20   :  { %122 = vmatpush.msra.mxu1 %v47_v51  ;;  %143 = vmatpush.msra.mxu2 %v62_v53 }
  0x21   :  { %103 = vmatpush.msra.mxu0 %v30_v54  ;;  %144 = vmatmul.f32.vlgmr.msra.gmra.mxu2 %v28_v55 }
  0x22   :  { %104 = vmatmul.f32.vlgmr.msra.gmra.mxu0 %v26_v56  ;;  %123 = vmatpush.msra.mxu1 %v46_v57 }
  0x23   :  { %124 = vmatmul.f32.vlgmr.msra.gmra.mxu1 %v27_v59  ;;  %196 = vmatpush.msrb.mxu3 %v175_v62 }
  0x24   :  { %228 = vmatpush.msrb.mxu0 %v223_v6 }
  0x25   :  { %197 = vmatpush.msrb.mxu3 %v174_v63 }
  0x26   :  { %229 = vmatpush.msrb.mxu0 %v222_v7 }
  0x27   :  { %198 = vmatpush.msrb.mxu3 %v173_v0 }
  0x28   :  { %230 = vmatpush.msrb.mxu0 %v221_v8 }
  0x29   :  { %199 = vmatpush.msrb.mxu3 %v172_v1 }
  0x2a   :  { %231 = vmatpush.msrb.mxu0 %v220_v9 }
  0x2b   :  { %200 = vmatpush.msrb.mxu3 %v171_v2 }
  0x2c   :  { %232 = vmatpush.msrb.mxu0 %v219_v10 }
  0x2d   :  { %201 = vmatpush.msrb.mxu3 %v170_v3 }
  0x2e   :  { %233 = vmatpush.msrb.mxu0 %v218_v11 }
  0x2f   :  { %202 = vmatpush.msrb.mxu3 %v169_v4 }
  0x30   :  { %234 = vmatpush.msrb.mxu0 %v217_v12 }
  0x31   :  { %203 = vmatpush.msrb.mxu3 %v168_v5 }
  0x32   :  { %235 = vmatpush.msrb.mxu0 %v216_v13 }
  0x34   :  { %236 = vmatpush.msrb.mxu0 %v215_v14 }
  0x36   :  { %237 = vmatpush.msrb.mxu0 %v214_v15 }
  0x38   :  { %238 = vmatpush.msrb.mxu0 %v213_v17 }
  0x3a   :  { %239 = vmatpush.msrb.mxu0 %v212_v18 }
  0x3c   :  { %240 = vmatpush.msrb.mxu0 %v211_v21 }
  0x3e   :  { %241 = vmatpush.msrb.mxu0 %v210_v24 }
  0x40   :  { %242 = vmatpush.msrb.mxu0 %v209_v29 }
  0x42   :  { %243 = vmatpush.msrb.mxu0 %v208_v30 }
  0x92   :  { %v165_v26 = vpop.f32.mrf.mxu3 }
  0x9f   :  { %v105_v19 = vpop.f32.mrf.mxu0 }
  0xa0   :  { %v106_v20 = vadd.f32 %v254_v16, %v105_v19  ;;  %v125_v22 = vpop.f32.mrf.mxu1 }
  0xa2   :  { %v126_v23 = vadd.f32 %v125_v22, %v106_v20 }
  0xa4   :  { %v145_v25 = vpop.f32.mrf.mxu2 }
  0xa5   :  { %v146_v27 = vadd.f32 %v145_v25, %v126_v23 }
  0xa7   :  { %v166_v28 = vadd.f32 %v165_v26, %v146_v27 }
  0xa9   :  { %204 = vmatmul.f32.vlgmr.msrb.gmra.mxu3 %v166_v28 }
 0x12c   :  { %v205_v32 = vpop.f32.mrf.mxu3 }
 0x12d   :  { %v206_v33 = vadd.f32 %v255_v31, %v205_v32 }
 0x12f   :  { %244 = vmatmul.f32.vlgmr.msrb.gmra.mxu0 %v206_v33 }
 0x1ac   :  { %v245_v35 = vpop.f32.mrf.mxu0 }
 0x1ad   :  { %v246_v36 = vadd.f32 %v256_v34, %v245_v35 }
 0x1af   :  { %248 = vst.msk [vmem:[%s576_s7] sm:$0xff] %vm84_vm0, %v246_v36 }

</bundles_post_ra>
